<compile_context>
chip_gen: v7x
topology: tpu7x:2x2x1
jax: 0.10.0
libtpu: 0.0.40
codegen_flags: <defaults>
</compile_context>

<pallas_src>
import jax
import jax.numpy as jnp
from jax.experimental import pallas as pl
from jax.experimental.pallas import tpu as pltpu

HID = 128  # width all hidden layers are padded to (lane-dense tiles)


def nn_small_kernel(x_ref,
                    w1_ref, w2_ref, w21_ref, w22_ref, w23_ref, w3t_ref,
                    b_ref, b3_ref,
                    o_ref):
    """Fused MLP: fc1->relu->fc2->relu->fc21->relu->fc22->relu->fc23->relu->fc3.

    Weights are bf16 (MXU path); bias adds / ReLUs / accumulation are f32
    (v5e-safe). The final layer is computed transposed so the stored output is
    a lane-dense (out_rows, TB) bf16 tile.
    """
    b = b_ref[...]  # (5, 128) f32, one row per hidden layer

    def layer(h, w_ref, j):
        a = jnp.dot(h.astype(jnp.bfloat16), w_ref[...],
                    preferred_element_type=jnp.float32)
        return jnp.maximum(a + b[j:j + 1, :], 0.0)

    h = x_ref[...]             # (TB, state_dim) bf16 -> first cast is a no-op
    h = layer(h, w1_ref, 0)    # (TB, 128) f32
    h = layer(h, w2_ref, 1)    # (TB, 128)
    h = layer(h, w21_ref, 2)   # (TB, 128)  lanes >= 32 exactly 0
    h = layer(h, w22_ref, 3)   # (TB, 128)
    h = layer(h, w23_ref, 4)   # (TB, 128)

    # Final layer, transposed: (out_rows, 128) @ (128, TB) -> (out_rows, TB).
    # f32 transpose (XLU slot is idle here), then a single bf16 cast for the MXU.
    ht = h.T.astype(jnp.bfloat16)                                   # (128, TB)
    out_t = jnp.dot(w3t_ref[...], ht,
                    preferred_element_type=jnp.float32) + b3_ref[...]
    o_ref[...] = out_t.astype(o_ref.dtype)  # one cast at the store (bf16 out)
    # TODO(synk): nn.LogSoftmax (self.soft) exists on the module but is never
    # applied in forward(), so it is intentionally omitted here.


def init_linear_params(key, in_dim, out_dim):
    """nn.Linear-style U(-1/sqrt(in), 1/sqrt(in)) init; W returned as (in, out)."""
    k_w, k_b = jax.random.split(key)
    bound = 1.0 / jnp.sqrt(jnp.float32(in_dim))
    w = jax.random.uniform(k_w, (in_dim, out_dim), jnp.float32, -bound, bound)
    b = jax.random.uniform(k_b, (1, out_dim), jnp.float32, -bound, bound)
    return w, b


def _pad2(a, rows, cols):
    return jnp.pad(a, ((0, rows - a.shape[0]), (0, cols - a.shape[1])))


def nn_small_forward(x, params, *, tb=1024):
    (w1, b1), (w2, b2), (w21, b21), (w22, b22), (w23, b23), (w3, b3) = params
    batch, state_dim = x.shape
    output_dim = w3.shape[1]
    out_rows = max(8, ((output_dim + 7) // 8) * 8)  # sublane-pad the output rows

    # --- Weight preprocessing: bf16 weights, 32-wide layers padded to 128,
    #     fc3 transposed (and padded) so the kernel emits a lane-dense output.
    w1b = w1.astype(jnp.bfloat16)                          # (state_dim, 128)
    w2b = w2.astype(jnp.bfloat16)                          # (128, 128)
    w21b = _pad2(w21, HID, HID).astype(jnp.bfloat16)       # (128, 128)
    w22b = _pad2(w22, HID, HID).astype(jnp.bfloat16)       # (128, 128)
    w23b = _pad2(w23, HID, HID).astype(jnp.bfloat16)       # (128, 128)
    w3t = _pad2(w3.T, out_rows, HID).astype(jnp.bfloat16)  # (out_rows, 128)

    bias_stack = jnp.concatenate(
        [_pad2(b1, 1, HID), _pad2(b2, 1, HID), _pad2(b21, 1, HID),
         _pad2(b22, 1, HID), _pad2(b23, 1, HID)], axis=0).astype(jnp.float32)
    b3t = _pad2(b3.T, out_rows, 1).astype(jnp.float32)     # (out_rows, 1)

    # --- Batch tiling: big tiles (overhead-dominated otherwise), but keep >=2
    #     grid blocks when the batch allows it (v7x megacore).
    tb = min(tb, max(128, pl.next_power_of_2(pl.cdiv(batch, 2))))
    n_blocks = pl.cdiv(batch, tb)
    b_pad = n_blocks * tb

    xb = x.astype(jnp.bfloat16)
    if b_pad != batch:
        xb = jnp.pad(xb, ((0, b_pad - batch), (0, 0)))

    # --- BlockSpecs: stream x / out over the batch grid; weights stay resident
    #     in VMEM (constant index_map -> DMA'd once across the grid).
    const_map = lambda i: (0, 0)
    x_spec = pl.BlockSpec((tb, state_dim), lambda i: (i, 0))
    out_spec = pl.BlockSpec((out_rows, tb), lambda i: (0, i))
    wb_args = (w1b, w2b, w21b, w22b, w23b, w3t, bias_stack, b3t)
    in_specs = [x_spec] + [pl.BlockSpec(a.shape, const_map) for a in wb_args]

    # --- Advisory cost estimate (updated for padded shapes / bf16 traffic).
    flops = 2 * b_pad * (state_dim * HID + 4 * HID * HID + HID * out_rows)
    wb_bytes = sum(int(a.size) * a.dtype.itemsize for a in wb_args)
    bytes_accessed = b_pad * state_dim * 2 + out_rows * b_pad * 2 + wb_bytes
    cost = pl.CostEstimate(flops=flops, transcendentals=0,
                           bytes_accessed=bytes_accessed)

    out_t = pl.pallas_call(
        nn_small_kernel,
        out_shape=jax.ShapeDtypeStruct((out_rows, b_pad), jnp.bfloat16),
        grid=(n_blocks,),
        in_specs=in_specs,
        out_specs=out_spec,
        compiler_params=pltpu.CompilerParams(
            dimension_semantics=("parallel",)),
        cost_estimate=cost,
    )(xb, *wb_args)

    # Un-transpose the small (output_dim, batch) slab; cast back to f32.
    return out_t[:output_dim, :batch].T.astype(jnp.float32)


def nn_small_reference(x, params):
    """Plain-JAX reference mirroring the kernel's bf16-dot / f32-accumulate math."""
    (w1, b1), (w2, b2), (w21, b21), (w22, b22), (w23, b23), (w3, b3) = params

    def layer(h, w, b, relu=True):
        h = jnp.dot(h.astype(jnp.bfloat16), w.astype(jnp.bfloat16),
                    preferred_element_type=jnp.float32) + b
        return jnp.maximum(h, 0.0) if relu else h

    h = layer(x, w1, b1)
    h = layer(h, w2, b2)
    h = layer(h, w21, b21)
    h = layer(h, w22, b22)
    h = layer(h, w23, b23)
    return layer(h, w3, b3, relu=False)


if __name__ == "__main__":
    # Shapes consistent with the module: a batch of state vectors.
    batch = 2048         # 2 grid blocks @ TB=1024 (exercises megacore split)
    state_dim = 16
    output_dim = 4

    key = jax.random.PRNGKey(0)
    k_x, k1, k2, k21, k22, k23, k3 = jax.random.split(key, 7)

    x = jax.random.normal(k_x, (batch, state_dim), jnp.float32)

    params = (
        init_linear_params(k1, state_dim, 128),   # fc1
        init_linear_params(k2, 128, 128),         # fc2
        init_linear_params(k21, 128, 32),         # fc21
        init_linear_params(k22, 32, 32),          # fc22
        init_linear_params(k23, 32, 32),          # fc23
        init_linear_params(k3, 32, output_dim),   # fc3
    )

    fwd = jax.jit(lambda xx, pp: nn_small_forward(xx, pp))
    out = jax.block_until_ready(fwd(x, params))

    ref = nn_small_reference(x, params)
    assert out.shape == (batch, output_dim), out.shape
    assert jnp.allclose(out, ref, atol=1e-2, rtol=1e-2), "mismatch vs reference"

    print("KERNEL_OK")
</pallas_src>

<mosaic_0001>
module attributes {stable_mosaic.version = 11 : i64} {
  func.func @nn_small_kernel(%arg0: i32, %arg1: memref<1024x16xbf16, #tpu.memory_space<vmem>>, %arg2: memref<16x128xbf16, #tpu.memory_space<vmem>>, %arg3: memref<128x128xbf16, #tpu.memory_space<vmem>>, %arg4: memref<128x128xbf16, #tpu.memory_space<vmem>>, %arg5: memref<128x128xbf16, #tpu.memory_space<vmem>>, %arg6: memref<128x128xbf16, #tpu.memory_space<vmem>>, %arg7: memref<8x128xbf16, #tpu.memory_space<vmem>>, %arg8: memref<5x128xf32, #tpu.memory_space<vmem>>, %arg9: memref<8x1xf32, #tpu.memory_space<vmem>>, %arg10: memref<8x1024xbf16, #tpu.memory_space<vmem>>) attributes {dimension_semantics = [#tpu.dimension_semantics<parallel>], iteration_bounds = array<i64: 2>, scalar_prefetch = 0 : i64, scratch_operands = 0 : i64, tpu.core_type = #tpu.core_type<tc>, window_params = [{transform_indices = @transform_0, window_bounds = array<i64: 1024, 16>}, {pipeline_mode = #tpu.pipeline_mode<synchronous>, transform_indices = @transform_1, window_bounds = array<i64: 16, 128>}, {pipeline_mode = #tpu.pipeline_mode<synchronous>, transform_indices = @transform_2, window_bounds = array<i64: 128, 128>}, {pipeline_mode = #tpu.pipeline_mode<synchronous>, transform_indices = @transform_3, window_bounds = array<i64: 128, 128>}, {pipeline_mode = #tpu.pipeline_mode<synchronous>, transform_indices = @transform_4, window_bounds = array<i64: 128, 128>}, {pipeline_mode = #tpu.pipeline_mode<synchronous>, transform_indices = @transform_5, window_bounds = array<i64: 128, 128>}, {pipeline_mode = #tpu.pipeline_mode<synchronous>, transform_indices = @transform_6, window_bounds = array<i64: 8, 128>}, {pipeline_mode = #tpu.pipeline_mode<synchronous>, transform_indices = @transform_7, window_bounds = array<i64: 5, 128>}, {pipeline_mode = #tpu.pipeline_mode<synchronous>, transform_indices = @transform_8, window_bounds = array<i64: 8, 1>}, {transform_indices = @transform_9, window_bounds = array<i64: 8, 1024>}]} {
    %c0 = arith.constant 0 : index
    %c0_0 = arith.constant 0 : index
    %0 = vector.load %arg8[%c0, %c0_0] : memref<5x128xf32, #tpu.memory_space<vmem>>, vector<5x128xf32>
    %c0_1 = arith.constant 0 : index
    %c0_2 = arith.constant 0 : index
    %1 = vector.load %arg1[%c0_1, %c0_2] : memref<1024x16xbf16, #tpu.memory_space<vmem>>, vector<1024x16xbf16>
    %c0_3 = arith.constant 0 : index
    %c0_4 = arith.constant 0 : index
    %2 = vector.load %arg2[%c0_3, %c0_4] : memref<16x128xbf16, #tpu.memory_space<vmem>>, vector<16x128xbf16>
    %cst = arith.constant dense<0.000000e+00> : vector<1024x128xf32>
    %3 = tpu.matmul %1, %2, %cst {dimension_numbers = #tpu.dot_dimension_numbers<[1], [0], [0], [1], [0, 0, 1, 1], [], []>} : vector<1024x16xbf16>, vector<16x128xbf16>, vector<1024x128xf32> -> vector<1024x128xf32>
    %4 = vector.extract_strided_slice %0 {offsets = [0, 0], sizes = [1, 128], strides = [1, 1]} : vector<5x128xf32> to vector<1x128xf32>
    %5 = vector.broadcast %4 : vector<1x128xf32> to vector<1024x128xf32>
    %6 = arith.addf %3, %5 : vector<1024x128xf32>
    %cst_5 = arith.constant 0.000000e+00 : f32
    %7 = vector.broadcast %cst_5 : f32 to vector<1024x128xf32>
    %8 = arith.maximumf %6, %7 : vector<1024x128xf32>
    %9 = arith.truncf %8 : vector<1024x128xf32> to vector<1024x128xbf16>
    %c0_6 = arith.constant 0 : index
    %c0_7 = arith.constant 0 : index
    %10 = vector.load %arg3[%c0_6, %c0_7] : memref<128x128xbf16, #tpu.memory_space<vmem>>, vector<128x128xbf16>
    %cst_8 = arith.constant dense<0.000000e+00> : vector<1024x128xf32>
    %11 = tpu.matmul %9, %10, %cst_8 {dimension_numbers = #tpu.dot_dimension_numbers<[1], [0], [0], [1], [0, 0, 1, 1], [], []>} : vector<1024x128xbf16>, vector<128x128xbf16>, vector<1024x128xf32> -> vector<1024x128xf32>
    %12 = vector.extract_strided_slice %0 {offsets = [1, 0], sizes = [1, 128], strides = [1, 1]} : vector<5x128xf32> to vector<1x128xf32>
    %13 = vector.broadcast %12 : vector<1x128xf32> to vector<1024x128xf32>
    %14 = arith.addf %11, %13 : vector<1024x128xf32>
    %cst_9 = arith.constant 0.000000e+00 : f32
    %15 = vector.broadcast %cst_9 : f32 to vector<1024x128xf32>
    %16 = arith.maximumf %14, %15 : vector<1024x128xf32>
    %17 = arith.truncf %16 : vector<1024x128xf32> to vector<1024x128xbf16>
    %c0_10 = arith.constant 0 : index
    %c0_11 = arith.constant 0 : index
    %18 = vector.load %arg4[%c0_10, %c0_11] : memref<128x128xbf16, #tpu.memory_space<vmem>>, vector<128x128xbf16>
    %cst_12 = arith.constant dense<0.000000e+00> : vector<1024x128xf32>
    %19 = tpu.matmul %17, %18, %cst_12 {dimension_numbers = #tpu.dot_dimension_numbers<[1], [0], [0], [1], [0, 0, 1, 1], [], []>} : vector<1024x128xbf16>, vector<128x128xbf16>, vector<1024x128xf32> -> vector<1024x128xf32>
    %20 = vector.extract_strided_slice %0 {offsets = [2, 0], sizes = [1, 128], strides = [1, 1]} : vector<5x128xf32> to vector<1x128xf32>
    %21 = vector.broadcast %20 : vector<1x128xf32> to vector<1024x128xf32>
    %22 = arith.addf %19, %21 : vector<1024x128xf32>
    %cst_13 = arith.constant 0.000000e+00 : f32
    %23 = vector.broadcast %cst_13 : f32 to vector<1024x128xf32>
    %24 = arith.maximumf %22, %23 : vector<1024x128xf32>
    %25 = arith.truncf %24 : vector<1024x128xf32> to vector<1024x128xbf16>
    %c0_14 = arith.constant 0 : index
    %c0_15 = arith.constant 0 : index
    %26 = vector.load %arg5[%c0_14, %c0_15] : memref<128x128xbf16, #tpu.memory_space<vmem>>, vector<128x128xbf16>
    %cst_16 = arith.constant dense<0.000000e+00> : vector<1024x128xf32>
    %27 = tpu.matmul %25, %26, %cst_16 {dimension_numbers = #tpu.dot_dimension_numbers<[1], [0], [0], [1], [0, 0, 1, 1], [], []>} : vector<1024x128xbf16>, vector<128x128xbf16>, vector<1024x128xf32> -> vector<1024x128xf32>
    %28 = vector.extract_strided_slice %0 {offsets = [3, 0], sizes = [1, 128], strides = [1, 1]} : vector<5x128xf32> to vector<1x128xf32>
    %29 = vector.broadcast %28 : vector<1x128xf32> to vector<1024x128xf32>
    %30 = arith.addf %27, %29 : vector<1024x128xf32>
    %cst_17 = arith.constant 0.000000e+00 : f32
    %31 = vector.broadcast %cst_17 : f32 to vector<1024x128xf32>
    %32 = arith.maximumf %30, %31 : vector<1024x128xf32>
    %33 = arith.truncf %32 : vector<1024x128xf32> to vector<1024x128xbf16>
    %c0_18 = arith.constant 0 : index
    %c0_19 = arith.constant 0 : index
    %34 = vector.load %arg6[%c0_18, %c0_19] : memref<128x128xbf16, #tpu.memory_space<vmem>>, vector<128x128xbf16>
    %cst_20 = arith.constant dense<0.000000e+00> : vector<1024x128xf32>
    %35 = tpu.matmul %33, %34, %cst_20 {dimension_numbers = #tpu.dot_dimension_numbers<[1], [0], [0], [1], [0, 0, 1, 1], [], []>} : vector<1024x128xbf16>, vector<128x128xbf16>, vector<1024x128xf32> -> vector<1024x128xf32>
    %36 = vector.extract_strided_slice %0 {offsets = [4, 0], sizes = [1, 128], strides = [1, 1]} : vector<5x128xf32> to vector<1x128xf32>
    %37 = vector.broadcast %36 : vector<1x128xf32> to vector<1024x128xf32>
    %38 = arith.addf %35, %37 : vector<1024x128xf32>
    %cst_21 = arith.constant 0.000000e+00 : f32
    %39 = vector.broadcast %cst_21 : f32 to vector<1024x128xf32>
    %40 = arith.maximumf %38, %39 : vector<1024x128xf32>
    %41 = tpu.transpose %40, [1, 0] : vector<1024x128xf32> -> vector<128x1024xf32>
    %42 = arith.truncf %41 : vector<128x1024xf32> to vector<128x1024xbf16>
    %c0_22 = arith.constant 0 : index
    %c0_23 = arith.constant 0 : index
    %43 = vector.load %arg7[%c0_22, %c0_23] : memref<8x128xbf16, #tpu.memory_space<vmem>>, vector<8x128xbf16>
    %cst_24 = arith.constant dense<0.000000e+00> : vector<8x1024xf32>
    %44 = tpu.matmul %43, %42, %cst_24 {dimension_numbers = #tpu.dot_dimension_numbers<[1], [0], [0], [1], [0, 0, 1, 1], [], []>} : vector<8x128xbf16>, vector<128x1024xbf16>, vector<8x1024xf32> -> vector<8x1024xf32>
    %c0_25 = arith.constant 0 : index
    %c0_26 = arith.constant 0 : index
    %45 = vector.load %arg9[%c0_25, %c0_26] : memref<8x1xf32, #tpu.memory_space<vmem>>, vector<8x1xf32>
    %46 = vector.broadcast %45 : vector<8x1xf32> to vector<8x1024xf32>
    %47 = arith.addf %44, %46 : vector<8x1024xf32>
    %48 = arith.truncf %47 : vector<8x1024xf32> to vector<8x1024xbf16>
    %c0_27 = arith.constant 0 : index
    %c0_28 = arith.constant 0 : index
    %49 = vector.load %arg10[%c0_27, %c0_28] : memref<8x1024xbf16, #tpu.memory_space<vmem>>, vector<8x1024xbf16>
    tpu.vector_store %arg10[%c0_27, %c0_28], %48 {strides = array<i32>} : memref<8x1024xbf16, #tpu.memory_space<vmem>>, vector<8x1024xbf16>,
    return
  }
  func.func @transform_0(%arg0: i32) -> (i32, i32) {
    %c0_i32 = arith.constant 0 : i32
    %c0_i32_0 = arith.constant 0 : i32
    return %arg0, %c0_i32 : i32, i32
  }
  func.func @transform_1(%arg0: i32) -> (i32, i32) {
    %c0_i32 = arith.constant 0 : i32
    %c0_i32_0 = arith.constant 0 : i32
    %c0_i32_1 = arith.constant 0 : i32
    return %c0_i32, %c0_i32_0 : i32, i32
  }
  func.func @transform_2(%arg0: i32) -> (i32, i32) {
    %c0_i32 = arith.constant 0 : i32
    %c0_i32_0 = arith.constant 0 : i32
    %c0_i32_1 = arith.constant 0 : i32
    return %c0_i32, %c0_i32_0 : i32, i32
  }
  func.func @transform_3(%arg0: i32) -> (i32, i32) {
    %c0_i32 = arith.constant 0 : i32
    %c0_i32_0 = arith.constant 0 : i32
    %c0_i32_1 = arith.constant 0 : i32
    return %c0_i32, %c0_i32_0 : i32, i32
  }
  func.func @transform_4(%arg0: i32) -> (i32, i32) {
    %c0_i32 = arith.constant 0 : i32
    %c0_i32_0 = arith.constant 0 : i32
    %c0_i32_1 = arith.constant 0 : i32
    return %c0_i32, %c0_i32_0 : i32, i32
  }
  func.func @transform_5(%arg0: i32) -> (i32, i32) {
    %c0_i32 = arith.constant 0 : i32
    %c0_i32_0 = arith.constant 0 : i32
    %c0_i32_1 = arith.constant 0 : i32
    return %c0_i32, %c0_i32_0 : i32, i32
  }
  func.func @transform_6(%arg0: i32) -> (i32, i32) {
    %c0_i32 = arith.constant 0 : i32
    %c0_i32_0 = arith.constant 0 : i32
    %c0_i32_1 = arith.constant 0 : i32
    return %c0_i32, %c0_i32_0 : i32, i32
  }
  func.func @transform_7(%arg0: i32) -> (i32, i32) {
    %c0_i32 = arith.constant 0 : i32
    %c0_i32_0 = arith.constant 0 : i32
    %c0_i32_1 = arith.constant 0 : i32
    return %c0_i32, %c0_i32_0 : i32, i32
  }
  func.func @transform_8(%arg0: i32) -> (i32, i32) {
    %c0_i32 = arith.constant 0 : i32
    %c0_i32_0 = arith.constant 0 : i32
    %c0_i32_1 = arith.constant 0 : i32
    return %c0_i32, %c0_i32_0 : i32, i32
  }
  func.func @transform_9(%arg0: i32) -> (i32, i32) {
    %c0_i32 = arith.constant 0 : i32
    %c0_i32_0 = arith.constant 0 : i32
    return %c0_i32, %arg0 : i32, i32
  }
}

</mosaic_0001>

<bundles_post_ra>
// kernel: _lambda_.1
= control target key start
LH: loop header
LB: loop body
LE: loop exit
PB: predicated region body
PF: predicated region fallthrough
CT: control target
= control target key end

     0   :  { %s7325_s30 = smov 0   ;;  %s8457_s0 = inlined_call_operand.vmem [shape: bf16[2048,16], index: 0, kind: input, shape index: {}]   ;;  %s8458_s1 = inlined_call_operand.vmem [shape: bf16[16,128], index: 1, kind: input, shape index: {}]   ;;  %s8459_s2 = inlined_call_operand.vmem [shape: bf16[128,128], index: 2, kind: input, shape index: {}]   ;;  %s8460_s3 = inlined_call_operand.vmem [shape: bf16[128,128], index: 3, kind: input, shape index: {}]   ;;  %s8461_s4 = inlined_call_operand.vmem [shape: bf16[128,128], index: 4, kind: input, shape index: {}]   ;;  %s8462_s5 = inlined_call_operand.vmem [shape: bf16[128,128], index: 5, kind: input, shape index: {}]   ;;  %s8463_s6 = inlined_call_operand.vmem [shape: bf16[8,128], index: 6, kind: input, shape index: {}]   ;;  %s8464_s7 = inlined_call_operand.vmem [shape: f32[5,128], index: 7, kind: input, shape index: {}]   ;;  %s8465_s8 = inlined_call_operand.vmem [shape: f32[8,1], index: 8, kind: input, shape index: {}]   ;;  %s8466_s9 = inlined_call_operand.vmem [shape: bf16[8,2048], index: 9, kind: output, shape index: {}]  }
   0x1 LB: > { %s5467_s10 = sadd.s32 4294967295, %s7272_s30   ;;  %p5471_p0 = scmp.ge.s32.totalorder %s7272_s30, 1  ;;  %s7272_s30 = sphi %s7325_s30, %s19_s30  }
   0x2   : > { %p288_p1 = scmp.lt.s32.totalorder %s7272_s30, 3 }
   0x4   : > { %p289_p2 = pnand %p5471_p0, %p288_p1 }
   0x5   : > { %v7166_v0 = vld [vmem:[%s8458_s1] sm:$0xff] (!%p289_p2)   ;;  %s5472_s13 = sshll.u32 (!%p289_p2), %s5467_s10, 7  ;;  %vm798_vm0 = vcmask (!%p289_p2), 130048   ;;  %v7227_v26 = vld [vmem:[%s8459_s2 + $0x8] sm:$0xff] (!%p289_p2)   ;;  %v7229_v30 = vld [vmem:[%s8459_s2 + $0x10] sm:$0xff] (!%p289_p2)   ;;  %s5474_s18 = sshll.u32 (!%p289_p2), %s5467_s10, 3 }
   0x6   : > { %292 = sbr.rel (%p289_p2) target bundleno = 1764 (0x6e4), region = 56  ;;  %p325_p3 = scmp.lt.s32.totalorder (!%p289_p2), %s5472_s13, 255  ;;  %6000 = vmatprep.subr.bf16.mxu0 (!%p289_p2), %v7166_v0  ;;  %6706 = vmatprep.subr.bf16.mxu1 (!%p289_p2), %v7166_v0  ;;  %v7225_v25 = vld [vmem:[%s8459_s2] sm:$0xff] (!%p289_p2)   ;;  %v7231_v32 = vld [vmem:[%s8459_s2 + $0x18] sm:$0xff] (!%p289_p2)   ;;  %v7235_v38 = vld [vmem:[%s8459_s2 + $0x28] sm:$0xff] (!%p289_p2)  }
   0x7   : > { %6001 = vmatpush3.bf16.msra.mxu0 (!%p289_p2), %v7166_v0  ;;  %6707 = vmatpush3.bf16.msra.mxu1 (!%p289_p2), %v7166_v0  ;;  %v7233_v36 = vld [vmem:[%s8459_s2 + $0x20] sm:$0xff] (!%p289_p2)   ;;  %v7237_v46 = vld [vmem:[%s8459_s2 + $0x30] sm:$0xff] (!%p289_p2)   ;;  %v7238_v48 = vld [vmem:[%s8459_s2 + $0x38] sm:$0xff] (!%p289_p2)   ;;  %p331_p4 = scmp.lt.s32.totalorder (!%p289_p2), %s5474_s18, 15 }
   0x8   : > { %6130 = vmatprep.subr.bf16.mxu1 (!%p289_p2), %v7225_v25 }
   0xd   : > { %s8468_s13 = smov (!%p325_p3, %s5472_s13), 255  ;;  %s8470_s18 = smov (!%p331_p4, %s5474_s18), 15 }
   0xe   : > { %s5473_s14 = sshll.u32 %s8468_s13, 2  ;;  %s5475_s19 = sshll.u32 %s8470_s18, 2 }
   0xf   : > { %s7341_s17 = scalar_lea.vmem %s8457_s0, %s5473_s14  ;;  %s334_s22 = scalar_lea.vmem %s8466_s9, %s5475_s19 }
  0x10   : > { %v7167_v1 = vld [vmem:[%s7341_s17] sm:$0xff]   ;;  %v7168_v2 = vld [vmem:[%s7341_s17 + $0x8] sm:$0xff]   ;;  %v7169_v3 = vld [vmem:[%s7341_s17 + $0x10] sm:$0xff]  }
  0x11   : > { %6002 = vmatprep.mubr.msk.bf16.mxu0 %vm798_vm0, %v7167_v1  ;;  %v7170_v4 = vld [vmem:[%s7341_s17 + $0x18] sm:$0xff]   ;;  %v7171_v5 = vld [vmem:[%s7341_s17 + $0x20] sm:$0xff]   ;;  %v7172_v6 = vld [vmem:[%s7341_s17 + $0x28] sm:$0xff]  }
  0x12   : > { %6003 = vmatmul.mubr.msk.bf16.vlgmr.msra.gmra.mrb[0].mxu0 %vm798_vm0, %v7168_v2  ;;  %v7173_v7 = vld [vmem:[%s7341_s17 + $0x30] sm:$0xff]   ;;  %v7174_v8 = vld [vmem:[%s7341_s17 + $0x38] sm:$0xff]   ;;  %v7175_v9 = vld [vmem:[%s7341_s17 + $0x40] sm:$0xff]  }
  0x13   : > { %6006 = vmatprep.mubr.msk.bf16.mxu0 %vm798_vm0, %v7169_v3  ;;  %v7176_v10 = vld [vmem:[%s7341_s17 + $0x48] sm:$0xff]   ;;  %v7177_v11 = vld [vmem:[%s7341_s17 + $0x50] sm:$0xff]   ;;  %v7178_v12 = vld [vmem:[%s7341_s17 + $0x58] sm:$0xff]  }
  0x14   : > { %v7205_v13 = vld [vmem:[%s7341_s17 + $0x170] sm:$0xff]   ;;  %v7206_v14 = vld [vmem:[%s7341_s17 + $0x178] sm:$0xff]   ;;  %v7179_v15 = vld [vmem:[%s7341_s17 + $0x60] sm:$0xff]  }
  0x15   : > { %6094 = vmatprep.mubr.msk.bf16.mxu1 %vm798_vm0, %v7205_v13  ;;  %v7209_v16 = vld [vmem:[%s7341_s17 + $0x180] sm:$0xff]   ;;  %v7210_v17 = vld [vmem:[%s7341_s17 + $0x188] sm:$0xff]   ;;  %v7213_v18 = vld [vmem:[%s7341_s17 + $0x190] sm:$0xff]  }
  0x16   : > { %6095 = vmatmul.mubr.msk.bf16.vlgmr.msra.gmra.mrb[0].mxu1 %vm798_vm0, %v7206_v14  ;;  %v7180_v19 = vld [vmem:[%s7341_s17 + $0x68] sm:$0xff]   ;;  %v7181_v20 = vld [vmem:[%s7341_s17 + $0x70] sm:$0xff]   ;;  %v7214_v21 = vld [vmem:[%s7341_s17 + $0x198] sm:$0xff]  }
  0x17   : > { %6098 = vmatprep.mubr.msk.bf16.mxu1 %vm798_vm0, %v7209_v16  ;;  %v7217_v22 = vld [vmem:[%s7341_s17 + $0x1a0] sm:$0xff]   ;;  %v7182_v23 = vld [vmem:[%s7341_s17 + $0x78] sm:$0xff]   ;;  %v7218_v27 = vld [vmem:[%s7341_s17 + $0x1a8] sm:$0xff]   ;;  %6131 = vmatpush3.bf16.msra.mxu1 %v7225_v25 }
  0x18   : > { %v7183_v24 = vld [vmem:[%s7341_s17 + $0x80] sm:$0xff]   ;;  %v7221_v28 = vld [vmem:[%s7341_s17 + $0x1b0] sm:$0xff]   ;;  %6132 = vmatprep.subr.bf16.mxu1 %v7227_v26  ;;  %v7184_v29 = vld [vmem:[%s7341_s17 + $0x88] sm:$0xff]  }
  0x19   : > { %v7185_v31 = vld [vmem:[%s7341_s17 + $0x90] sm:$0xff]   ;;  %v7222_v33 = vld [vmem:[%s7341_s17 + $0x1b8] sm:$0xff]   ;;  %v7223_v34 = vld [vmem:[%s7341_s17 + $0x1c0] sm:$0xff]  }
  0x1a   : > { %6007 = vmatmul.mubr.msk.bf16.gmra.mrb[4].mxu0 %vm798_vm0, %v7170_v4  ;;  %v7186_v35 = vld [vmem:[%s7341_s17 + $0x98] sm:$0xff]   ;;  %v7187_v37 = vld [vmem:[%s7341_s17 + $0xa0] sm:$0xff]   ;;  %v7224_v39 = vld [vmem:[%s7341_s17 + $0x1c8] sm:$0xff]  }
  0x1b   : > { %6010 = vmatprep.mubr.msk.bf16.mxu0 %vm798_vm0, %v7171_v5  ;;  %6133 = vmatpush3.bf16.msra.mxu1 %v7227_v26  ;;  %v7226_v40 = vld [vmem:[%s7341_s17 + $0x1d0] sm:$0xff]   ;;  %v7188_v41 = vld [vmem:[%s7341_s17 + $0xa8] sm:$0xff]   ;;  %v7228_v43 = vld [vmem:[%s7341_s17 + $0x1d8] sm:$0xff]  }
  0x1c   : > { %6134 = vmatprep.subr.bf16.mxu1 %v7229_v30  ;;  %v7189_v42 = vld [vmem:[%s7341_s17 + $0xb0] sm:$0xff]   ;;  %v7230_v44 = vld [vmem:[%s7341_s17 + $0x1e0] sm:$0xff]   ;;  %v7190_v45 = vld [vmem:[%s7341_s17 + $0xb8] sm:$0xff]  }
  0x1d   : > { %v7191_v47 = vld [vmem:[%s7341_s17 + $0xc0] sm:$0xff]   ;;  %v7232_v49 = vld [vmem:[%s7341_s17 + $0x1e8] sm:$0xff]   ;;  %v7234_v50 = vld [vmem:[%s7341_s17 + $0x1f0] sm:$0xff]  }
  0x1e   : > { %6099 = vmatmul.mubr.msk.bf16.gmra.mrb[4].mxu1 %vm798_vm0, %v7210_v17  ;;  %v7192_v51 = vld [vmem:[%s7341_s17 + $0xc8] sm:$0xff]   ;;  %v7193_v52 = vld [vmem:[%s7341_s17 + $0xd0] sm:$0xff]   ;;  %v7236_v53 = vld [vmem:[%s7341_s17 + $0x1f8] sm:$0xff]  }
  0x1f   : > { %6102 = vmatprep.mubr.msk.bf16.mxu1 %vm798_vm0, %v7213_v18  ;;  %6135 = vmatpush3.bf16.msra.mxu1 %v7229_v30  ;;  %v7194_v54 = vld [vmem:[%s7341_s17 + $0xd8] sm:$0xff]   ;;  %v7195_v55 = vld [vmem:[%s7341_s17 + $0xe0] sm:$0xff]   ;;  %v7196_v56 = vld [vmem:[%s7341_s17 + $0xe8] sm:$0xff]  }
  0x20   : > { %6136 = vmatprep.subr.bf16.mxu1 %v7231_v32  ;;  %v7197_v57 = vld [vmem:[%s7341_s17 + $0xf0] sm:$0xff]   ;;  %v7198_v58 = vld [vmem:[%s7341_s17 + $0xf8] sm:$0xff]   ;;  %v7199_v59 = vld [vmem:[%s7341_s17 + $0x100] sm:$0xff]  }
  0x21   : > { %v7200_v60 = vld [vmem:[%s7341_s17 + $0x108] sm:$0xff]   ;;  %v7201_v61 = vld [vmem:[%s7341_s17 + $0x110] sm:$0xff]   ;;  %v7202_v62 = vld [vmem:[%s7341_s17 + $0x118] sm:$0xff]  }
  0x22   : > { %6011 = vmatmul.mubr.msk.bf16.gmra.mrb[8].mxu0 %vm798_vm0, %v7172_v6  ;;  %v7203_v63 = vld [vmem:[%s7341_s17 + $0x120] sm:$0xff]   ;;  %v7204_v0 = vld [vmem:[%s7341_s17 + $0x128] sm:$0xff]   ;;  %v7207_v1 = vld [vmem:[%s7341_s17 + $0x130] sm:$0xff]  }
  0x23   : > { %6014 = vmatprep.mubr.msk.bf16.mxu0 %vm798_vm0, %v7173_v7  ;;  %6137 = vmatpush3.bf16.msra.mxu1 %v7231_v32  ;;  %v7208_v2 = vld [vmem:[%s7341_s17 + $0x138] sm:$0xff]   ;;  %v7211_v3 = vld [vmem:[%s7341_s17 + $0x140] sm:$0xff]   ;;  %v7212_v4 = vld [vmem:[%s7341_s17 + $0x148] sm:$0xff]  }
  0x24   : > { %6138 = vmatprep.subr.bf16.mxu1 %v7233_v36  ;;  %v7215_v5 = vld [vmem:[%s7341_s17 + $0x150] sm:$0xff]   ;;  %v7216_v6 = vld [vmem:[%s7341_s17 + $0x158] sm:$0xff]   ;;  %v7219_v7 = vld [vmem:[%s7341_s17 + $0x160] sm:$0xff]  }
  0x26   : > { %6103 = vmatmul.mubr.msk.bf16.gmra.mrb[8].mxu1 %vm798_vm0, %v7214_v21 }
  0x27   : > { %6106 = vmatprep.mubr.msk.bf16.mxu1 %vm798_vm0, %v7217_v22  ;;  %6139 = vmatpush3.bf16.msra.mxu1 %v7233_v36 }
  0x28   : > { %6140 = vmatprep.subr.bf16.mxu1 %v7235_v38 }
  0x2a   : > { %6015 = vmatmul.mubr.msk.bf16.gmra.mrb[12].mxu0 %vm798_vm0, %v7174_v8  ;;  %v7220_v8 = vld [vmem:[%s7341_s17 + $0x168] sm:$0xff]  }
  0x2b   : > { %6018 = vmatprep.mubr.msk.bf16.mxu0 %vm798_vm0, %v7175_v9  ;;  %6141 = vmatpush3.bf16.msra.mxu1 %v7235_v38  ;;  %v468_v9 = vlaneseq }
  0x2c   : > { %6142 = vmatprep.subr.bf16.mxu1 %v7237_v46 }
  0x2e   : > { %6107 = vmatmul.mubr.msk.bf16.gmra.mrb[12].mxu1 %vm798_vm0, %v7218_v27 }
  0x2f   : > { %6110 = vmatprep.mubr.msk.bf16.mxu1 %vm798_vm0, %v7221_v28  ;;  %6143 = vmatpush3.bf16.msra.mxu1 %v7237_v46 }
  0x30   : > { %6144 = vmatprep.subr.bf16.mxu1 %v7238_v48 }
  0x32   : > { %6019 = vmatmul.mubr.msk.bf16.gmra.mrb[16].mxu0 %vm798_vm0, %v7176_v10  ;;  %v7495_v10 = vshrl.u32 %v468_v9, 7 }
  0x33   : > { %6022 = vmatprep.mubr.msk.bf16.mxu0 %vm798_vm0, %v7177_v11  ;;  %6145 = vmatpush3.bf16.msra.mxu1 %v7238_v48 }
  0x34   : > { %v470_v11 = vsub.s32 0, %v7495_v10 }
  0x36   : > { %6111 = vmatmul.mubr.msk.bf16.gmra.mrb[16].mxu1 %vm798_vm0, %v7222_v33 }
  0x37   : > { %6114 = vmatprep.mubr.msk.bf16.mxu1 %vm798_vm0, %v7223_v34 }
  0x3a   : > { %6023 = vmatmul.mubr.msk.bf16.gmra.mrb[20].mxu0 %vm798_vm0, %v7178_v12  ;;  %v337_v12 = vld [vmem:[%s8464_s7] sm:$0x1f] }
  0x3b   : > { %6026 = vmatprep.mubr.msk.bf16.mxu0 %vm798_vm0, %v7179_v15  ;;  %v7501_v13 = vrot.slane %v337_v12, %v470_v11 }
  0x3e   : > { %6115 = vmatmul.mubr.msk.bf16.gmra.mrb[20].mxu1 %vm798_vm0, %v7224_v39 }
  0x3f   : > { %6118 = vmatprep.mubr.msk.bf16.mxu1 %vm798_vm0, %v7226_v40 }
  0x42   : > { %6027 = vmatmul.mubr.msk.bf16.gmra.mrb[24].mxu0 %vm798_vm0, %v7180_v19 }
  0x43   : > { %6030 = vmatprep.mubr.msk.bf16.mxu0 %vm798_vm0, %v7181_v20 }
  0x46   : > { %6119 = vmatmul.mubr.msk.bf16.gmra.mrb[24].mxu1 %vm798_vm0, %v7228_v43 }
  0x47   : > { %6122 = vmatprep.mubr.msk.bf16.mxu1 %vm798_vm0, %v7230_v44 }
  0x4a   : > { %6031 = vmatmul.mubr.msk.bf16.gmra.mrb[28].mxu0 %vm798_vm0, %v7182_v23 }
  0x4b   : > { %6034 = vmatprep.mubr.msk.bf16.mxu0 %vm798_vm0, %v7183_v24 }
  0x4e   : > { %6123 = vmatmul.mubr.msk.bf16.gmra.mrb[28].mxu1 %vm798_vm0, %v7232_v49 }
  0x4f   : > { %6126 = vmatprep.mubr.msk.bf16.mxu1 %vm798_vm0, %v7234_v50 }
  0x52   : > { %6035 = vmatmul.mubr.msk.bf16.gmra.mrb[32].mxu0 %vm798_vm0, %v7184_v29 }
  0x53   : > { %6038 = vmatprep.mubr.msk.bf16.mxu0 %vm798_vm0, %v7185_v31 }
  0x56   : > { %6127 = vmatmul.mubr.msk.bf16.gmra.mrb[32].mxu1 %vm798_vm0, %v7236_v53 }
  0x5a   : > { %6039 = vmatmul.mubr.msk.bf16.gmra.mrb[36].mxu0 %vm798_vm0, %v7186_v35 }
  0x5b   : > { %6042 = vmatprep.mubr.msk.bf16.mxu0 %vm798_vm0, %v7187_v37 }
  0x62   : > { %6043 = vmatmul.mubr.msk.bf16.gmra.mrb[40].mxu0 %vm798_vm0, %v7188_v41 }
  0x63   : > { %6046 = vmatprep.mubr.msk.bf16.mxu0 %vm798_vm0, %v7189_v42 }
  0x6a   : > { %6047 = vmatmul.mubr.msk.bf16.gmra.mrb[44].mxu0 %vm798_vm0, %v7190_v45 }
  0x6b   : > { %6050 = vmatprep.mubr.msk.bf16.mxu0 %vm798_vm0, %v7191_v47 }
  0x72   : > { %6051 = vmatmul.mubr.msk.bf16.gmra.mrb[48].mxu0 %vm798_vm0, %v7192_v51 }
  0x73   : > { %6054 = vmatprep.mubr.msk.bf16.mxu0 %vm798_vm0, %v7193_v52 }
  0x7a   : > { %6055 = vmatmul.mubr.msk.bf16.gmra.mrb[52].mxu0 %vm798_vm0, %v7194_v54  ;;  %v7239_v54 = vld [vmem:[%s8460_s3] sm:$0xff]  }
  0x7b   : > { %6058 = vmatprep.mubr.msk.bf16.mxu0 %vm798_vm0, %v7195_v55  ;;  %6274 = vmatprep.subr.bf16.mxu0 %v7239_v54 }
  0x7c   : > { %6275 = vmatpush3.bf16.msra.mxu0 %v7239_v54 }
  0x82   : > { %6059 = vmatmul.mubr.msk.bf16.gmra.mrb[56].mxu0 %vm798_vm0, %v7196_v56 }
  0x83   : > { %6062 = vmatprep.mubr.msk.bf16.mxu0 %vm798_vm0, %v7197_v57 }
  0x8a   : > { %6063 = vmatmul.mubr.msk.bf16.gmra.mrb[60].mxu0 %vm798_vm0, %v7198_v58 }
  0x8b   : > { %6066 = vmatprep.mubr.msk.bf16.mxu0 %vm798_vm0, %v7199_v59 }
  0x92   : > { %6067 = vmatmul.mubr.msk.bf16.gmra.mrb[64].mxu0 %vm798_vm0, %v7200_v60 }
  0x93   : > { %6070 = vmatprep.mubr.msk.bf16.mxu0 %vm798_vm0, %v7201_v61 }
  0x9a   : > { %6071 = vmatmul.mubr.msk.bf16.gmra.mrb[68].mxu0 %vm798_vm0, %v7202_v62 }
  0x9b   : > { %6074 = vmatprep.mubr.msk.bf16.mxu0 %vm798_vm0, %v7203_v63 }
  0xa2   : > { %6075 = vmatmul.mubr.msk.bf16.gmra.mrb[72].mxu0 %vm798_vm0, %v7204_v0 }
  0xa3   : > { %6078 = vmatprep.mubr.msk.bf16.mxu0 %vm798_vm0, %v7207_v1 }
  0xaa   : > { %6079 = vmatmul.mubr.msk.bf16.gmra.mrb[76].mxu0 %vm798_vm0, %v7208_v2 }
  0xab   : > { %6082 = vmatprep.mubr.msk.bf16.mxu0 %vm798_vm0, %v7211_v3 }
  0xb2   : > { %6083 = vmatmul.mubr.msk.bf16.gmra.mrb[80].mxu0 %vm798_vm0, %v7212_v4 }
  0xb3   : > { %6086 = vmatprep.mubr.msk.bf16.mxu0 %vm798_vm0, %v7215_v5 }
  0xba   : > { %6087 = vmatmul.mubr.msk.bf16.gmra.mrb[84].mxu0 %vm798_vm0, %v7216_v6 }
  0xbb   : > { %6090 = vmatprep.mubr.msk.bf16.mxu0 %vm798_vm0, %v7219_v7 }
  0xc2   : > { %6091 = vmatmul.mubr.msk.bf16.gmra.mrb[88].mxu0 %vm798_vm0, %v7220_v8 }
  0xe5   : > { %v6004_v14 = vpop.f32.mrb[0].mxu0 }
  0xe6   : > { %v1034_v15 = vadd.f32 %v6004_v14, %v7501_v13  ;;  %v1025_v16 = vpop.f32.mrb[1].mxu0 }
  0xe7   : > { %v1026_v17 = vadd.f32 %v1025_v16, %v7501_v13  ;;  %v6005_v18 = vpop.f32.mrb[2].mxu0 }
  0xe8   : > { %v1037_v19 = vadd.f32 %v6005_v18, %v7501_v13  ;;  %v1028_v20 = vpop.f32.mrb[3].mxu0  ;;  %v1538_v22 = vmax.f32 %v1034_v15, 0.0 }
  0xe9   : > { %v1029_v21 = vadd.f32 %v1028_v20, %v7501_v13  ;;  %v1536_v24 = vmax.f32 %v1026_v17, 0.0 }
  0xea   : > { %v1539_v23 = vmax.f32 %v1037_v19, 0.0 }
  0xeb   : > { %v1537_v25 = vmax.f32 %v1029_v21, 0.0  ;;  %v6096_v21 = vpop.f32.mrb[0].mxu1 }
  0xec   : > { %v1665_v26 = vpack.c.bf16 %v1539_v23, %v1538_v22  ;;  %v1402_v23 = vadd.f32 %v6096_v21, %v7501_v13 }
  0xed   : > { %v6008_v27 = vpop.f32.mrb[4].mxu0  ;;  %v1664_v28 = vpack.c.bf16 %v1537_v25, %v1536_v24  ;;  %v1393_v24 = vpop.f32.mrb[1].mxu1 }
  0xee   : > { %v1050_v29 = vadd.f32 %v6008_v27, %v7501_v13  ;;  %v1041_v30 = vpop.f32.mrb[5].mxu0  ;;  %v1394_v27 = vadd.f32 %v1393_v24, %v7501_v13 }
  0xef   : > { %v1042_v31 = vadd.f32 %v1041_v30, %v7501_v13  ;;  %v6009_v32 = vpop.f32.mrb[6].mxu0  ;;  %6146 = vmatprep.mubr.bf16.mxu1 %v1664_v28  ;;  %v6097_v28 = vpop.f32.mrb[2].mxu1 }
  0xf0   : > { %v1053_v33 = vadd.f32 %v6009_v32, %v7501_v13  ;;  %v1044_v34 = vpop.f32.mrb[7].mxu0  ;;  %6147 = vmatmul.mubr.bf16.vlgmr.msra.gmra.mrb[36].mxu1 %v1665_v26  ;;  %v1542_v36 = vmax.f32 %v1050_v29, 0.0  ;;  %v1405_v32 = vadd.f32 %v6097_v28, %v7501_v13 }
  0xf1   : > { %v1045_v35 = vadd.f32 %v1044_v34, %v7501_v13  ;;  %v1540_v38 = vmax.f32 %v1042_v31, 0.0  ;;  %v1630_v31 = vmax.f32 %v1402_v23, 0.0 }
  0xf2   : > { %v1543_v37 = vmax.f32 %v1053_v33, 0.0  ;;  %v1396_v33 = vpop.f32.mrb[3].mxu1 }
  0xf3   : > { %v1541_v39 = vmax.f32 %v1045_v35, 0.0 }
  0xf4   : > { %v1667_v40 = vpack.c.bf16 %v1543_v37, %v1542_v36  ;;  %v1628_v36 = vmax.f32 %v1394_v27, 0.0  ;;  %v1397_v37 = vadd.f32 %v1396_v33, %v7501_v13 }
  0xf5   : > { %v6012_v41 = vpop.f32.mrb[8].mxu0  ;;  %v1666_v42 = vpack.c.bf16 %v1541_v39, %v1540_v38 }
  0xf6   : > { %v1066_v43 = vadd.f32 %v6012_v41, %v7501_v13  ;;  %v1057_v44 = vpop.f32.mrb[9].mxu0 }
  0xf7   : > { %v1058_v45 = vadd.f32 %v1057_v44, %v7501_v13  ;;  %v6013_v46 = vpop.f32.mrb[10].mxu0  ;;  %6150 = vmatprep.mubr.bf16.mxu1 %v1666_v42  ;;  %v1629_v42 = vmax.f32 %v1397_v37, 0.0 }
  0xf8   : > { %v1069_v47 = vadd.f32 %v6013_v46, %v7501_v13  ;;  %v1060_v48 = vpop.f32.mrb[11].mxu0  ;;  %6151 = vmatmul.mubr.bf16.gmra.mrb[40].mxu1 %v1667_v40  ;;  %v1546_v50 = vmax.f32 %v1066_v43, 0.0  ;;  %v1631_v40 = vmax.f32 %v1405_v32, 0.0 }
  0xf9   : > { %v1061_v49 = vadd.f32 %v1060_v48, %v7501_v13  ;;  %v1544_v52 = vmax.f32 %v1058_v45, 0.0  ;;  %v6100_v48 = vpop.f32.mrb[4].mxu1 }
  0xfa   : > { %v1547_v51 = vmax.f32 %v1069_v47, 0.0  ;;  %v7534_v45 = vpack.c.bf16 %v1631_v40, %v1630_v31 }
  0xfb   : > { %v1545_v53 = vmax.f32 %v1061_v49, 0.0  ;;  %v7240_v49 = vld [vmem:[%s8460_s3 + $0x8] sm:$0xff]  }
  0xfc   : > { %v1669_v55 = vpack.c.bf16 %v1547_v51, %v1546_v50  ;;  %v7539_v50 = vpack.c.bf16 %v1629_v42, %v1628_v36  ;;  %6276 = vmatprep.subr.bf16.mxu0 %v7240_v49 }
  0xfd   : > { %v6016_v56 = vpop.f32.mrb[12].mxu0  ;;  %v1668_v57 = vpack.c.bf16 %v1545_v53, %v1544_v52  ;;  %v1418_v52 = vadd.f32 %v6100_v48, %v7501_v13  ;;  %v1409_v53 = vpop.f32.mrb[5].mxu1  ;;  %6277 = vmatpush3.bf16.msra.mxu0 %v7240_v49 }
  0xfe   : > { %v1082_v58 = vadd.f32 %v6016_v56, %v7501_v13  ;;  %v1073_v59 = vpop.f32.mrb[13].mxu0  ;;  %v1410_v56 = vadd.f32 %v1409_v53, %v7501_v13 }
  0xff   : > { %v1074_v60 = vadd.f32 %v1073_v59, %v7501_v13  ;;  %v6017_v61 = vpop.f32.mrb[14].mxu0  ;;  %6154 = vmatprep.mubr.bf16.mxu1 %v1668_v57  ;;  %v6101_v57 = vpop.f32.mrb[6].mxu1 }
 0x100   : > { %v1085_v62 = vadd.f32 %v6017_v61, %v7501_v13  ;;  %v1076_v63 = vpop.f32.mrb[15].mxu0  ;;  %6155 = vmatmul.mubr.bf16.gmra.mrb[44].mxu1 %v1669_v55  ;;  %v1550_v1 = vmax.f32 %v1082_v58, 0.0  ;;  %v1421_v61 = vadd.f32 %v6101_v57, %v7501_v13 }
 0x101   : > { %v1077_v0 = vadd.f32 %v1076_v63, %v7501_v13  ;;  %v1548_v3 = vmax.f32 %v1074_v60, 0.0  ;;  %v1634_v60 = vmax.f32 %v1418_v52, 0.0 }
 0x102   : > { %v1551_v2 = vmax.f32 %v1085_v62, 0.0  ;;  %v1412_v62 = vpop.f32.mrb[7].mxu1 }
 0x103   : > { %v1549_v4 = vmax.f32 %v1077_v0, 0.0 }
 0x104   : > { %v1671_v5 = vpack.c.bf16 %v1551_v2, %v1550_v1  ;;  %v1632_v1 = vmax.f32 %v1410_v56, 0.0  ;;  %v1413_v2 = vadd.f32 %v1412_v62, %v7501_v13 }
 0x105   : > { %v6020_v6 = vpop.f32.mrb[16].mxu0  ;;  %v1670_v7 = vpack.c.bf16 %v1549_v4, %v1548_v3 }
 0x106   : > { %v1098_v8 = vadd.f32 %v6020_v6, %v7501_v13  ;;  %v1089_v9 = vpop.f32.mrb[17].mxu0 }
 0x107   : > { %v1090_v11 = vadd.f32 %v1089_v9, %v7501_v13  ;;  %v6021_v12 = vpop.f32.mrb[18].mxu0  ;;  %6158 = vmatprep.mubr.bf16.mxu1 %v1670_v7  ;;  %v1633_v7 = vmax.f32 %v1413_v2, 0.0 }
 0x108   : > { %v1101_v14 = vadd.f32 %v6021_v12, %v7501_v13  ;;  %v1092_v15 = vpop.f32.mrb[19].mxu0  ;;  %6159 = vmatmul.mubr.bf16.gmra.mrb[48].mxu1 %v1671_v5  ;;  %v1554_v17 = vmax.f32 %v1098_v8, 0.0  ;;  %v1635_v5 = vmax.f32 %v1421_v61, 0.0 }
 0x109   : > { %v1093_v16 = vadd.f32 %v1092_v15, %v7501_v13  ;;  %v1552_v19 = vmax.f32 %v1090_v11, 0.0  ;;  %v6104_v15 = vpop.f32.mrb[8].mxu1 }
 0x10a   : > { %v1555_v18 = vmax.f32 %v1101_v14, 0.0  ;;  %v7549_v11 = vpack.c.bf16 %v1635_v5, %v1634_v60 }
 0x10b   : > { %v1553_v20 = vmax.f32 %v1093_v16, 0.0  ;;  %v7551_v16 = vpack.c.bf16 %v1633_v7, %v1632_v1 }
 0x10c   : > { %v1673_v22 = vpack.c.bf16 %v1555_v18, %v1554_v17  ;;  %v1434_v18 = vadd.f32 %v6104_v15, %v7501_v13 }
 0x10d   : > { %v6024_v25 = vpop.f32.mrb[20].mxu0  ;;  %v1672_v26 = vpack.c.bf16 %v1553_v20, %v1552_v19  ;;  %v1425_v19 = vpop.f32.mrb[9].mxu1 }
 0x10e   : > { %v1114_v29 = vadd.f32 %v6024_v25, %v7501_v13  ;;  %v1105_v30 = vpop.f32.mrb[21].mxu0  ;;  %v6105_v23 = vpop.f32.mrb[10].mxu1 }
 0x10f   : > { %v1106_v34 = vadd.f32 %v1105_v30, %v7501_v13  ;;  %v6025_v35 = vpop.f32.mrb[22].mxu0  ;;  %6162 = vmatprep.mubr.bf16.mxu1 %v1672_v26  ;;  %v1638_v26 = vmax.f32 %v1434_v18, 0.0  ;;  %v1437_v27 = vadd.f32 %v6105_v23, %v7501_v13  ;;  %v1428_v28 = vpop.f32.mrb[11].mxu1 }
 0x110   : > { %v1117_v38 = vadd.f32 %v6025_v35, %v7501_v13  ;;  %v1108_v39 = vpop.f32.mrb[23].mxu0  ;;  %6163 = vmatmul.mubr.bf16.gmra.mrb[52].mxu1 %v1673_v22  ;;  %v1558_v43 = vmax.f32 %v1114_v29, 0.0  ;;  %v1426_v22 = vadd.f32 %v1425_v19, %v7501_v13  ;;  %v1429_v32 = vadd.f32 %v1428_v28, %v7501_v13 }
 0x111   : > { %v1109_v41 = vadd.f32 %v1108_v39, %v7501_v13  ;;  %v1556_v46 = vmax.f32 %v1106_v34, 0.0  ;;  %v1639_v35 = vmax.f32 %v1437_v27, 0.0 }
 0x112   : > { %v1559_v44 = vmax.f32 %v1117_v38, 0.0  ;;  %v1636_v31 = vmax.f32 %v1426_v22, 0.0  ;;  %v1637_v37 = vmax.f32 %v1429_v32, 0.0  ;;  %v7241_v38 = vld [vmem:[%s8460_s3 + $0x10] sm:$0xff]  }
 0x113   : > { %v1557_v47 = vmax.f32 %v1109_v41, 0.0  ;;  %v7564_v41 = vpack.c.bf16 %v1639_v35, %v1638_v26  ;;  %6278 = vmatprep.subr.bf16.mxu0 %v7241_v38 }
 0x114   : > { %v1675_v51 = vpack.c.bf16 %v1559_v44, %v1558_v43  ;;  %v6108_v44 = vpop.f32.mrb[12].mxu1  ;;  %6279 = vmatpush3.bf16.msra.mxu0 %v7241_v38 }
 0x115   : > { %v6028_v54 = vpop.f32.mrb[24].mxu0  ;;  %v1674_v55 = vpack.c.bf16 %v1557_v47, %v1556_v46  ;;  %v7566_v46 = vpack.c.bf16 %v1637_v37, %v1636_v31  ;;  %v1450_v48 = vadd.f32 %v6108_v44, %v7501_v13  ;;  %v1441_v49 = vpop.f32.mrb[13].mxu1 }
 0x116   : > { %v1130_v58 = vadd.f32 %v6028_v54, %v7501_v13  ;;  %v1121_v59 = vpop.f32.mrb[25].mxu0  ;;  %v1442_v53 = vadd.f32 %v1441_v49, %v7501_v13  ;;  %v6109_v54 = vpop.f32.mrb[14].mxu1 }
 0x117   : > { %v1122_v63 = vadd.f32 %v1121_v59, %v7501_v13  ;;  %v6029_v0 = vpop.f32.mrb[26].mxu0  ;;  %6166 = vmatprep.mubr.bf16.mxu1 %v1674_v55  ;;  %v1642_v57 = vmax.f32 %v1450_v48, 0.0  ;;  %v1444_v59 = vpop.f32.mrb[15].mxu1 }
 0x118   : > { %v1133_v3 = vadd.f32 %v6029_v0, %v7501_v13  ;;  %v1124_v4 = vpop.f32.mrb[27].mxu0  ;;  %6167 = vmatmul.mubr.bf16.gmra.mrb[56].mxu1 %v1675_v51  ;;  %v1562_v8 = vmax.f32 %v1130_v58, 0.0  ;;  %v1453_v58 = vadd.f32 %v6109_v54, %v7501_v13  ;;  %v1640_v62 = vmax.f32 %v1442_v53, 0.0 }
 0x119   : > { %v1125_v6 = vadd.f32 %v1124_v4, %v7501_v13  ;;  %v1560_v12 = vmax.f32 %v1122_v63, 0.0  ;;  %v1445_v63 = vadd.f32 %v1444_v59, %v7501_v13 }
 0x11a   : > { %v1563_v9 = vmax.f32 %v1133_v3, 0.0  ;;  %v1643_v2 = vmax.f32 %v1453_v58, 0.0 }
 0x11b   : > { %v1561_v14 = vmax.f32 %v1125_v6, 0.0  ;;  %v1641_v4 = vmax.f32 %v1445_v63, 0.0 }
 0x11c   : > { %v1677_v17 = vpack.c.bf16 %v1563_v9, %v1562_v8  ;;  %v7576_v7 = vpack.c.bf16 %v1643_v2, %v1642_v57 }
 0x11d   : > { %v6032_v20 = vpop.f32.mrb[28].mxu0  ;;  %v1676_v21 = vpack.c.bf16 %v1561_v14, %v1560_v12  ;;  %v6112_v12 = vpop.f32.mrb[16].mxu1  ;;  %v7578_v14 = vpack.c.bf16 %v1641_v4, %v1640_v62 }
 0x11e   : > { %v1146_v24 = vadd.f32 %v6032_v20, %v7501_v13  ;;  %v1137_v25 = vpop.f32.mrb[29].mxu0  ;;  %v1457_v18 = vpop.f32.mrb[17].mxu1 }
 0x11f   : > { %v1138_v29 = vadd.f32 %v1137_v25, %v7501_v13  ;;  %v6033_v30 = vpop.f32.mrb[30].mxu0  ;;  %6170 = vmatprep.mubr.bf16.mxu1 %v1676_v21  ;;  %v1458_v21 = vadd.f32 %v1457_v18, %v7501_v13  ;;  %v6113_v22 = vpop.f32.mrb[18].mxu1 }
 0x120   : > { %v1149_v33 = vadd.f32 %v6033_v30, %v7501_v13  ;;  %v1140_v34 = vpop.f32.mrb[31].mxu0  ;;  %6171 = vmatmul.mubr.bf16.gmra.mrb[60].mxu1 %v1677_v17  ;;  %v1566_v39 = vmax.f32 %v1146_v24, 0.0  ;;  %v1466_v17 = vadd.f32 %v6112_v12, %v7501_v13  ;;  %v1469_v26 = vadd.f32 %v6113_v22, %v7501_v13  ;;  %v1460_v27 = vpop.f32.mrb[19].mxu1 }
 0x121   : > { %v1141_v36 = vadd.f32 %v1140_v34, %v7501_v13  ;;  %v1564_v42 = vmax.f32 %v1138_v29, 0.0  ;;  %v1644_v30 = vmax.f32 %v1458_v21, 0.0  ;;  %v1461_v31 = vadd.f32 %v1460_v27, %v7501_v13 }
 0x122   : > { %v1567_v40 = vmax.f32 %v1149_v33, 0.0  ;;  %v1646_v25 = vmax.f32 %v1466_v17, 0.0  ;;  %v1647_v34 = vmax.f32 %v1469_v26, 0.0 }
 0x123   : > { %v1565_v43 = vmax.f32 %v1141_v36, 0.0  ;;  %v1645_v36 = vmax.f32 %v1461_v31, 0.0 }
 0x124   : > { %v1679_v47 = vpack.c.bf16 %v1567_v40, %v1566_v39  ;;  %v7588_v39 = vpack.c.bf16 %v1647_v34, %v1646_v25 }
 0x125   : > { %v6036_v51 = vpop.f32.mrb[32].mxu0  ;;  %v1678_v52 = vpack.c.bf16 %v1565_v43, %v1564_v42  ;;  %v6116_v43 = vpop.f32.mrb[20].mxu1  ;;  %v7590_v44 = vpack.c.bf16 %v1645_v36, %v1644_v30 }
 0x126   : > { %v1162_v55 = vadd.f32 %v6036_v51, %v7501_v13  ;;  %v1153_v56 = vpop.f32.mrb[33].mxu0  ;;  %v1482_v48 = vadd.f32 %v6116_v43, %v7501_v13  ;;  %v1473_v49 = vpop.f32.mrb[21].mxu1 }
 0x127   : > { %v1154_v60 = vadd.f32 %v1153_v56, %v7501_v13  ;;  %v6037_v61 = vpop.f32.mrb[34].mxu0  ;;  %6174 = vmatprep.mubr.bf16.mxu1 %v1678_v52  ;;  %v1474_v53 = vadd.f32 %v1473_v49, %v7501_v13  ;;  %v6117_v54 = vpop.f32.mrb[22].mxu1 }
 0x128   : > { %v1165_v0 = vadd.f32 %v6037_v61, %v7501_v13  ;;  %v1156_v1 = vpop.f32.mrb[35].mxu0  ;;  %6175 = vmatmul.mubr.bf16.gmra.mrb[64].mxu1 %v1679_v47  ;;  %v1570_v5 = vmax.f32 %v1162_v55, 0.0  ;;  %v1650_v57 = vmax.f32 %v1482_v48, 0.0  ;;  %v1485_v58 = vadd.f32 %v6117_v54, %v7501_v13  ;;  %v1476_v59 = vpop.f32.mrb[23].mxu1 }
 0x129   : > { %v1157_v3 = vadd.f32 %v1156_v1, %v7501_v13  ;;  %v1568_v8 = vmax.f32 %v1154_v60, 0.0  ;;  %v1648_v62 = vmax.f32 %v1474_v53, 0.0  ;;  %v1477_v63 = vadd.f32 %v1476_v59, %v7501_v13  ;;  %v6120_v18 = vpop.f32.mrb[24].mxu1 }
 0x12a   : > { %v1571_v6 = vmax.f32 %v1165_v0, 0.0  ;;  %v1651_v2 = vmax.f32 %v1485_v58, 0.0  ;;  %v1498_v21 = vadd.f32 %v6120_v18, %v7501_v13  ;;  %v1489_v22 = vpop.f32.mrb[25].mxu1  ;;  %v7245_v58 = vld [vmem:[%s8460_s3 + $0x30] sm:$0xff]   ;;  %v7246_v18 = vld [vmem:[%s8460_s3 + $0x38] sm:$0xff]  }
 0x12b   : > { %v1569_v9 = vmax.f32 %v1157_v3, 0.0  ;;  %v7242_v3 = vld [vmem:[%s8460_s3 + $0x18] sm:$0xff]   ;;  %v1490_v25 = vadd.f32 %v1489_v22, %v7501_v13  ;;  %v6121_v26 = vpop.f32.mrb[26].mxu1 }
 0x12c   : > { %v1681_v15 = vpack.c.bf16 %v1571_v6, %v1570_v5  ;;  %v1649_v5 = vmax.f32 %v1477_v63, 0.0  ;;  %v7243_v6 = vld [vmem:[%s8460_s3 + $0x20] sm:$0xff]   ;;  %6280 = vmatprep.subr.bf16.mxu0 %v7242_v3  ;;  %v7606_v12 = vpack.c.bf16 %v1651_v2, %v1650_v57  ;;  %v1501_v30 = vadd.f32 %v6121_v26, %v7501_v13  ;;  %v1492_v31 = vpop.f32.mrb[27].mxu1 }
 0x12d   : > { %v6040_v19 = vpop.f32.mrb[36].mxu0  ;;  %v1680_v20 = vpack.c.bf16 %v1569_v9, %v1568_v8  ;;  %6281 = vmatpush3.bf16.msra.mxu0 %v7242_v3  ;;  %v1652_v34 = vmax.f32 %v1490_v25, 0.0  ;;  %v6124_v53 = vpop.f32.mrb[28].mxu1 }
 0x12e   : > { %v1178_v23 = vadd.f32 %v6040_v19, %v7501_v13  ;;  %v1169_v24 = vpop.f32.mrb[37].mxu0  ;;  %v7608_v19 = vpack.c.bf16 %v1649_v5, %v1648_v62  ;;  %6282 = vmatprep.subr.bf16.mxu0 %v7243_v6  ;;  %v1505_v57 = vpop.f32.mrb[29].mxu1 }
 0x12f   : > { %v1170_v28 = vadd.f32 %v1169_v24, %v7501_v13  ;;  %v6041_v29 = vpop.f32.mrb[38].mxu0  ;;  %6178 = vmatprep.mubr.bf16.mxu1 %v1680_v20  ;;  %v6125_v62 = vpop.f32.mrb[30].mxu1 }
 0x130   : > { %v1181_v32 = vadd.f32 %v6041_v29, %v7501_v13  ;;  %v1172_v33 = vpop.f32.mrb[39].mxu0  ;;  %6179 = vmatmul.mubr.bf16.gmra.mrb[68].mxu1 %v1681_v15  ;;  %v1574_v37 = vmax.f32 %v1178_v23, 0.0  ;;  %v1654_v29 = vmax.f32 %v1498_v21, 0.0  ;;  %v1517_v2 = vadd.f32 %v6125_v62, %v7501_v13  ;;  %v1508_v3 = vpop.f32.mrb[31].mxu1 }
 0x131   : > { %v1173_v35 = vadd.f32 %v1172_v33, %v7501_v13  ;;  %v1572_v40 = vmax.f32 %v1170_v28, 0.0  ;;  %6283 = vmatpush3.bf16.msra.mxu0 %v7243_v6 }
 0x132   : > { %v1575_v38 = vmax.f32 %v1181_v32, 0.0 }
 0x133   : > { %v1573_v42 = vmax.f32 %v1173_v35, 0.0  ;;  %v1493_v35 = vadd.f32 %v1492_v31, %v7501_v13 }
 0x134   : > { %v1683_v47 = vpack.c.bf16 %v1575_v38, %v1574_v37  ;;  %v1655_v38 = vmax.f32 %v1501_v30, 0.0 }
 0x135   : > { %v6044_v51 = vpop.f32.mrb[40].mxu0  ;;  %v1682_v52 = vpack.c.bf16 %v1573_v42, %v1572_v40  ;;  %v7244_v40 = vld [vmem:[%s8460_s3 + $0x28] sm:$0xff]   ;;  %v1653_v43 = vmax.f32 %v1493_v35, 0.0 }
 0x136   : > { %v1194_v55 = vadd.f32 %v6044_v51, %v7501_v13  ;;  %v1185_v56 = vpop.f32.mrb[41].mxu0  ;;  %6284 = vmatprep.subr.bf16.mxu0 %v7244_v40  ;;  %v7621_v49 = vpack.c.bf16 %v1655_v38, %v1654_v29 }
 0x137   : > { %v1186_v60 = vadd.f32 %v1185_v56, %v7501_v13  ;;  %v6045_v61 = vpop.f32.mrb[42].mxu0  ;;  %6182 = vmatprep.mubr.bf16.mxu1 %v1682_v52  ;;  %6285 = vmatpush3.bf16.msra.mxu0 %v7244_v40  ;;  %v7623_v54 = vpack.c.bf16 %v1653_v43, %v1652_v34  ;;  %v1514_v56 = vadd.f32 %v6124_v53, %v7501_v13 }
 0x138   : > { %v1197_v0 = vadd.f32 %v6045_v61, %v7501_v13  ;;  %v1188_v1 = vpop.f32.mrb[43].mxu0  ;;  %6183 = vmatmul.mubr.bf16.gmra.mrb[72].mxu1 %v1683_v47  ;;  %v1578_v8 = vmax.f32 %v1194_v55, 0.0  ;;  %v1506_v61 = vadd.f32 %v1505_v57, %v7501_v13  ;;  %6286 = vmatprep.subr.bf16.mxu0 %v7245_v58 }
 0x139   : > { %v1189_v4 = vadd.f32 %v1188_v1, %v7501_v13  ;;  %v1576_v15 = vmax.f32 %v1186_v60, 0.0  ;;  %v1658_v1 = vmax.f32 %v1514_v56, 0.0 }
 0x13a   : > { %v1579_v9 = vmax.f32 %v1197_v0, 0.0  ;;  %v1656_v6 = vmax.f32 %v1506_v61, 0.0 }
 0x13b   : > { %v1577_v17 = vmax.f32 %v1189_v4, 0.0  ;;  %6287 = vmatpush3.bf16.msra.mxu0 %v7245_v58 }
 0x13c   : > { %v1685_v20 = vpack.c.bf16 %v1579_v9, %v1578_v8  ;;  %v1509_v8 = vadd.f32 %v1508_v3, %v7501_v13  ;;  %6288 = vmatprep.subr.bf16.mxu0 %v7246_v18 }
 0x13d   : > { %v6048_v23 = vpop.f32.mrb[44].mxu0  ;;  %v1684_v24 = vpack.c.bf16 %v1577_v17, %v1576_v15  ;;  %v1659_v17 = vmax.f32 %v1517_v2, 0.0 }
 0x13e   : > { %v1210_v27 = vadd.f32 %v6048_v23, %v7501_v13  ;;  %v1201_v28 = vpop.f32.mrb[45].mxu0  ;;  %v1657_v21 = vmax.f32 %v1509_v8, 0.0 }
 0x13f   : > { %v1202_v32 = vadd.f32 %v1201_v28, %v7501_v13  ;;  %v6049_v33 = vpop.f32.mrb[46].mxu0  ;;  %6186 = vmatprep.mubr.bf16.mxu1 %v1684_v24  ;;  %v7639_v24 = vpack.c.bf16 %v1659_v17, %v1658_v1  ;;  %6289 = vmatpush3.bf16.msra.mxu0 %v7246_v18 }
 0x140   : > { %v1213_v36 = vadd.f32 %v6049_v33, %v7501_v13  ;;  %v1204_v37 = vpop.f32.mrb[47].mxu0  ;;  %6187 = vmatmul.mubr.bf16.gmra.mrb[76].mxu1 %v1685_v20  ;;  %v1582_v47 = vmax.f32 %v1210_v27, 0.0  ;;  %v6128_v27 = vpop.f32.mrb[32].mxu1  ;;  %v7641_v28 = vpack.c.bf16 %v1657_v21, %v1656_v6 }
 0x141   : > { %v1205_v42 = vadd.f32 %v1204_v37, %v7501_v13  ;;  %v1580_v51 = vmax.f32 %v1202_v32, 0.0  ;;  %v1530_v30 = vadd.f32 %v6128_v27, %v7501_v13  ;;  %v1521_v31 = vpop.f32.mrb[33].mxu1 }
 0x142   : > { %v1583_v48 = vmax.f32 %v1213_v36, 0.0  ;;  %v1522_v34 = vadd.f32 %v1521_v31, %v7501_v13  ;;  %v6129_v35 = vpop.f32.mrb[34].mxu1 }
 0x143   : > { %v1581_v52 = vmax.f32 %v1205_v42, 0.0  ;;  %v1662_v38 = vmax.f32 %v1530_v30, 0.0  ;;  %v1533_v40 = vadd.f32 %v6129_v35, %v7501_v13  ;;  %v1524_v42 = vpop.f32.mrb[35].mxu1 }
 0x144   : > { %v1687_v55 = vpack.c.bf16 %v1583_v48, %v1582_v47  ;;  %v1660_v48 = vmax.f32 %v1522_v34, 0.0 }
 0x145   : > { %v6052_v59 = vpop.f32.mrb[48].mxu0  ;;  %v1686_v60 = vpack.c.bf16 %v1581_v52, %v1580_v51  ;;  %v1525_v51 = vadd.f32 %v1524_v42, %v7501_v13 }
 0x146   : > { %v1226_v63 = vadd.f32 %v6052_v59, %v7501_v13  ;;  %v1217_v0 = vpop.f32.mrb[49].mxu0 }
 0x147   : > { %v1218_v4 = vadd.f32 %v1217_v0, %v7501_v13  ;;  %v6053_v5 = vpop.f32.mrb[50].mxu0  ;;  %6190 = vmatprep.mubr.bf16.mxu1 %v1686_v60  ;;  %v1661_v57 = vmax.f32 %v1525_v51, 0.0 }
 0x148   : > { %v1229_v9 = vadd.f32 %v6053_v5, %v7501_v13  ;;  %v1220_v15 = vpop.f32.mrb[51].mxu0  ;;  %6191 = vmatmul.mubr.bf16.gmra.mrb[80].mxu1 %v1687_v55  ;;  %v1586_v22 = vmax.f32 %v1226_v63, 0.0  ;;  %v1663_v55 = vmax.f32 %v1533_v40, 0.0 }
 0x149   : > { %v1221_v20 = vadd.f32 %v1220_v15, %v7501_v13  ;;  %v1584_v25 = vmax.f32 %v1218_v4, 0.0  ;;  %v7653_v63 = vpack.c.bf16 %v1661_v57, %v1660_v48 }
 0x14a   : > { %v1587_v23 = vmax.f32 %v1229_v9, 0.0  ;;  %v7651_v60 = vpack.c.bf16 %v1663_v55, %v1662_v38 }
 0x14b   : > { %v1585_v26 = vmax.f32 %v1221_v20, 0.0 }
 0x14c   : > { %v1689_v29 = vpack.c.bf16 %v1587_v23, %v1586_v22 }
 0x14d   : > { %v6056_v32 = vpop.f32.mrb[52].mxu0  ;;  %v1688_v33 = vpack.c.bf16 %v1585_v26, %v1584_v25 }
 0x14e   : > { %v1242_v36 = vadd.f32 %v6056_v32, %v7501_v13  ;;  %v1233_v37 = vpop.f32.mrb[53].mxu0 }
 0x14f   : > { %v1234_v43 = vadd.f32 %v1233_v37, %v7501_v13  ;;  %v6057_v47 = vpop.f32.mrb[54].mxu0  ;;  %6194 = vmatprep.mubr.bf16.mxu1 %v1688_v33 }
 0x150   : > { %v1245_v52 = vadd.f32 %v6057_v47, %v7501_v13  ;;  %v1236_v53 = vpop.f32.mrb[55].mxu0  ;;  %6195 = vmatmul.mubr.bf16.gmra.mrb[84].mxu1 %v1689_v29  ;;  %v1590_v58 = vmax.f32 %v1242_v36, 0.0 }
 0x151   : > { %v1237_v56 = vadd.f32 %v1236_v53, %v7501_v13  ;;  %v1588_v61 = vmax.f32 %v1234_v43, 0.0 }
 0x152   : > { %v1591_v59 = vmax.f32 %v1245_v52, 0.0 }
 0x153   : > { %v1589_v62 = vmax.f32 %v1237_v56, 0.0 }
 0x154   : > { %v1691_v0 = vpack.c.bf16 %v1591_v59, %v1590_v58 }
 0x155   : > { %v6060_v1 = vpop.f32.mrb[56].mxu0  ;;  %v1690_v2 = vpack.c.bf16 %v1589_v62, %v1588_v61 }
 0x156   : > { %v1258_v3 = vadd.f32 %v6060_v1, %v7501_v13  ;;  %v1249_v4 = vpop.f32.mrb[57].mxu0 }
 0x157   : > { %v1250_v5 = vadd.f32 %v1249_v4, %v7501_v13  ;;  %v6061_v6 = vpop.f32.mrb[58].mxu0  ;;  %6198 = vmatprep.mubr.bf16.mxu1 %v1690_v2 }
 0x158   : > { %v1261_v8 = vadd.f32 %v6061_v6, %v7501_v13  ;;  %v1252_v9 = vpop.f32.mrb[59].mxu0  ;;  %6199 = vmatmul.mubr.bf16.gmra.mrb[88].mxu1 %v1691_v0  ;;  %v1594_v17 = vmax.f32 %v1258_v3, 0.0 }
 0x159   : > { %v1253_v15 = vadd.f32 %v1252_v9, %v7501_v13  ;;  %v1592_v20 = vmax.f32 %v1250_v5, 0.0 }
 0x15a   : > { %v1595_v18 = vmax.f32 %v1261_v8, 0.0 }
 0x15b   : > { %v1593_v21 = vmax.f32 %v1253_v15, 0.0 }
 0x15c   : > { %v1693_v22 = vpack.c.bf16 %v1595_v18, %v1594_v17 }
 0x15d   : > { %v6064_v23 = vpop.f32.mrb[60].mxu0  ;;  %v1692_v25 = vpack.c.bf16 %v1593_v21, %v1592_v20 }
 0x15e   : > { %v1274_v26 = vadd.f32 %v6064_v23, %v7501_v13  ;;  %v1265_v27 = vpop.f32.mrb[61].mxu0 }
 0x15f   : > { %v1266_v29 = vadd.f32 %v1265_v27, %v7501_v13  ;;  %v6065_v30 = vpop.f32.mrb[62].mxu0  ;;  %6202 = vmatprep.mubr.bf16.mxu1 %v1692_v25 }
 0x160   : > { %v1277_v31 = vadd.f32 %v6065_v30, %v7501_v13  ;;  %v1268_v32 = vpop.f32.mrb[63].mxu0  ;;  %6203 = vmatmul.mubr.bf16.gmra.mrb[92].mxu1 %v1693_v22  ;;  %v1598_v34 = vmax.f32 %v1274_v26, 0.0 }
 0x161   : > { %v1269_v33 = vadd.f32 %v1268_v32, %v7501_v13  ;;  %v1596_v36 = vmax.f32 %v1266_v29, 0.0 }
 0x162   : > { %v1599_v35 = vmax.f32 %v1277_v31, 0.0 }
 0x163   : > { %v1597_v37 = vmax.f32 %v1269_v33, 0.0 }
 0x164   : > { %v1695_v38 = vpack.c.bf16 %v1599_v35, %v1598_v34 }
 0x165   : > { %v6068_v40 = vpop.f32.mrb[64].mxu0  ;;  %v1694_v42 = vpack.c.bf16 %v1597_v37, %v1596_v36 }
 0x166   : > { %v1290_v43 = vadd.f32 %v6068_v40, %v7501_v13  ;;  %v1281_v47 = vpop.f32.mrb[65].mxu0 }
 0x167   : > { %v1282_v48 = vadd.f32 %v1281_v47, %v7501_v13  ;;  %v6069_v51 = vpop.f32.mrb[66].mxu0  ;;  %6206 = vmatprep.mubr.bf16.mxu1 %v1694_v42 }
 0x168   : > { %v1293_v52 = vadd.f32 %v6069_v51, %v7501_v13  ;;  %v1284_v53 = vpop.f32.mrb[67].mxu0  ;;  %6207 = vmatmul.mubr.bf16.gmra.mrb[96].mxu1 %v1695_v38  ;;  %v1602_v56 = vmax.f32 %v1290_v43, 0.0 }
 0x169   : > { %v1285_v55 = vadd.f32 %v1284_v53, %v7501_v13  ;;  %v1600_v58 = vmax.f32 %v1282_v48, 0.0 }
 0x16a   : > { %v1603_v57 = vmax.f32 %v1293_v52, 0.0 }
 0x16b   : > { %v1601_v59 = vmax.f32 %v1285_v55, 0.0 }
 0x16c   : > { %v1697_v61 = vpack.c.bf16 %v1603_v57, %v1602_v56 }
 0x16d   : > { %v6072_v62 = vpop.f32.mrb[68].mxu0  ;;  %v1696_v0 = vpack.c.bf16 %v1601_v59, %v1600_v58 }
 0x16e   : > { %v1306_v1 = vadd.f32 %v6072_v62, %v7501_v13  ;;  %v1297_v2 = vpop.f32.mrb[69].mxu0 }
 0x16f   : > { %v1298_v3 = vadd.f32 %v1297_v2, %v7501_v13  ;;  %v6073_v4 = vpop.f32.mrb[70].mxu0  ;;  %6210 = vmatprep.mubr.bf16.mxu1 %v1696_v0 }
 0x170   : > { %v1309_v5 = vadd.f32 %v6073_v4, %v7501_v13  ;;  %v1300_v6 = vpop.f32.mrb[71].mxu0  ;;  %6211 = vmatmul.mubr.bf16.gmra.mrb[100].mxu1 %v1697_v61  ;;  %v1606_v9 = vmax.f32 %v1306_v1, 0.0 }
 0x171   : > { %v1301_v8 = vadd.f32 %v1300_v6, %v7501_v13  ;;  %v1604_v17 = vmax.f32 %v1298_v3, 0.0 }
 0x172   : > { %v1607_v15 = vmax.f32 %v1309_v5, 0.0 }
 0x173   : > { %v1605_v18 = vmax.f32 %v1301_v8, 0.0 }
 0x174   : > { %v1699_v20 = vpack.c.bf16 %v1607_v15, %v1606_v9 }
 0x175   : > { %v6076_v21 = vpop.f32.mrb[72].mxu0  ;;  %v1698_v22 = vpack.c.bf16 %v1605_v18, %v1604_v17 }
 0x176   : > { %v1322_v23 = vadd.f32 %v6076_v21, %v7501_v13  ;;  %v1313_v25 = vpop.f32.mrb[73].mxu0 }
 0x177   : > { %v1314_v26 = vadd.f32 %v1313_v25, %v7501_v13  ;;  %v6077_v27 = vpop.f32.mrb[74].mxu0  ;;  %6214 = vmatprep.mubr.bf16.mxu1 %v1698_v22 }
 0x178   : > { %v1325_v29 = vadd.f32 %v6077_v27, %v7501_v13  ;;  %v1316_v30 = vpop.f32.mrb[75].mxu0  ;;  %6215 = vmatmul.mubr.bf16.gmra.mrb[104].mxu1 %v1699_v20  ;;  %v1610_v32 = vmax.f32 %v1322_v23, 0.0 }
 0x179   : > { %v1317_v31 = vadd.f32 %v1316_v30, %v7501_v13  ;;  %v1608_v34 = vmax.f32 %v1314_v26, 0.0 }
 0x17a   : > { %v1611_v33 = vmax.f32 %v1325_v29, 0.0 }
 0x17b   : > { %v1609_v35 = vmax.f32 %v1317_v31, 0.0 }
 0x17c   : > { %v1701_v36 = vpack.c.bf16 %v1611_v33, %v1610_v32 }
 0x17d   : > { %v6080_v37 = vpop.f32.mrb[76].mxu0  ;;  %v1700_v38 = vpack.c.bf16 %v1609_v35, %v1608_v34  ;;  %v7247_v34 = vld [vmem:[%s8461_s4] sm:$0xff]  }
 0x17e   : > { %v1338_v40 = vadd.f32 %v6080_v37, %v7501_v13  ;;  %v1329_v42 = vpop.f32.mrb[77].mxu0  ;;  %6418 = vmatprep.subr.bf16.mxu1 %v7247_v34 }
 0x17f   : > { %v1330_v43 = vadd.f32 %v1329_v42, %v7501_v13  ;;  %v6081_v47 = vpop.f32.mrb[78].mxu0  ;;  %6218 = vmatprep.mubr.bf16.mxu1 %v1700_v38  ;;  %6419 = vmatpush3.bf16.msra.mxu1 %v7247_v34 }
 0x180   : > { %v1341_v48 = vadd.f32 %v6081_v47, %v7501_v13  ;;  %v1332_v51 = vpop.f32.mrb[79].mxu0  ;;  %6219 = vmatmul.mubr.bf16.gmra.mrb[108].mxu1 %v1701_v36  ;;  %v1614_v53 = vmax.f32 %v1338_v40, 0.0 }
 0x181   : > { %v1333_v52 = vadd.f32 %v1332_v51, %v7501_v13  ;;  %v1612_v56 = vmax.f32 %v1330_v43, 0.0 }
 0x182   : > { %v1615_v55 = vmax.f32 %v1341_v48, 0.0 }
 0x183   : > { %v1613_v57 = vmax.f32 %v1333_v52, 0.0 }
 0x184   : > { %v1703_v58 = vpack.c.bf16 %v1615_v55, %v1614_v53 }
 0x185   : > { %v6084_v59 = vpop.f32.mrb[80].mxu0  ;;  %v1702_v61 = vpack.c.bf16 %v1613_v57, %v1612_v56 }
 0x186   : > { %v1354_v62 = vadd.f32 %v6084_v59, %v7501_v13  ;;  %v1345_v0 = vpop.f32.mrb[81].mxu0 }
 0x187   : > { %v1346_v1 = vadd.f32 %v1345_v0, %v7501_v13  ;;  %v6085_v2 = vpop.f32.mrb[82].mxu0  ;;  %6222 = vmatprep.mubr.bf16.mxu1 %v1702_v61 }
 0x188   : > { %v1357_v3 = vadd.f32 %v6085_v2, %v7501_v13  ;;  %v1348_v4 = vpop.f32.mrb[83].mxu0  ;;  %6223 = vmatmul.mubr.bf16.gmra.mrb[112].mxu1 %v1703_v58  ;;  %v1618_v6 = vmax.f32 %v1354_v62, 0.0 }
 0x189   : > { %v1349_v5 = vadd.f32 %v1348_v4, %v7501_v13  ;;  %v1616_v9 = vmax.f32 %v1346_v1, 0.0 }
 0x18a   : > { %v1619_v8 = vmax.f32 %v1357_v3, 0.0 }
 0x18b   : > { %v1617_v15 = vmax.f32 %v1349_v5, 0.0 }
 0x18c   : > { %v1705_v17 = vpack.c.bf16 %v1619_v8, %v1618_v6 }
 0x18d   : > { %v6088_v18 = vpop.f32.mrb[84].mxu0  ;;  %v1704_v20 = vpack.c.bf16 %v1617_v15, %v1616_v9 }
 0x18e   : > { %v1370_v21 = vadd.f32 %v6088_v18, %v7501_v13  ;;  %v1361_v22 = vpop.f32.mrb[85].mxu0 }
 0x18f   : > { %v1362_v23 = vadd.f32 %v1361_v22, %v7501_v13  ;;  %v6089_v25 = vpop.f32.mrb[86].mxu0  ;;  %6226 = vmatprep.mubr.bf16.mxu1 %v1704_v20 }
 0x190   : > { %v1373_v26 = vadd.f32 %v6089_v25, %v7501_v13  ;;  %v1364_v27 = vpop.f32.mrb[87].mxu0  ;;  %6227 = vmatmul.mubr.bf16.gmra.mrb[116].mxu1 %v1705_v17  ;;  %v1622_v30 = vmax.f32 %v1370_v21, 0.0 }
 0x191   : > { %v1365_v29 = vadd.f32 %v1364_v27, %v7501_v13  ;;  %v1620_v32 = vmax.f32 %v1362_v23, 0.0  ;;  %v7249_v27 = vld [vmem:[%s8461_s4 + $0x10] sm:$0xff]  }
 0x192   : > { %v1623_v31 = vmax.f32 %v1373_v26, 0.0 }
 0x193   : > { %v1621_v33 = vmax.f32 %v1365_v29, 0.0 }
 0x194   : > { %v1707_v35 = vpack.c.bf16 %v1623_v31, %v1622_v30 }
 0x195   : > { %v6092_v36 = vpop.f32.mrb[88].mxu0  ;;  %v1706_v37 = vpack.c.bf16 %v1621_v33, %v1620_v32 }
 0x196   : > { %v1386_v38 = vadd.f32 %v6092_v36, %v7501_v13  ;;  %v1377_v40 = vpop.f32.mrb[89].mxu0 }
 0x197   : > { %v1378_v42 = vadd.f32 %v1377_v40, %v7501_v13  ;;  %v6093_v43 = vpop.f32.mrb[90].mxu0  ;;  %6230 = vmatprep.mubr.bf16.mxu1 %v1706_v37 }
 0x198   : > { %v1389_v47 = vadd.f32 %v6093_v43, %v7501_v13  ;;  %v1380_v48 = vpop.f32.mrb[91].mxu0  ;;  %6231 = vmatmul.mubr.bf16.gmra.mrb[120].mxu1 %v1707_v35  ;;  %v1626_v52 = vmax.f32 %v1386_v38, 0.0 }
 0x199   : > { %v1381_v51 = vadd.f32 %v1380_v48, %v7501_v13  ;;  %v1624_v55 = vmax.f32 %v1378_v42, 0.0  ;;  %v7248_v13 = vld [vmem:[%s8461_s4 + $0x8] sm:$0xff]  }
 0x19a   : > { %v1627_v53 = vmax.f32 %v1389_v47, 0.0  ;;  %6420 = vmatprep.subr.bf16.mxu1 %v7248_v13 }
 0x19b   : > { %v1625_v56 = vmax.f32 %v1381_v51, 0.0  ;;  %6421 = vmatpush3.bf16.msra.mxu1 %v7248_v13 }
 0x19c   : > { %v1709_v57 = vpack.c.bf16 %v1627_v53, %v1626_v52  ;;  %6422 = vmatprep.subr.bf16.mxu1 %v7249_v27 }
 0x19d   : > { %v1708_v58 = vpack.c.bf16 %v1625_v56, %v1624_v55 }
 0x19f   : > { %6234 = vmatprep.mubr.bf16.mxu1 %v1708_v58  ;;  %6423 = vmatpush3.bf16.msra.mxu1 %v7249_v27 }
 0x1a0   : > { %6235 = vmatmul.mubr.bf16.gmra.mrb[124].mxu1 %v1709_v57 }
 0x1a1   : > { %6238 = vmatprep.mubr.bf16.mxu1 %v7539_v50  ;;  %v1746_v50 = vsub.s32 1, %v7495_v10 }
 0x1a8   : > { %6239 = vmatmul.mubr.bf16.gmra.mrb[128].mxu1 %v7534_v45  ;;  %v7709_v45 = vld [vmem:[%s8464_s7] sm:$0x1f] }
 0x1a9   : > { %6242 = vmatprep.mubr.bf16.mxu1 %v7551_v16 }
 0x1b0   : > { %6243 = vmatmul.mubr.bf16.gmra.mrb[132].mxu1 %v7549_v11  ;;  %v7712_v11 = vrot.slane %v7709_v45, %v1746_v50 }
 0x1b1   : > { %6246 = vmatprep.mubr.bf16.mxu1 %v7566_v46 }
 0x1b8   : > { %6247 = vmatmul.mubr.bf16.gmra.mrb[136].mxu1 %v7564_v41 }
 0x1b9   : > { %6250 = vmatprep.mubr.bf16.mxu1 %v7578_v14 }
 0x1c0   : > { %6251 = vmatmul.mubr.bf16.gmra.mrb[140].mxu1 %v7576_v7 }
 0x1c1   : > { %6254 = vmatprep.mubr.bf16.mxu1 %v7590_v44 }
 0x1c3   : > { %v6148_v16 = vpop.f32.mrb[36].mxu1 }
 0x1c4   : > { %v1839_v46 = vadd.f32 %v6148_v16, %v7712_v11  ;;  %v1830_v41 = vpop.f32.mrb[37].mxu1 }
 0x1c5   : > { %v1831_v14 = vadd.f32 %v1830_v41, %v7712_v11  ;;  %v6149_v59 = vpop.f32.mrb[38].mxu1 }
 0x1c6   : > { %v1842_v61 = vadd.f32 %v6149_v59, %v7712_v11  ;;  %v1833_v7 = vpop.f32.mrb[39].mxu1  ;;  %v2343_v0 = vmax.f32 %v1839_v46, 0.0 }
 0x1c7   : > { %v1834_v62 = vadd.f32 %v1833_v7, %v7712_v11  ;;  %v2341_v2 = vmax.f32 %v1831_v14, 0.0 }
 0x1c8   : > { %v2344_v1 = vmax.f32 %v1842_v61, 0.0  ;;  %6255 = vmatmul.mubr.bf16.gmra.mrb[144].mxu1 %v7588_v39 }
 0x1c9   : > { %v2342_v3 = vmax.f32 %v1834_v62, 0.0  ;;  %6258 = vmatprep.mubr.bf16.mxu1 %v7608_v19 }
 0x1ca   : > { %v2470_v44 = vpack.c.bf16 %v2344_v1, %v2343_v0 }
 0x1cb   : > { %v6152_v4 = vpop.f32.mrb[40].mxu1  ;;  %v2469_v5 = vpack.c.bf16 %v2342_v3, %v2341_v2 }
 0x1cc   : > { %v1855_v6 = vadd.f32 %v6152_v4, %v7712_v11  ;;  %v1846_v8 = vpop.f32.mrb[41].mxu1 }
 0x1cd   : > { %v1847_v9 = vadd.f32 %v1846_v8, %v7712_v11  ;;  %v6153_v15 = vpop.f32.mrb[42].mxu1  ;;  %6290 = vmatprep.mubr.bf16.mxu0 %v2469_v5 }
 0x1ce   : > { %v1858_v17 = vadd.f32 %v6153_v15, %v7712_v11  ;;  %v1849_v18 = vpop.f32.mrb[43].mxu1  ;;  %6291 = vmatmul.mubr.bf16.vlgmr.msra.gmra.mrb[92].mxu0 %v2470_v44  ;;  %v2347_v20 = vmax.f32 %v1855_v6, 0.0 }
 0x1cf   : > { %v1850_v39 = vadd.f32 %v1849_v18, %v7712_v11  ;;  %v2345_v19 = vmax.f32 %v1847_v9, 0.0 }
 0x1d0   : > { %v2348_v21 = vmax.f32 %v1858_v17, 0.0  ;;  %6259 = vmatmul.mubr.bf16.gmra.mrb[148].mxu1 %v7606_v12 }
 0x1d1   : > { %v2346_v22 = vmax.f32 %v1850_v39, 0.0  ;;  %6262 = vmatprep.mubr.bf16.mxu1 %v7623_v54 }
 0x1d2   : > { %v2472_v23 = vpack.c.bf16 %v2348_v21, %v2347_v20 }
 0x1d3   : > { %v6156_v25 = vpop.f32.mrb[44].mxu1  ;;  %v2471_v26 = vpack.c.bf16 %v2346_v22, %v2345_v19  ;;  %v7250_v22 = vld [vmem:[%s8461_s4 + $0x18] sm:$0xff]  }
 0x1d4   : > { %v1871_v29 = vadd.f32 %v6156_v25, %v7712_v11  ;;  %v1862_v30 = vpop.f32.mrb[45].mxu1  ;;  %6424 = vmatprep.subr.bf16.mxu1 %v7250_v22 }
 0x1d5   : > { %v1863_v31 = vadd.f32 %v1862_v30, %v7712_v11  ;;  %v6157_v32 = vpop.f32.mrb[46].mxu1  ;;  %6294 = vmatprep.mubr.bf16.mxu0 %v2471_v26  ;;  %6425 = vmatpush3.bf16.msra.mxu1 %v7250_v22 }
 0x1d6   : > { %v1874_v12 = vadd.f32 %v6157_v32, %v7712_v11  ;;  %v1865_v33 = vpop.f32.mrb[47].mxu1  ;;  %6295 = vmatmul.mubr.bf16.gmra.mrb[96].mxu0 %v2472_v23  ;;  %v2351_v34 = vmax.f32 %v1871_v29, 0.0 }
 0x1d7   : > { %v1866_v54 = vadd.f32 %v1865_v33, %v7712_v11  ;;  %v2349_v36 = vmax.f32 %v1863_v31, 0.0 }
 0x1d8   : > { %v2352_v35 = vmax.f32 %v1874_v12, 0.0  ;;  %6263 = vmatmul.mubr.bf16.gmra.mrb[152].mxu1 %v7621_v49 }
 0x1d9   : > { %v2350_v37 = vmax.f32 %v1866_v54, 0.0  ;;  %6266 = vmatprep.mubr.bf16.mxu1 %v7641_v28 }
 0x1da   : > { %v2474_v38 = vpack.c.bf16 %v2352_v35, %v2351_v34 }
 0x1db   : > { %v6160_v40 = vpop.f32.mrb[48].mxu1  ;;  %v2473_v42 = vpack.c.bf16 %v2350_v37, %v2349_v36 }
 0x1dc   : > { %v1887_v43 = vadd.f32 %v6160_v40, %v7712_v11  ;;  %v1878_v47 = vpop.f32.mrb[49].mxu1 }
 0x1dd   : > { %v1879_v48 = vadd.f32 %v1878_v47, %v7712_v11  ;;  %v6161_v51 = vpop.f32.mrb[50].mxu1  ;;  %6298 = vmatprep.mubr.bf16.mxu0 %v2473_v42 }
 0x1de   : > { %v1890_v52 = vadd.f32 %v6161_v51, %v7712_v11  ;;  %v1881_v53 = vpop.f32.mrb[51].mxu1  ;;  %6299 = vmatmul.mubr.bf16.gmra.mrb[100].mxu0 %v2474_v38  ;;  %v2355_v55 = vmax.f32 %v1887_v43, 0.0 }
 0x1df   : > { %v1882_v49 = vadd.f32 %v1881_v53, %v7712_v11  ;;  %v2353_v28 = vmax.f32 %v1879_v48, 0.0 }
 0x1e0   : > { %v2356_v56 = vmax.f32 %v1890_v52, 0.0  ;;  %6267 = vmatmul.mubr.bf16.gmra.mrb[156].mxu1 %v7639_v24 }
 0x1e1   : > { %v2354_v57 = vmax.f32 %v1882_v49, 0.0  ;;  %6270 = vmatprep.mubr.bf16.mxu1 %v7653_v63 }
 0x1e2   : > { %v2476_v58 = vpack.c.bf16 %v2356_v56, %v2355_v55 }
 0x1e3   : > { %v6164_v13 = vpop.f32.mrb[52].mxu1  ;;  %v2475_v50 = vpack.c.bf16 %v2354_v57, %v2353_v28 }
 0x1e4   : > { %v1903_v16 = vadd.f32 %v6164_v13, %v7712_v11  ;;  %v1894_v46 = vpop.f32.mrb[53].mxu1 }
 0x1e5   : > { %v1895_v41 = vadd.f32 %v1894_v46, %v7712_v11  ;;  %v6165_v14 = vpop.f32.mrb[54].mxu1  ;;  %6302 = vmatprep.mubr.bf16.mxu0 %v2475_v50 }
 0x1e6   : > { %v1906_v59 = vadd.f32 %v6165_v14, %v7712_v11  ;;  %v1897_v61 = vpop.f32.mrb[55].mxu1  ;;  %6303 = vmatmul.mubr.bf16.gmra.mrb[104].mxu0 %v2476_v58  ;;  %v2359_v7 = vmax.f32 %v1903_v16, 0.0 }
 0x1e7   : > { %v1898_v24 = vadd.f32 %v1897_v61, %v7712_v11  ;;  %v2357_v63 = vmax.f32 %v1895_v41, 0.0 }
 0x1e8   : > { %v2360_v62 = vmax.f32 %v1906_v59, 0.0  ;;  %6271 = vmatmul.mubr.bf16.gmra.mrb[160].mxu1 %v7651_v60 }
 0x1e9   : > { %v2358_v0 = vmax.f32 %v1898_v24, 0.0 }
 0x1ea   : > { %v2478_v1 = vpack.c.bf16 %v2360_v62, %v2359_v7 }
 0x1eb   : > { %v2477_v2 = vpack.c.bf16 %v2358_v0, %v2357_v63  ;;  %v6168_v3 = vpop.f32.mrb[56].mxu1 }
 0x1ec   : > { %v1919_v44 = vadd.f32 %v6168_v3, %v7712_v11  ;;  %v1910_v4 = vpop.f32.mrb[57].mxu1 }
 0x1ed   : > { %v1911_v5 = vadd.f32 %v1910_v4, %v7712_v11  ;;  %v6169_v6 = vpop.f32.mrb[58].mxu1  ;;  %6306 = vmatprep.mubr.bf16.mxu0 %v2477_v2 }
 0x1ee   : > { %v1922_v8 = vadd.f32 %v6169_v6, %v7712_v11  ;;  %v1913_v9 = vpop.f32.mrb[59].mxu1  ;;  %6307 = vmatmul.mubr.bf16.gmra.mrb[108].mxu0 %v2478_v1  ;;  %v2363_v17 = vmax.f32 %v1919_v44, 0.0 }
 0x1ef   : > { %v1914_v15 = vadd.f32 %v1913_v9, %v7712_v11  ;;  %v2361_v18 = vmax.f32 %v1911_v5, 0.0 }
 0x1f0   : > { %v2364_v60 = vmax.f32 %v1922_v8, 0.0 }
 0x1f1   : > { %v2362_v39 = vmax.f32 %v1914_v15, 0.0 }
 0x1f2   : > { %v2480_v20 = vpack.c.bf16 %v2364_v60, %v2363_v17 }
 0x1f3   : > { %v2479_v21 = vpack.c.bf16 %v2362_v39, %v2361_v18  ;;  %v6172_v19 = vpop.f32.mrb[60].mxu1  ;;  %v7251_v39 = vld [vmem:[%s8461_s4 + $0x20] sm:$0xff]  }
 0x1f4   : > { %v1935_v23 = vadd.f32 %v6172_v19, %v7712_v11  ;;  %v1926_v25 = vpop.f32.mrb[61].mxu1  ;;  %6426 = vmatprep.subr.bf16.mxu1 %v7251_v39 }
 0x1f5   : > { %v1927_v26 = vadd.f32 %v1926_v25, %v7712_v11  ;;  %v6173_v27 = vpop.f32.mrb[62].mxu1  ;;  %6310 = vmatprep.mubr.bf16.mxu0 %v2479_v21  ;;  %6427 = vmatpush3.bf16.msra.mxu1 %v7251_v39 }
 0x1f6   : > { %v1938_v29 = vadd.f32 %v6173_v27, %v7712_v11  ;;  %v1929_v30 = vpop.f32.mrb[63].mxu1  ;;  %6311 = vmatmul.mubr.bf16.gmra.mrb[112].mxu0 %v2480_v20  ;;  %v2367_v32 = vmax.f32 %v1935_v23, 0.0 }
 0x1f7   : > { %v1930_v31 = vadd.f32 %v1929_v30, %v7712_v11  ;;  %v2365_v33 = vmax.f32 %v1927_v26, 0.0 }
 0x1f8   : > { %v2368_v12 = vmax.f32 %v1938_v29, 0.0 }
 0x1f9   : > { %v2366_v54 = vmax.f32 %v1930_v31, 0.0 }
 0x1fa   : > { %v2482_v34 = vpack.c.bf16 %v2368_v12, %v2367_v32 }
 0x1fb   : > { %v2481_v35 = vpack.c.bf16 %v2366_v54, %v2365_v33  ;;  %v6176_v36 = vpop.f32.mrb[64].mxu1 }
 0x1fc   : > { %v1951_v37 = vadd.f32 %v6176_v36, %v7712_v11  ;;  %v1942_v38 = vpop.f32.mrb[65].mxu1 }
 0x1fd   : > { %v1943_v40 = vadd.f32 %v1942_v38, %v7712_v11  ;;  %v6177_v42 = vpop.f32.mrb[66].mxu1  ;;  %6314 = vmatprep.mubr.bf16.mxu0 %v2481_v35 }
 0x1fe   : > { %v1954_v43 = vadd.f32 %v6177_v42, %v7712_v11  ;;  %v1945_v47 = vpop.f32.mrb[67].mxu1  ;;  %6315 = vmatmul.mubr.bf16.gmra.mrb[116].mxu0 %v2482_v34  ;;  %v2371_v51 = vmax.f32 %v1951_v37, 0.0 }
 0x1ff   : > { %v1946_v48 = vadd.f32 %v1945_v47, %v7712_v11  ;;  %v2369_v53 = vmax.f32 %v1943_v40, 0.0  ;;  %v7252_v40 = vld [vmem:[%s8461_s4 + $0x28] sm:$0xff]  }
 0x200   : > { %v2372_v52 = vmax.f32 %v1954_v43, 0.0  ;;  %6428 = vmatprep.subr.bf16.mxu1 %v7252_v40 }
 0x201   : > { %v2370_v49 = vmax.f32 %v1946_v48, 0.0  ;;  %6429 = vmatpush3.bf16.msra.mxu1 %v7252_v40 }
 0x202   : > { %v2484_v55 = vpack.c.bf16 %v2372_v52, %v2371_v51 }
 0x203   : > { %v2483_v56 = vpack.c.bf16 %v2370_v49, %v2369_v53  ;;  %v6180_v28 = vpop.f32.mrb[68].mxu1  ;;  %v7253_v53 = vld [vmem:[%s8461_s4 + $0x30] sm:$0xff]  }
 0x204   : > { %v1967_v57 = vadd.f32 %v6180_v28, %v7712_v11  ;;  %v1958_v58 = vpop.f32.mrb[69].mxu1  ;;  %6430 = vmatprep.subr.bf16.mxu1 %v7253_v53 }
 0x205   : > { %v1959_v13 = vadd.f32 %v1958_v58, %v7712_v11  ;;  %v6181_v50 = vpop.f32.mrb[70].mxu1  ;;  %6318 = vmatprep.mubr.bf16.mxu0 %v2483_v56  ;;  %6431 = vmatpush3.bf16.msra.mxu1 %v7253_v53 }
 0x206   : > { %v1970_v16 = vadd.f32 %v6181_v50, %v7712_v11  ;;  %v1961_v46 = vpop.f32.mrb[71].mxu1  ;;  %6319 = vmatmul.mubr.bf16.gmra.mrb[120].mxu0 %v2484_v55  ;;  %v2375_v14 = vmax.f32 %v1967_v57, 0.0 }
 0x207   : > { %v1962_v41 = vadd.f32 %v1961_v46, %v7712_v11  ;;  %v2373_v61 = vmax.f32 %v1959_v13, 0.0 }
 0x208   : > { %v2376_v59 = vmax.f32 %v1970_v16, 0.0  ;;  %v7254_v16 = vld [vmem:[%s8461_s4 + $0x38] sm:$0xff]  }
 0x209   : > { %v2374_v24 = vmax.f32 %v1962_v41, 0.0  ;;  %6432 = vmatprep.subr.bf16.mxu1 %v7254_v16 }
 0x20a   : > { %v2486_v7 = vpack.c.bf16 %v2376_v59, %v2375_v14  ;;  %6433 = vmatpush3.bf16.msra.mxu1 %v7254_v16 }
 0x20b   : > { %v2485_v62 = vpack.c.bf16 %v2374_v24, %v2373_v61  ;;  %v6184_v63 = vpop.f32.mrb[72].mxu1 }
 0x20c   : > { %v1983_v0 = vadd.f32 %v6184_v63, %v7712_v11  ;;  %v1974_v1 = vpop.f32.mrb[73].mxu1 }
 0x20d   : > { %v1975_v2 = vadd.f32 %v1974_v1, %v7712_v11  ;;  %v6185_v3 = vpop.f32.mrb[74].mxu1  ;;  %6322 = vmatprep.mubr.bf16.mxu0 %v2485_v62 }
 0x20e   : > { %v1986_v44 = vadd.f32 %v6185_v3, %v7712_v11  ;;  %v1977_v4 = vpop.f32.mrb[75].mxu1  ;;  %6323 = vmatmul.mubr.bf16.gmra.mrb[124].mxu0 %v2486_v7  ;;  %v2379_v6 = vmax.f32 %v1983_v0, 0.0 }
 0x20f   : > { %v1978_v5 = vadd.f32 %v1977_v4, %v7712_v11  ;;  %v2377_v9 = vmax.f32 %v1975_v2, 0.0 }
 0x210   : > { %v2380_v8 = vmax.f32 %v1986_v44, 0.0 }
 0x211   : > { %v2378_v15 = vmax.f32 %v1978_v5, 0.0 }
 0x212   : > { %v2488_v17 = vpack.c.bf16 %v2380_v8, %v2379_v6 }
 0x213   : > { %v2487_v60 = vpack.c.bf16 %v2378_v15, %v2377_v9  ;;  %v6188_v18 = vpop.f32.mrb[76].mxu1 }
 0x214   : > { %v1999_v20 = vadd.f32 %v6188_v18, %v7712_v11  ;;  %v1990_v21 = vpop.f32.mrb[77].mxu1 }
 0x215   : > { %v1991_v19 = vadd.f32 %v1990_v21, %v7712_v11  ;;  %v6189_v22 = vpop.f32.mrb[78].mxu1  ;;  %6326 = vmatprep.mubr.bf16.mxu0 %v2487_v60 }
 0x216   : > { %v2002_v23 = vadd.f32 %v6189_v22, %v7712_v11  ;;  %v1993_v25 = vpop.f32.mrb[79].mxu1  ;;  %6327 = vmatmul.mubr.bf16.gmra.mrb[128].mxu0 %v2488_v17  ;;  %v2383_v27 = vmax.f32 %v1999_v20, 0.0 }
 0x217   : > { %v1994_v26 = vadd.f32 %v1993_v25, %v7712_v11  ;;  %v2381_v30 = vmax.f32 %v1991_v19, 0.0 }
 0x218   : > { %v2384_v29 = vmax.f32 %v2002_v23, 0.0 }
 0x219   : > { %v2382_v31 = vmax.f32 %v1994_v26, 0.0 }
 0x21a   : > { %v2490_v32 = vpack.c.bf16 %v2384_v29, %v2383_v27 }
 0x21b   : > { %v2489_v12 = vpack.c.bf16 %v2382_v31, %v2381_v30  ;;  %v6192_v33 = vpop.f32.mrb[80].mxu1 }
 0x21c   : > { %v2015_v54 = vadd.f32 %v6192_v33, %v7712_v11  ;;  %v2006_v34 = vpop.f32.mrb[81].mxu1 }
 0x21d   : > { %v2007_v35 = vadd.f32 %v2006_v34, %v7712_v11  ;;  %v6193_v36 = vpop.f32.mrb[82].mxu1  ;;  %6330 = vmatprep.mubr.bf16.mxu0 %v2489_v12 }
 0x21e   : > { %v2018_v37 = vadd.f32 %v6193_v36, %v7712_v11  ;;  %v2009_v38 = vpop.f32.mrb[83].mxu1  ;;  %6331 = vmatmul.mubr.bf16.gmra.mrb[132].mxu0 %v2490_v32  ;;  %v2387_v43 = vmax.f32 %v2015_v54, 0.0 }
 0x21f   : > { %v2010_v42 = vadd.f32 %v2009_v38, %v7712_v11  ;;  %v2385_v48 = vmax.f32 %v2007_v35, 0.0 }
 0x220   : > { %v2388_v47 = vmax.f32 %v2018_v37, 0.0 }
 0x221   : > { %v2386_v51 = vmax.f32 %v2010_v42, 0.0 }
 0x222   : > { %v2492_v52 = vpack.c.bf16 %v2388_v47, %v2387_v43 }
 0x223   : > { %v2491_v49 = vpack.c.bf16 %v2386_v51, %v2385_v48  ;;  %v6196_v55 = vpop.f32.mrb[84].mxu1 }
 0x224   : > { %v2031_v56 = vadd.f32 %v6196_v55, %v7712_v11  ;;  %v2022_v28 = vpop.f32.mrb[85].mxu1 }
 0x225   : > { %v2023_v57 = vadd.f32 %v2022_v28, %v7712_v11  ;;  %v6197_v58 = vpop.f32.mrb[86].mxu1  ;;  %6334 = vmatprep.mubr.bf16.mxu0 %v2491_v49 }
 0x226   : > { %v2034_v13 = vadd.f32 %v6197_v58, %v7712_v11  ;;  %v2025_v50 = vpop.f32.mrb[87].mxu1  ;;  %6335 = vmatmul.mubr.bf16.gmra.mrb[136].mxu0 %v2492_v52  ;;  %v2391_v41 = vmax.f32 %v2031_v56, 0.0 }
 0x227   : > { %v2026_v46 = vadd.f32 %v2025_v50, %v7712_v11  ;;  %v2389_v59 = vmax.f32 %v2023_v57, 0.0 }
 0x228   : > { %v2392_v14 = vmax.f32 %v2034_v13, 0.0 }
 0x229   : > { %v2390_v61 = vmax.f32 %v2026_v46, 0.0 }
 0x22a   : > { %v2494_v24 = vpack.c.bf16 %v2392_v14, %v2391_v41 }
 0x22b   : > { %v2493_v7 = vpack.c.bf16 %v2390_v61, %v2389_v59  ;;  %v6200_v62 = vpop.f32.mrb[88].mxu1 }
 0x22c   : > { %v2047_v63 = vadd.f32 %v6200_v62, %v7712_v11  ;;  %v2038_v0 = vpop.f32.mrb[89].mxu1 }
 0x22d   : > { %v2039_v1 = vadd.f32 %v2038_v0, %v7712_v11  ;;  %v6201_v2 = vpop.f32.mrb[90].mxu1  ;;  %6338 = vmatprep.mubr.bf16.mxu0 %v2493_v7 }
 0x22e   : > { %v2050_v3 = vadd.f32 %v6201_v2, %v7712_v11  ;;  %v2041_v44 = vpop.f32.mrb[91].mxu1  ;;  %6339 = vmatmul.mubr.bf16.gmra.mrb[140].mxu0 %v2494_v24  ;;  %v2395_v5 = vmax.f32 %v2047_v63, 0.0 }
 0x22f   : > { %v2042_v4 = vadd.f32 %v2041_v44, %v7712_v11  ;;  %v2393_v8 = vmax.f32 %v2039_v1, 0.0 }
 0x230   : > { %v2396_v6 = vmax.f32 %v2050_v3, 0.0 }
 0x231   : > { %v2394_v9 = vmax.f32 %v2042_v4, 0.0 }
 0x232   : > { %v2496_v15 = vpack.c.bf16 %v2396_v6, %v2395_v5 }
 0x233   : > { %v2495_v17 = vpack.c.bf16 %v2394_v9, %v2393_v8  ;;  %v6204_v60 = vpop.f32.mrb[92].mxu1 }
 0x234   : > { %v2063_v18 = vadd.f32 %v6204_v60, %v7712_v11  ;;  %v2054_v39 = vpop.f32.mrb[93].mxu1 }
 0x235   : > { %v2055_v20 = vadd.f32 %v2054_v39, %v7712_v11  ;;  %v6205_v21 = vpop.f32.mrb[94].mxu1  ;;  %6342 = vmatprep.mubr.bf16.mxu0 %v2495_v17 }
 0x236   : > { %v2066_v19 = vadd.f32 %v6205_v21, %v7712_v11  ;;  %v2057_v22 = vpop.f32.mrb[95].mxu1  ;;  %6343 = vmatmul.mubr.bf16.gmra.mrb[144].mxu0 %v2496_v15  ;;  %v2399_v25 = vmax.f32 %v2063_v18, 0.0 }
 0x237   : > { %v2058_v23 = vadd.f32 %v2057_v22, %v7712_v11  ;;  %v2397_v27 = vmax.f32 %v2055_v20, 0.0 }
 0x238   : > { %v2400_v26 = vmax.f32 %v2066_v19, 0.0 }
 0x239   : > { %v2398_v29 = vmax.f32 %v2058_v23, 0.0 }
 0x23a   : > { %v2498_v30 = vpack.c.bf16 %v2400_v26, %v2399_v25 }
 0x23b   : > { %v2497_v31 = vpack.c.bf16 %v2398_v29, %v2397_v27  ;;  %v6208_v32 = vpop.f32.mrb[96].mxu1 }
 0x23c   : > { %v2079_v12 = vadd.f32 %v6208_v32, %v7712_v11  ;;  %v2070_v33 = vpop.f32.mrb[97].mxu1 }
 0x23d   : > { %v2071_v54 = vadd.f32 %v2070_v33, %v7712_v11  ;;  %v6209_v34 = vpop.f32.mrb[98].mxu1  ;;  %6346 = vmatprep.mubr.bf16.mxu0 %v2497_v31 }
 0x23e   : > { %v2082_v35 = vadd.f32 %v6209_v34, %v7712_v11  ;;  %v2073_v36 = vpop.f32.mrb[99].mxu1  ;;  %6347 = vmatmul.mubr.bf16.gmra.mrb[148].mxu0 %v2498_v30  ;;  %v2403_v38 = vmax.f32 %v2079_v12, 0.0 }
 0x23f   : > { %v2074_v37 = vadd.f32 %v2073_v36, %v7712_v11  ;;  %v2401_v42 = vmax.f32 %v2071_v54, 0.0 }
 0x240   : > { %v2404_v40 = vmax.f32 %v2082_v35, 0.0 }
 0x241   : > { %v2402_v43 = vmax.f32 %v2074_v37, 0.0 }
 0x242   : > { %v2500_v47 = vpack.c.bf16 %v2404_v40, %v2403_v38 }
 0x243   : > { %v2499_v48 = vpack.c.bf16 %v2402_v43, %v2401_v42  ;;  %v6212_v51 = vpop.f32.mrb[100].mxu1 }
 0x244   : > { %v2095_v52 = vadd.f32 %v6212_v51, %v7712_v11  ;;  %v2086_v53 = vpop.f32.mrb[101].mxu1 }
 0x245   : > { %v2087_v49 = vadd.f32 %v2086_v53, %v7712_v11  ;;  %v6213_v55 = vpop.f32.mrb[102].mxu1  ;;  %6350 = vmatprep.mubr.bf16.mxu0 %v2499_v48 }
 0x246   : > { %v2098_v56 = vadd.f32 %v6213_v55, %v7712_v11  ;;  %v2089_v28 = vpop.f32.mrb[103].mxu1  ;;  %6351 = vmatmul.mubr.bf16.gmra.mrb[152].mxu0 %v2500_v47  ;;  %v2407_v58 = vmax.f32 %v2095_v52, 0.0 }
 0x247   : > { %v2090_v57 = vadd.f32 %v2089_v28, %v7712_v11  ;;  %v2405_v50 = vmax.f32 %v2087_v49, 0.0 }
 0x248   : > { %v2408_v13 = vmax.f32 %v2098_v56, 0.0 }
 0x249   : > { %v2406_v16 = vmax.f32 %v2090_v57, 0.0 }
 0x24a   : > { %v2502_v46 = vpack.c.bf16 %v2408_v13, %v2407_v58 }
 0x24b   : > { %v2501_v41 = vpack.c.bf16 %v2406_v16, %v2405_v50  ;;  %v6216_v14 = vpop.f32.mrb[104].mxu1 }
 0x24c   : > { %v2111_v59 = vadd.f32 %v6216_v14, %v7712_v11  ;;  %v2102_v61 = vpop.f32.mrb[105].mxu1 }
 0x24d   : > { %v2103_v24 = vadd.f32 %v2102_v61, %v7712_v11  ;;  %v6217_v7 = vpop.f32.mrb[106].mxu1  ;;  %6354 = vmatprep.mubr.bf16.mxu0 %v2501_v41 }
 0x24e   : > { %v2114_v62 = vadd.f32 %v6217_v7, %v7712_v11  ;;  %v2105_v63 = vpop.f32.mrb[107].mxu1  ;;  %6355 = vmatmul.mubr.bf16.gmra.mrb[156].mxu0 %v2502_v46  ;;  %v2411_v1 = vmax.f32 %v2111_v59, 0.0 }
 0x24f   : > { %v2106_v0 = vadd.f32 %v2105_v63, %v7712_v11  ;;  %v2409_v3 = vmax.f32 %v2103_v24, 0.0 }
 0x250   : > { %v2412_v2 = vmax.f32 %v2114_v62, 0.0 }
 0x251   : > { %v2410_v44 = vmax.f32 %v2106_v0, 0.0  ;;  %v7255_v0 = vld [vmem:[%s8462_s5] sm:$0xff]  }
 0x252   : > { %v2504_v4 = vpack.c.bf16 %v2412_v2, %v2411_v1  ;;  %6562 = vmatprep.subr.bf16.mxu0 %v7255_v0 }
 0x253   : > { %v2503_v5 = vpack.c.bf16 %v2410_v44, %v2409_v3  ;;  %v6220_v6 = vpop.f32.mrb[108].mxu1  ;;  %6563 = vmatpush3.bf16.msra.mxu0 %v7255_v0 }
 0x254   : > { %v2127_v8 = vadd.f32 %v6220_v6, %v7712_v11  ;;  %v2118_v9 = vpop.f32.mrb[109].mxu1 }
 0x255   : > { %v2119_v15 = vadd.f32 %v2118_v9, %v7712_v11  ;;  %v6221_v17 = vpop.f32.mrb[110].mxu1  ;;  %6358 = vmatprep.mubr.bf16.mxu0 %v2503_v5 }
 0x256   : > { %v2130_v60 = vadd.f32 %v6221_v17, %v7712_v11  ;;  %v2121_v18 = vpop.f32.mrb[111].mxu1  ;;  %6359 = vmatmul.mubr.bf16.gmra.mrb[160].mxu0 %v2504_v4  ;;  %v2415_v20 = vmax.f32 %v2127_v8, 0.0 }
 0x257   : > { %v2122_v39 = vadd.f32 %v2121_v18, %v7712_v11  ;;  %v2413_v19 = vmax.f32 %v2119_v15, 0.0 }
 0x258   : > { %v2416_v21 = vmax.f32 %v2130_v60, 0.0 }
 0x259   : > { %v2414_v22 = vmax.f32 %v2122_v39, 0.0 }
 0x25a   : > { %v2506_v23 = vpack.c.bf16 %v2416_v21, %v2415_v20 }
 0x25b   : > { %v2505_v25 = vpack.c.bf16 %v2414_v22, %v2413_v19  ;;  %v6224_v26 = vpop.f32.mrb[112].mxu1 }
 0x25c   : > { %v2143_v27 = vadd.f32 %v6224_v26, %v7712_v11  ;;  %v2134_v29 = vpop.f32.mrb[113].mxu1 }
 0x25d   : > { %v2135_v30 = vadd.f32 %v2134_v29, %v7712_v11  ;;  %v6225_v31 = vpop.f32.mrb[114].mxu1  ;;  %6362 = vmatprep.mubr.bf16.mxu0 %v2505_v25 }
 0x25e   : > { %v2146_v32 = vadd.f32 %v6225_v31, %v7712_v11  ;;  %v2137_v12 = vpop.f32.mrb[115].mxu1  ;;  %6363 = vmatmul.mubr.bf16.gmra.mrb[164].mxu0 %v2506_v23  ;;  %v2419_v54 = vmax.f32 %v2143_v27, 0.0 }
 0x25f   : > { %v2138_v33 = vadd.f32 %v2137_v12, %v7712_v11  ;;  %v2417_v35 = vmax.f32 %v2135_v30, 0.0 }
 0x260   : > { %v2420_v34 = vmax.f32 %v2146_v32, 0.0 }
 0x261   : > { %v2418_v36 = vmax.f32 %v2138_v33, 0.0 }
 0x262   : > { %v2508_v37 = vpack.c.bf16 %v2420_v34, %v2419_v54 }
 0x263   : > { %v2507_v38 = vpack.c.bf16 %v2418_v36, %v2417_v35  ;;  %v6228_v40 = vpop.f32.mrb[116].mxu1 }
 0x264   : > { %v2159_v42 = vadd.f32 %v6228_v40, %v7712_v11  ;;  %v2150_v43 = vpop.f32.mrb[117].mxu1 }
 0x265   : > { %v2151_v47 = vadd.f32 %v2150_v43, %v7712_v11  ;;  %v6229_v48 = vpop.f32.mrb[118].mxu1  ;;  %6366 = vmatprep.mubr.bf16.mxu0 %v2507_v38 }
 0x266   : > { %v2162_v51 = vadd.f32 %v6229_v48, %v7712_v11  ;;  %v2153_v52 = vpop.f32.mrb[119].mxu1  ;;  %6367 = vmatmul.mubr.bf16.gmra.mrb[168].mxu0 %v2508_v37  ;;  %v2423_v49 = vmax.f32 %v2159_v42, 0.0 }
 0x267   : > { %v2154_v53 = vadd.f32 %v2153_v52, %v7712_v11  ;;  %v2421_v56 = vmax.f32 %v2151_v47, 0.0 }
 0x268   : > { %v2424_v55 = vmax.f32 %v2162_v51, 0.0 }
 0x269   : > { %v2422_v28 = vmax.f32 %v2154_v53, 0.0 }
 0x26a   : > { %v2510_v57 = vpack.c.bf16 %v2424_v55, %v2423_v49 }
 0x26b   : > { %v2509_v58 = vpack.c.bf16 %v2422_v28, %v2421_v56  ;;  %v6232_v13 = vpop.f32.mrb[120].mxu1 }
 0x26c   : > { %v2175_v50 = vadd.f32 %v6232_v13, %v7712_v11  ;;  %v2166_v16 = vpop.f32.mrb[121].mxu1 }
 0x26d   : > { %v2167_v46 = vadd.f32 %v2166_v16, %v7712_v11  ;;  %v6233_v41 = vpop.f32.mrb[122].mxu1  ;;  %6370 = vmatprep.mubr.bf16.mxu0 %v2509_v58 }
 0x26e   : > { %v2178_v14 = vadd.f32 %v6233_v41, %v7712_v11  ;;  %v2169_v59 = vpop.f32.mrb[123].mxu1  ;;  %6371 = vmatmul.mubr.bf16.gmra.mrb[172].mxu0 %v2510_v57  ;;  %v2427_v24 = vmax.f32 %v2175_v50, 0.0 }
 0x26f   : > { %v2170_v61 = vadd.f32 %v2169_v59, %v7712_v11  ;;  %v2425_v62 = vmax.f32 %v2167_v46, 0.0 }
 0x270   : > { %v2428_v7 = vmax.f32 %v2178_v14, 0.0 }
 0x271   : > { %v2426_v63 = vmax.f32 %v2170_v61, 0.0 }
 0x272   : > { %v2512_v1 = vpack.c.bf16 %v2428_v7, %v2427_v24  ;;  %v7256_v24 = vld [vmem:[%s8462_s5 + $0x8] sm:$0xff]  }
 0x273   : > { %v2511_v2 = vpack.c.bf16 %v2426_v63, %v2425_v62  ;;  %v6236_v3 = vpop.f32.mrb[124].mxu1  ;;  %6564 = vmatprep.subr.bf16.mxu0 %v7256_v24 }
 0x274   : > { %v2191_v44 = vadd.f32 %v6236_v3, %v7712_v11  ;;  %v2182_v4 = vpop.f32.mrb[125].mxu1  ;;  %6565 = vmatpush3.bf16.msra.mxu0 %v7256_v24 }
 0x275   : > { %v2183_v5 = vadd.f32 %v2182_v4, %v7712_v11  ;;  %v6237_v6 = vpop.f32.mrb[126].mxu1  ;;  %6374 = vmatprep.mubr.bf16.mxu0 %v2511_v2 }
 0x276   : > { %v2194_v8 = vadd.f32 %v6237_v6, %v7712_v11  ;;  %v2185_v9 = vpop.f32.mrb[127].mxu1  ;;  %6375 = vmatmul.mubr.bf16.gmra.mrb[176].mxu0 %v2512_v1  ;;  %v2431_v17 = vmax.f32 %v2191_v44, 0.0 }
 0x277   : > { %v2186_v15 = vadd.f32 %v2185_v9, %v7712_v11  ;;  %v2429_v18 = vmax.f32 %v2183_v5, 0.0 }
 0x278   : > { %v2432_v60 = vmax.f32 %v2194_v8, 0.0 }
 0x279   : > { %v2430_v39 = vmax.f32 %v2186_v15, 0.0 }
 0x27a   : > { %v2514_v20 = vpack.c.bf16 %v2432_v60, %v2431_v17  ;;  %v2551_v60 = vsub.s32 2, %v7495_v10 }
 0x27b   : > { %v2513_v21 = vpack.c.bf16 %v2430_v39, %v2429_v18  ;;  %v6240_v19 = vpop.f32.mrb[128].mxu1 }
 0x27c   : > { %v2207_v22 = vadd.f32 %v6240_v19, %v7712_v11  ;;  %v2198_v23 = vpop.f32.mrb[129].mxu1 }
 0x27d   : > { %v2199_v25 = vadd.f32 %v2198_v23, %v7712_v11  ;;  %v6241_v26 = vpop.f32.mrb[130].mxu1  ;;  %6378 = vmatprep.mubr.bf16.mxu0 %v2513_v21 }
 0x27e   : > { %v2210_v27 = vadd.f32 %v6241_v26, %v7712_v11  ;;  %v2201_v29 = vpop.f32.mrb[131].mxu1  ;;  %6379 = vmatmul.mubr.bf16.gmra.mrb[180].mxu0 %v2514_v20  ;;  %v2435_v31 = vmax.f32 %v2207_v22, 0.0  ;;  %v7861_v26 = vrot.slane %v7709_v45, %v2551_v60 }
 0x27f   : > { %v2202_v30 = vadd.f32 %v2201_v29, %v7712_v11  ;;  %v2433_v12 = vmax.f32 %v2199_v25, 0.0 }
 0x280   : > { %v2436_v32 = vmax.f32 %v2210_v27, 0.0 }
 0x281   : > { %v2434_v33 = vmax.f32 %v2202_v30, 0.0 }
 0x282   : > { %v2516_v54 = vpack.c.bf16 %v2436_v32, %v2435_v31 }
 0x283   : > { %v2515_v34 = vpack.c.bf16 %v2434_v33, %v2433_v12  ;;  %v6244_v35 = vpop.f32.mrb[132].mxu1 }
 0x284   : > { %v2223_v36 = vadd.f32 %v6244_v35, %v7712_v11  ;;  %v2214_v37 = vpop.f32.mrb[133].mxu1 }
 0x285   : > { %v2215_v38 = vadd.f32 %v2214_v37, %v7712_v11  ;;  %v6245_v40 = vpop.f32.mrb[134].mxu1  ;;  %6382 = vmatprep.mubr.bf16.mxu0 %v2515_v34 }
 0x286   : > { %v2226_v42 = vadd.f32 %v6245_v40, %v7712_v11  ;;  %v2217_v43 = vpop.f32.mrb[135].mxu1  ;;  %6383 = vmatmul.mubr.bf16.gmra.mrb[184].mxu0 %v2516_v54  ;;  %v2439_v48 = vmax.f32 %v2223_v36, 0.0 }
 0x287   : > { %v2218_v47 = vadd.f32 %v2217_v43, %v7712_v11  ;;  %v2437_v52 = vmax.f32 %v2215_v38, 0.0 }
 0x288   : > { %v2440_v51 = vmax.f32 %v2226_v42, 0.0 }
 0x289   : > { %v2438_v53 = vmax.f32 %v2218_v47, 0.0 }
 0x28a   : > { %v2518_v49 = vpack.c.bf16 %v2440_v51, %v2439_v48 }
 0x28b   : > { %v2517_v55 = vpack.c.bf16 %v2438_v53, %v2437_v52  ;;  %v6248_v56 = vpop.f32.mrb[136].mxu1 }
 0x28c   : > { %v2239_v28 = vadd.f32 %v6248_v56, %v7712_v11  ;;  %v2230_v57 = vpop.f32.mrb[137].mxu1 }
 0x28d   : > { %v2231_v58 = vadd.f32 %v2230_v57, %v7712_v11  ;;  %v6249_v13 = vpop.f32.mrb[138].mxu1  ;;  %6386 = vmatprep.mubr.bf16.mxu0 %v2517_v55 }
 0x28e   : > { %v2242_v50 = vadd.f32 %v6249_v13, %v7712_v11  ;;  %v2233_v16 = vpop.f32.mrb[139].mxu1  ;;  %6387 = vmatmul.mubr.bf16.gmra.mrb[188].mxu0 %v2518_v49  ;;  %v2443_v41 = vmax.f32 %v2239_v28, 0.0 }
 0x28f   : > { %v2234_v46 = vadd.f32 %v2233_v16, %v7712_v11  ;;  %v2441_v59 = vmax.f32 %v2231_v58, 0.0 }
 0x290   : > { %v2444_v14 = vmax.f32 %v2242_v50, 0.0 }
 0x291   : > { %v2442_v61 = vmax.f32 %v2234_v46, 0.0 }
 0x292   : > { %v2520_v7 = vpack.c.bf16 %v2444_v14, %v2443_v41 }
 0x293   : > { %v2519_v62 = vpack.c.bf16 %v2442_v61, %v2441_v59  ;;  %v6252_v63 = vpop.f32.mrb[140].mxu1 }
 0x294   : > { %v2255_v0 = vadd.f32 %v6252_v63, %v7712_v11  ;;  %v2246_v1 = vpop.f32.mrb[141].mxu1 }
 0x295   : > { %v2247_v2 = vadd.f32 %v2246_v1, %v7712_v11  ;;  %v6253_v3 = vpop.f32.mrb[142].mxu1  ;;  %6390 = vmatprep.mubr.bf16.mxu0 %v2519_v62 }
 0x296   : > { %v2258_v44 = vadd.f32 %v6253_v3, %v7712_v11  ;;  %v2249_v4 = vpop.f32.mrb[143].mxu1  ;;  %6391 = vmatmul.mubr.bf16.gmra.mrb[192].mxu0 %v2520_v7  ;;  %v2447_v6 = vmax.f32 %v2255_v0, 0.0 }
 0x297   : > { %v2250_v5 = vadd.f32 %v2249_v4, %v7712_v11  ;;  %v2445_v9 = vmax.f32 %v2247_v2, 0.0 }
 0x298   : > { %v2448_v8 = vmax.f32 %v2258_v44, 0.0 }
 0x299   : > { %v2446_v15 = vmax.f32 %v2250_v5, 0.0 }
 0x29a   : > { %v2522_v17 = vpack.c.bf16 %v2448_v8, %v2447_v6 }
 0x29b   : > { %v2521_v18 = vpack.c.bf16 %v2446_v15, %v2445_v9  ;;  %v6256_v39 = vpop.f32.mrb[144].mxu1 }
 0x29c   : > { %v2271_v20 = vadd.f32 %v6256_v39, %v7712_v11  ;;  %v2262_v21 = vpop.f32.mrb[145].mxu1 }
 0x29d   : > { %v2263_v19 = vadd.f32 %v2262_v21, %v7712_v11  ;;  %v6257_v22 = vpop.f32.mrb[146].mxu1  ;;  %6394 = vmatprep.mubr.bf16.mxu0 %v2521_v18 }
 0x29e   : > { %v2274_v23 = vadd.f32 %v6257_v22, %v7712_v11  ;;  %v2265_v25 = vpop.f32.mrb[147].mxu1  ;;  %6395 = vmatmul.mubr.bf16.gmra.mrb[196].mxu0 %v2522_v17  ;;  %v2451_v29 = vmax.f32 %v2271_v20, 0.0 }
 0x29f   : > { %v2266_v27 = vadd.f32 %v2265_v25, %v7712_v11  ;;  %v2449_v31 = vmax.f32 %v2263_v19, 0.0 }
 0x2a0   : > { %v2452_v30 = vmax.f32 %v2274_v23, 0.0 }
 0x2a1   : > { %v2450_v32 = vmax.f32 %v2266_v27, 0.0  ;;  %v6292_v12 = vpop.f32.mrb[92].mxu0 }
 0x2a2   : > { %v2524_v33 = vpack.c.bf16 %v2452_v30, %v2451_v29  ;;  %v2644_v54 = vadd.f32 %v6292_v12, %v7861_v26  ;;  %v2635_v34 = vpop.f32.mrb[93].mxu0  ;;  %v7257_v29 = vld [vmem:[%s8462_s5 + $0x10] sm:$0xff]  }
 0x2a3   : > { %v2523_v35 = vpack.c.bf16 %v2450_v32, %v2449_v31  ;;  %v2636_v36 = vadd.f32 %v2635_v34, %v7861_v26  ;;  %v6260_v37 = vpop.f32.mrb[148].mxu1  ;;  %v6293_v38 = vpop.f32.mrb[94].mxu0  ;;  %6566 = vmatprep.subr.bf16.mxu0 %v7257_v29 }
 0x2a4   : > { %v2287_v40 = vadd.f32 %v6260_v37, %v7712_v11  ;;  %v2647_v45 = vadd.f32 %v6293_v38, %v7861_v26  ;;  %v2278_v42 = vpop.f32.mrb[149].mxu1  ;;  %v2638_v43 = vpop.f32.mrb[95].mxu0  ;;  %v3148_v52 = vmax.f32 %v2644_v54, 0.0  ;;  %6567 = vmatpush3.bf16.msra.mxu0 %v7257_v29 }
 0x2a5   : > { %v2279_v47 = vadd.f32 %v2278_v42, %v7712_v11  ;;  %v2639_v48 = vadd.f32 %v2638_v43, %v7861_v26  ;;  %v6261_v51 = vpop.f32.mrb[150].mxu1  ;;  %6398 = vmatprep.mubr.bf16.mxu0 %v2523_v35  ;;  %v3146_v56 = vmax.f32 %v2636_v36, 0.0 }
 0x2a6   : > { %v3149_v53 = vmax.f32 %v2647_v45, 0.0  ;;  %v2290_v49 = vadd.f32 %v6261_v51, %v7712_v11  ;;  %v2281_v55 = vpop.f32.mrb[151].mxu1  ;;  %6399 = vmatmul.mubr.bf16.gmra.mrb[200].mxu0 %v2524_v33  ;;  %v2455_v58 = vmax.f32 %v2287_v40, 0.0 }
 0x2a7   : > { %v3147_v28 = vmax.f32 %v2639_v48, 0.0  ;;  %v2282_v57 = vadd.f32 %v2281_v55, %v7712_v11  ;;  %v2453_v16 = vmax.f32 %v2279_v47, 0.0 }
 0x2a8   : > { %v3275_v13 = vpack.c.bf16 %v3149_v53, %v3148_v52  ;;  %v2456_v50 = vmax.f32 %v2290_v49, 0.0 }
 0x2a9   : > { %v3274_v46 = vpack.c.bf16 %v3147_v28, %v3146_v56  ;;  %v2454_v41 = vmax.f32 %v2282_v57, 0.0  ;;  %v6296_v14 = vpop.f32.mrb[96].mxu0 }
 0x2aa   : > { %v2526_v59 = vpack.c.bf16 %v2456_v50, %v2455_v58  ;;  %v2660_v61 = vadd.f32 %v6296_v14, %v7861_v26  ;;  %v2651_v24 = vpop.f32.mrb[97].mxu0 }
 0x2ab   : > { %v2525_v7 = vpack.c.bf16 %v2454_v41, %v2453_v16  ;;  %v2652_v62 = vadd.f32 %v2651_v24, %v7861_v26  ;;  %v6264_v63 = vpop.f32.mrb[152].mxu1  ;;  %v6297_v0 = vpop.f32.mrb[98].mxu0  ;;  %6434 = vmatprep.mubr.bf16.mxu1 %v3274_v46 }
 0x2ac   : > { %v2303_v1 = vadd.f32 %v6264_v63, %v7712_v11  ;;  %v2663_v2 = vadd.f32 %v6297_v0, %v7861_v26  ;;  %v2294_v3 = vpop.f32.mrb[153].mxu1  ;;  %v2654_v44 = vpop.f32.mrb[99].mxu0  ;;  %6435 = vmatmul.mubr.bf16.vlgmr.msra.gmra.mrb[164].mxu1 %v3275_v13  ;;  %v3152_v8 = vmax.f32 %v2660_v61, 0.0 }
 0x2ad   : > { %v2295_v4 = vadd.f32 %v2294_v3, %v7712_v11  ;;  %v2655_v5 = vadd.f32 %v2654_v44, %v7861_v26  ;;  %v6265_v6 = vpop.f32.mrb[154].mxu1  ;;  %6402 = vmatprep.mubr.bf16.mxu0 %v2525_v7  ;;  %v3150_v60 = vmax.f32 %v2652_v62, 0.0 }
 0x2ae   : > { %v3153_v9 = vmax.f32 %v2663_v2, 0.0  ;;  %v2306_v15 = vadd.f32 %v6265_v6, %v7712_v11  ;;  %v2297_v17 = vpop.f32.mrb[155].mxu1  ;;  %6403 = vmatmul.mubr.bf16.gmra.mrb[204].mxu0 %v2526_v59  ;;  %v2459_v20 = vmax.f32 %v2303_v1, 0.0 }
 0x2af   : > { %v3151_v18 = vmax.f32 %v2655_v5, 0.0  ;;  %v2298_v39 = vadd.f32 %v2297_v17, %v7712_v11  ;;  %v2457_v22 = vmax.f32 %v2295_v4, 0.0 }
 0x2b0   : > { %v3277_v21 = vpack.c.bf16 %v3153_v9, %v3152_v8  ;;  %v2460_v19 = vmax.f32 %v2306_v15, 0.0 }
 0x2b1   : > { %v3276_v23 = vpack.c.bf16 %v3151_v18, %v3150_v60  ;;  %v2458_v25 = vmax.f32 %v2298_v39, 0.0  ;;  %v6300_v27 = vpop.f32.mrb[100].mxu0 }
 0x2b2   : > { %v2528_v30 = vpack.c.bf16 %v2460_v19, %v2459_v20  ;;  %v2676_v31 = vadd.f32 %v6300_v27, %v7861_v26  ;;  %v2667_v32 = vpop.f32.mrb[101].mxu0 }
 0x2b3   : > { %v2527_v12 = vpack.c.bf16 %v2458_v25, %v2457_v22  ;;  %v2668_v33 = vadd.f32 %v2667_v32, %v7861_v26  ;;  %v6268_v54 = vpop.f32.mrb[156].mxu1  ;;  %v6301_v34 = vpop.f32.mrb[102].mxu0  ;;  %6438 = vmatprep.mubr.bf16.mxu1 %v3276_v23 }
 0x2b4   : > { %v2319_v35 = vadd.f32 %v6268_v54, %v7712_v11  ;;  %v2679_v36 = vadd.f32 %v6301_v34, %v7861_v26  ;;  %v2310_v37 = vpop.f32.mrb[157].mxu1  ;;  %v2670_v38 = vpop.f32.mrb[103].mxu0  ;;  %6439 = vmatmul.mubr.bf16.gmra.mrb[168].mxu1 %v3277_v21  ;;  %v3156_v43 = vmax.f32 %v2676_v31, 0.0 }
 0x2b5   : > { %v2311_v40 = vadd.f32 %v2310_v37, %v7712_v11  ;;  %v2671_v45 = vadd.f32 %v2670_v38, %v7861_v26  ;;  %v6269_v42 = vpop.f32.mrb[158].mxu1  ;;  %6406 = vmatprep.mubr.bf16.mxu0 %v2527_v12  ;;  %v3154_v52 = vmax.f32 %v2668_v33, 0.0 }
 0x2b6   : > { %v3157_v47 = vmax.f32 %v2679_v36, 0.0  ;;  %v2322_v48 = vadd.f32 %v6269_v42, %v7712_v11  ;;  %v2313_v51 = vpop.f32.mrb[159].mxu1  ;;  %6407 = vmatmul.mubr.bf16.gmra.mrb[208].mxu0 %v2528_v30  ;;  %v2463_v55 = vmax.f32 %v2319_v35, 0.0 }
 0x2b7   : > { %v3155_v53 = vmax.f32 %v2671_v45, 0.0  ;;  %v2314_v49 = vadd.f32 %v2313_v51, %v7712_v11  ;;  %v2461_v57 = vmax.f32 %v2311_v40, 0.0 }
 0x2b8   : > { %v3279_v56 = vpack.c.bf16 %v3157_v47, %v3156_v43  ;;  %v2464_v28 = vmax.f32 %v2322_v48, 0.0 }
 0x2b9   : > { %v3278_v58 = vpack.c.bf16 %v3155_v53, %v3154_v52  ;;  %v2462_v13 = vmax.f32 %v2314_v49, 0.0  ;;  %v6304_v50 = vpop.f32.mrb[104].mxu0 }
 0x2ba   : > { %v2530_v16 = vpack.c.bf16 %v2464_v28, %v2463_v55  ;;  %v2692_v46 = vadd.f32 %v6304_v50, %v7861_v26  ;;  %v2683_v41 = vpop.f32.mrb[105].mxu0 }
 0x2bb   : > { %v2529_v14 = vpack.c.bf16 %v2462_v13, %v2461_v57  ;;  %v2684_v59 = vadd.f32 %v2683_v41, %v7861_v26  ;;  %v6272_v61 = vpop.f32.mrb[160].mxu1  ;;  %v6305_v24 = vpop.f32.mrb[106].mxu0  ;;  %6442 = vmatprep.mubr.bf16.mxu1 %v3278_v58  ;;  %v7258_v57 = vld [vmem:[%s8462_s5 + $0x18] sm:$0xff]  }
 0x2bc   : > { %v2335_v7 = vadd.f32 %v6272_v61, %v7712_v11  ;;  %v2695_v62 = vadd.f32 %v6305_v24, %v7861_v26  ;;  %v2326_v63 = vpop.f32.mrb[161].mxu1  ;;  %v2686_v0 = vpop.f32.mrb[107].mxu0  ;;  %6443 = vmatmul.mubr.bf16.gmra.mrb[172].mxu1 %v3279_v56  ;;  %v3160_v44 = vmax.f32 %v2692_v46, 0.0  ;;  %6568 = vmatprep.subr.bf16.mxu0 %v7258_v57 }
 0x2bd   : > { %v2327_v1 = vadd.f32 %v2326_v63, %v7712_v11  ;;  %v2687_v2 = vadd.f32 %v2686_v0, %v7861_v26  ;;  %v6273_v3 = vpop.f32.mrb[162].mxu1  ;;  %6410 = vmatprep.mubr.bf16.mxu0 %v2529_v14  ;;  %v3158_v8 = vmax.f32 %v2684_v59, 0.0  ;;  %6569 = vmatpush3.bf16.msra.mxu0 %v7258_v57 }
 0x2be   : > { %v3161_v4 = vmax.f32 %v2695_v62, 0.0  ;;  %v2338_v5 = vadd.f32 %v6273_v3, %v7712_v11  ;;  %v2329_v6 = vpop.f32.mrb[163].mxu1  ;;  %6411 = vmatmul.mubr.bf16.gmra.mrb[212].mxu0 %v2530_v16  ;;  %v2467_v17 = vmax.f32 %v2335_v7, 0.0 }
 0x2bf   : > { %v3159_v9 = vmax.f32 %v2687_v2, 0.0  ;;  %v2330_v15 = vadd.f32 %v2329_v6, %v7712_v11  ;;  %v2465_v39 = vmax.f32 %v2327_v1, 0.0 }
 0x2c0   : > { %v3281_v60 = vpack.c.bf16 %v3161_v4, %v3160_v44  ;;  %v2468_v18 = vmax.f32 %v2338_v5, 0.0 }
 0x2c1   : > { %v3280_v20 = vpack.c.bf16 %v3159_v9, %v3158_v8  ;;  %v2466_v21 = vmax.f32 %v2330_v15, 0.0  ;;  %v6308_v19 = vpop.f32.mrb[108].mxu0 }
 0x2c2   : > { %v2532_v22 = vpack.c.bf16 %v2468_v18, %v2467_v17  ;;  %v2708_v23 = vadd.f32 %v6308_v19, %v7861_v26  ;;  %v2699_v25 = vpop.f32.mrb[109].mxu0 }
 0x2c3   : > { %v2531_v27 = vpack.c.bf16 %v2466_v21, %v2465_v39  ;;  %v2700_v29 = vadd.f32 %v2699_v25, %v7861_v26  ;;  %v6309_v30 = vpop.f32.mrb[110].mxu0  ;;  %6446 = vmatprep.mubr.bf16.mxu1 %v3280_v20 }
 0x2c4   : > { %v2711_v31 = vadd.f32 %v6309_v30, %v7861_v26  ;;  %v2702_v32 = vpop.f32.mrb[111].mxu0  ;;  %6447 = vmatmul.mubr.bf16.gmra.mrb[176].mxu1 %v3281_v60  ;;  %v3164_v12 = vmax.f32 %v2708_v23, 0.0 }
 0x2c5   : > { %v2703_v11 = vadd.f32 %v2702_v32, %v7861_v26  ;;  %6414 = vmatprep.mubr.bf16.mxu0 %v2531_v27  ;;  %v3162_v54 = vmax.f32 %v2700_v29, 0.0 }
 0x2c6   : > { %v3165_v33 = vmax.f32 %v2711_v31, 0.0  ;;  %6415 = vmatmul.mubr.bf16.gmra.mrb[216].mxu0 %v2532_v22 }
 0x2c7   : > { %v3163_v34 = vmax.f32 %v2703_v11, 0.0 }
 0x2c8   : > { %v3283_v35 = vpack.c.bf16 %v3165_v33, %v3164_v12 }
 0x2c9   : > { %v3282_v36 = vpack.c.bf16 %v3163_v34, %v3162_v54  ;;  %v6312_v37 = vpop.f32.mrb[112].mxu0 }
 0x2ca   : > { %v2724_v38 = vadd.f32 %v6312_v37, %v7861_v26  ;;  %v2715_v40 = vpop.f32.mrb[113].mxu0 }
 0x2cb   : > { %v2716_v45 = vadd.f32 %v2715_v40, %v7861_v26  ;;  %v6313_v42 = vpop.f32.mrb[114].mxu0  ;;  %6450 = vmatprep.mubr.bf16.mxu1 %v3282_v36 }
 0x2cc   : > { %v2727_v43 = vadd.f32 %v6313_v42, %v7861_v26  ;;  %v2718_v47 = vpop.f32.mrb[115].mxu0  ;;  %6451 = vmatmul.mubr.bf16.gmra.mrb[180].mxu1 %v3283_v35  ;;  %v3168_v51 = vmax.f32 %v2724_v38, 0.0 }
 0x2cd   : > { %v2719_v48 = vadd.f32 %v2718_v47, %v7861_v26  ;;  %v3166_v53 = vmax.f32 %v2716_v45, 0.0 }
 0x2ce   : > { %v3169_v52 = vmax.f32 %v2727_v43, 0.0 }
 0x2cf   : > { %v3167_v49 = vmax.f32 %v2719_v48, 0.0 }
 0x2d0   : > { %v3285_v55 = vpack.c.bf16 %v3169_v52, %v3168_v51 }
 0x2d1   : > { %v3284_v56 = vpack.c.bf16 %v3167_v49, %v3166_v53  ;;  %v6316_v28 = vpop.f32.mrb[116].mxu0  ;;  %v7259_v53 = vld [vmem:[%s8462_s5 + $0x20] sm:$0xff]  }
 0x2d2   : > { %v2740_v58 = vadd.f32 %v6316_v28, %v7861_v26  ;;  %v2731_v13 = vpop.f32.mrb[117].mxu0  ;;  %6570 = vmatprep.subr.bf16.mxu0 %v7259_v53 }
 0x2d3   : > { %v2732_v50 = vadd.f32 %v2731_v13, %v7861_v26  ;;  %v6317_v16 = vpop.f32.mrb[118].mxu0  ;;  %6454 = vmatprep.mubr.bf16.mxu1 %v3284_v56  ;;  %6571 = vmatpush3.bf16.msra.mxu0 %v7259_v53 }
 0x2d4   : > { %v2743_v46 = vadd.f32 %v6317_v16, %v7861_v26  ;;  %v2734_v41 = vpop.f32.mrb[119].mxu0  ;;  %6455 = vmatmul.mubr.bf16.gmra.mrb[184].mxu1 %v3285_v55  ;;  %v3172_v59 = vmax.f32 %v2740_v58, 0.0 }
 0x2d5   : > { %v2735_v14 = vadd.f32 %v2734_v41, %v7861_v26  ;;  %v3170_v24 = vmax.f32 %v2732_v50, 0.0 }
 0x2d6   : > { %v3173_v61 = vmax.f32 %v2743_v46, 0.0 }
 0x2d7   : > { %v3171_v7 = vmax.f32 %v2735_v14, 0.0 }
 0x2d8   : > { %v3287_v62 = vpack.c.bf16 %v3173_v61, %v3172_v59 }
 0x2d9   : > { %v3286_v63 = vpack.c.bf16 %v3171_v7, %v3170_v24  ;;  %v6320_v0 = vpop.f32.mrb[120].mxu0 }
 0x2da   : > { %v2756_v1 = vadd.f32 %v6320_v0, %v7861_v26  ;;  %v2747_v2 = vpop.f32.mrb[121].mxu0 }
 0x2db   : > { %v2748_v3 = vadd.f32 %v2747_v2, %v7861_v26  ;;  %v6321_v44 = vpop.f32.mrb[122].mxu0  ;;  %6458 = vmatprep.mubr.bf16.mxu1 %v3286_v63  ;;  %v7260_v2 = vld [vmem:[%s8462_s5 + $0x28] sm:$0xff]  }
 0x2dc   : > { %v2759_v4 = vadd.f32 %v6321_v44, %v7861_v26  ;;  %v2750_v5 = vpop.f32.mrb[123].mxu0  ;;  %6459 = vmatmul.mubr.bf16.gmra.mrb[188].mxu1 %v3287_v62  ;;  %v3176_v8 = vmax.f32 %v2756_v1, 0.0  ;;  %6572 = vmatprep.subr.bf16.mxu0 %v7260_v2 }
 0x2dd   : > { %v2751_v6 = vadd.f32 %v2750_v5, %v7861_v26  ;;  %v3174_v15 = vmax.f32 %v2748_v3, 0.0  ;;  %6573 = vmatpush3.bf16.msra.mxu0 %v7260_v2 }
 0x2de   : > { %v3177_v9 = vmax.f32 %v2759_v4, 0.0 }
 0x2df   : > { %v3175_v17 = vmax.f32 %v2751_v6, 0.0 }
 0x2e0   : > { %v3289_v60 = vpack.c.bf16 %v3177_v9, %v3176_v8  ;;  %v7261_v9 = vld [vmem:[%s8462_s5 + $0x30] sm:$0xff]  }
 0x2e1   : > { %v3288_v18 = vpack.c.bf16 %v3175_v17, %v3174_v15  ;;  %v6324_v39 = vpop.f32.mrb[124].mxu0  ;;  %6574 = vmatprep.subr.bf16.mxu0 %v7261_v9 }
 0x2e2   : > { %v2772_v20 = vadd.f32 %v6324_v39, %v7861_v26  ;;  %v2763_v21 = vpop.f32.mrb[125].mxu0  ;;  %6575 = vmatpush3.bf16.msra.mxu0 %v7261_v9 }
 0x2e3   : > { %v2764_v19 = vadd.f32 %v2763_v21, %v7861_v26  ;;  %v6325_v22 = vpop.f32.mrb[126].mxu0  ;;  %6462 = vmatprep.mubr.bf16.mxu1 %v3288_v18 }
 0x2e4   : > { %v2775_v23 = vadd.f32 %v6325_v22, %v7861_v26  ;;  %v2766_v25 = vpop.f32.mrb[127].mxu0  ;;  %6463 = vmatmul.mubr.bf16.gmra.mrb[192].mxu1 %v3289_v60  ;;  %v3180_v29 = vmax.f32 %v2772_v20, 0.0  ;;  %v7262_v22 = vld [vmem:[%s8462_s5 + $0x38] sm:$0xff]  }
 0x2e5   : > { %v2767_v27 = vadd.f32 %v2766_v25, %v7861_v26  ;;  %v3178_v31 = vmax.f32 %v2764_v19, 0.0  ;;  %6576 = vmatprep.subr.bf16.mxu0 %v7262_v22 }
 0x2e6   : > { %v3181_v30 = vmax.f32 %v2775_v23, 0.0  ;;  %6577 = vmatpush3.bf16.msra.mxu0 %v7262_v22 }
 0x2e7   : > { %v3179_v32 = vmax.f32 %v2767_v27, 0.0 }
 0x2e8   : > { %v3291_v11 = vpack.c.bf16 %v3181_v30, %v3180_v29 }
 0x2e9   : > { %v3290_v12 = vpack.c.bf16 %v3179_v32, %v3178_v31  ;;  %v6328_v33 = vpop.f32.mrb[128].mxu0 }
 0x2ea   : > { %v2788_v54 = vadd.f32 %v6328_v33, %v7861_v26  ;;  %v2779_v34 = vpop.f32.mrb[129].mxu0 }
 0x2eb   : > { %v2780_v35 = vadd.f32 %v2779_v34, %v7861_v26  ;;  %v6329_v36 = vpop.f32.mrb[130].mxu0  ;;  %6466 = vmatprep.mubr.bf16.mxu1 %v3290_v12 }
 0x2ec   : > { %v2791_v37 = vadd.f32 %v6329_v36, %v7861_v26  ;;  %v2782_v38 = vpop.f32.mrb[131].mxu0  ;;  %6467 = vmatmul.mubr.bf16.gmra.mrb[196].mxu1 %v3291_v11  ;;  %v3184_v45 = vmax.f32 %v2788_v54, 0.0 }
 0x2ed   : > { %v2783_v40 = vadd.f32 %v2782_v38, %v7861_v26  ;;  %v3182_v43 = vmax.f32 %v2780_v35, 0.0 }
 0x2ee   : > { %v3185_v42 = vmax.f32 %v2791_v37, 0.0 }
 0x2ef   : > { %v3183_v47 = vmax.f32 %v2783_v40, 0.0 }
 0x2f0   : > { %v3293_v48 = vpack.c.bf16 %v3185_v42, %v3184_v45 }
 0x2f1   : > { %v3292_v51 = vpack.c.bf16 %v3183_v47, %v3182_v43  ;;  %v6332_v52 = vpop.f32.mrb[132].mxu0 }
 0x2f2   : > { %v2804_v49 = vadd.f32 %v6332_v52, %v7861_v26  ;;  %v2795_v55 = vpop.f32.mrb[133].mxu0 }
 0x2f3   : > { %v2796_v56 = vadd.f32 %v2795_v55, %v7861_v26  ;;  %v6333_v28 = vpop.f32.mrb[134].mxu0  ;;  %6470 = vmatprep.mubr.bf16.mxu1 %v3292_v51 }
 0x2f4   : > { %v2807_v57 = vadd.f32 %v6333_v28, %v7861_v26  ;;  %v2798_v58 = vpop.f32.mrb[135].mxu0  ;;  %6471 = vmatmul.mubr.bf16.gmra.mrb[200].mxu1 %v3293_v48  ;;  %v3188_v50 = vmax.f32 %v2804_v49, 0.0 }
 0x2f5   : > { %v2799_v13 = vadd.f32 %v2798_v58, %v7861_v26  ;;  %v3186_v46 = vmax.f32 %v2796_v56, 0.0 }
 0x2f6   : > { %v3189_v16 = vmax.f32 %v2807_v57, 0.0 }
 0x2f7   : > { %v3187_v41 = vmax.f32 %v2799_v13, 0.0 }
 0x2f8   : > { %v3295_v14 = vpack.c.bf16 %v3189_v16, %v3188_v50 }
 0x2f9   : > { %v3294_v59 = vpack.c.bf16 %v3187_v41, %v3186_v46  ;;  %v6336_v61 = vpop.f32.mrb[136].mxu0 }
 0x2fa   : > { %v2820_v24 = vadd.f32 %v6336_v61, %v7861_v26  ;;  %v2811_v7 = vpop.f32.mrb[137].mxu0 }
 0x2fb   : > { %v2812_v62 = vadd.f32 %v2811_v7, %v7861_v26  ;;  %v6337_v63 = vpop.f32.mrb[138].mxu0  ;;  %6474 = vmatprep.mubr.bf16.mxu1 %v3294_v59 }
 0x2fc   : > { %v2823_v0 = vadd.f32 %v6337_v63, %v7861_v26  ;;  %v2814_v1 = vpop.f32.mrb[139].mxu0  ;;  %6475 = vmatmul.mubr.bf16.gmra.mrb[204].mxu1 %v3295_v14  ;;  %v3192_v44 = vmax.f32 %v2820_v24, 0.0 }
 0x2fd   : > { %v2815_v3 = vadd.f32 %v2814_v1, %v7861_v26  ;;  %v3190_v5 = vmax.f32 %v2812_v62, 0.0 }
 0x2fe   : > { %v3193_v4 = vmax.f32 %v2823_v0, 0.0 }
 0x2ff   : > { %v3191_v6 = vmax.f32 %v2815_v3, 0.0 }
 0x300   : > { %v3297_v8 = vpack.c.bf16 %v3193_v4, %v3192_v44 }
 0x301   : > { %v3296_v15 = vpack.c.bf16 %v3191_v6, %v3190_v5  ;;  %v6340_v17 = vpop.f32.mrb[140].mxu0 }
 0x302   : > { %v2836_v60 = vadd.f32 %v6340_v17, %v7861_v26  ;;  %v2827_v18 = vpop.f32.mrb[141].mxu0 }
 0x303   : > { %v2828_v39 = vadd.f32 %v2827_v18, %v7861_v26  ;;  %v6341_v20 = vpop.f32.mrb[142].mxu0  ;;  %6478 = vmatprep.mubr.bf16.mxu1 %v3296_v15 }
 0x304   : > { %v2839_v21 = vadd.f32 %v6341_v20, %v7861_v26  ;;  %v2830_v19 = vpop.f32.mrb[143].mxu0  ;;  %6479 = vmatmul.mubr.bf16.gmra.mrb[208].mxu1 %v3297_v8  ;;  %v3196_v25 = vmax.f32 %v2836_v60, 0.0 }
 0x305   : > { %v2831_v23 = vadd.f32 %v2830_v19, %v7861_v26  ;;  %v3194_v29 = vmax.f32 %v2828_v39, 0.0 }
 0x306   : > { %v3197_v27 = vmax.f32 %v2839_v21, 0.0 }
 0x307   : > { %v3195_v30 = vmax.f32 %v2831_v23, 0.0 }
 0x308   : > { %v3299_v31 = vpack.c.bf16 %v3197_v27, %v3196_v25 }
 0x309   : > { %v3298_v32 = vpack.c.bf16 %v3195_v30, %v3194_v29  ;;  %v6344_v11 = vpop.f32.mrb[144].mxu0 }
 0x30a   : > { %v2852_v12 = vadd.f32 %v6344_v11, %v7861_v26  ;;  %v2843_v33 = vpop.f32.mrb[145].mxu0 }
 0x30b   : > { %v2844_v54 = vadd.f32 %v2843_v33, %v7861_v26  ;;  %v6345_v34 = vpop.f32.mrb[146].mxu0  ;;  %6482 = vmatprep.mubr.bf16.mxu1 %v3298_v32 }
 0x30c   : > { %v2855_v35 = vadd.f32 %v6345_v34, %v7861_v26  ;;  %v2846_v36 = vpop.f32.mrb[147].mxu0  ;;  %6483 = vmatmul.mubr.bf16.gmra.mrb[212].mxu1 %v3299_v31  ;;  %v3200_v38 = vmax.f32 %v2852_v12, 0.0 }
 0x30d   : > { %v2847_v37 = vadd.f32 %v2846_v36, %v7861_v26  ;;  %v3198_v45 = vmax.f32 %v2844_v54, 0.0 }
 0x30e   : > { %v3201_v40 = vmax.f32 %v2855_v35, 0.0 }
 0x30f   : > { %v3199_v42 = vmax.f32 %v2847_v37, 0.0 }
 0x310   : > { %v3301_v43 = vpack.c.bf16 %v3201_v40, %v3200_v38 }
 0x311   : > { %v3300_v47 = vpack.c.bf16 %v3199_v42, %v3198_v45  ;;  %v6348_v48 = vpop.f32.mrb[148].mxu0 }
 0x312   : > { %v2868_v51 = vadd.f32 %v6348_v48, %v7861_v26  ;;  %v2859_v52 = vpop.f32.mrb[149].mxu0 }
 0x313   : > { %v2860_v53 = vadd.f32 %v2859_v52, %v7861_v26  ;;  %v6349_v49 = vpop.f32.mrb[150].mxu0  ;;  %6486 = vmatprep.mubr.bf16.mxu1 %v3300_v47 }
 0x314   : > { %v2871_v55 = vadd.f32 %v6349_v49, %v7861_v26  ;;  %v2862_v56 = vpop.f32.mrb[151].mxu0  ;;  %6487 = vmatmul.mubr.bf16.gmra.mrb[216].mxu1 %v3301_v43  ;;  %v3204_v57 = vmax.f32 %v2868_v51, 0.0 }
 0x315   : > { %v2863_v28 = vadd.f32 %v2862_v56, %v7861_v26  ;;  %v3202_v13 = vmax.f32 %v2860_v53, 0.0 }
 0x316   : > { %v3205_v58 = vmax.f32 %v2871_v55, 0.0 }
 0x317   : > { %v3203_v50 = vmax.f32 %v2863_v28, 0.0 }
 0x318   : > { %v3303_v16 = vpack.c.bf16 %v3205_v58, %v3204_v57 }
 0x319   : > { %v3302_v46 = vpack.c.bf16 %v3203_v50, %v3202_v13  ;;  %v6352_v41 = vpop.f32.mrb[152].mxu0 }
 0x31a   : > { %v2884_v14 = vadd.f32 %v6352_v41, %v7861_v26  ;;  %v2875_v59 = vpop.f32.mrb[153].mxu0 }
 0x31b   : > { %v2876_v61 = vadd.f32 %v2875_v59, %v7861_v26  ;;  %v6353_v24 = vpop.f32.mrb[154].mxu0  ;;  %6490 = vmatprep.mubr.bf16.mxu1 %v3302_v46 }
 0x31c   : > { %v2887_v7 = vadd.f32 %v6353_v24, %v7861_v26  ;;  %v2878_v62 = vpop.f32.mrb[155].mxu0  ;;  %6491 = vmatmul.mubr.bf16.gmra.mrb[220].mxu1 %v3303_v16  ;;  %v3208_v0 = vmax.f32 %v2884_v14, 0.0 }
 0x31d   : > { %v2879_v63 = vadd.f32 %v2878_v62, %v7861_v26  ;;  %v3206_v2 = vmax.f32 %v2876_v61, 0.0 }
 0x31e   : > { %v3209_v1 = vmax.f32 %v2887_v7, 0.0 }
 0x31f   : > { %v3207_v3 = vmax.f32 %v2879_v63, 0.0 }
 0x320   : > { %v3305_v44 = vpack.c.bf16 %v3209_v1, %v3208_v0 }
 0x321   : > { %v3304_v4 = vpack.c.bf16 %v3207_v3, %v3206_v2  ;;  %v6356_v5 = vpop.f32.mrb[156].mxu0 }
 0x322   : > { %v2900_v6 = vadd.f32 %v6356_v5, %v7861_v26  ;;  %v2891_v8 = vpop.f32.mrb[157].mxu0 }
 0x323   : > { %v2892_v9 = vadd.f32 %v2891_v8, %v7861_v26  ;;  %v6357_v15 = vpop.f32.mrb[158].mxu0  ;;  %6494 = vmatprep.mubr.bf16.mxu1 %v3304_v4 }
 0x324   : > { %v2903_v17 = vadd.f32 %v6357_v15, %v7861_v26  ;;  %v2894_v60 = vpop.f32.mrb[159].mxu0  ;;  %6495 = vmatmul.mubr.bf16.gmra.mrb[224].mxu1 %v3305_v44  ;;  %v3212_v39 = vmax.f32 %v2900_v6, 0.0 }
 0x325   : > { %v2895_v18 = vadd.f32 %v2894_v60, %v7861_v26  ;;  %v3210_v21 = vmax.f32 %v2892_v9, 0.0 }
 0x326   : > { %v3213_v20 = vmax.f32 %v2903_v17, 0.0 }
 0x327   : > { %v3211_v19 = vmax.f32 %v2895_v18, 0.0 }
 0x328   : > { %v3307_v22 = vpack.c.bf16 %v3213_v20, %v3212_v39 }
 0x329   : > { %v3306_v23 = vpack.c.bf16 %v3211_v19, %v3210_v21  ;;  %v6360_v25 = vpop.f32.mrb[160].mxu0 }
 0x32a   : > { %v2916_v27 = vadd.f32 %v6360_v25, %v7861_v26  ;;  %v2907_v29 = vpop.f32.mrb[161].mxu0 }
 0x32b   : > { %v2908_v30 = vadd.f32 %v2907_v29, %v7861_v26  ;;  %v6361_v31 = vpop.f32.mrb[162].mxu0  ;;  %6498 = vmatprep.mubr.bf16.mxu1 %v3306_v23 }
 0x32c   : > { %v2919_v32 = vadd.f32 %v6361_v31, %v7861_v26  ;;  %v2910_v11 = vpop.f32.mrb[163].mxu0  ;;  %6499 = vmatmul.mubr.bf16.gmra.mrb[228].mxu1 %v3307_v22  ;;  %v3216_v33 = vmax.f32 %v2916_v27, 0.0 }
 0x32d   : > { %v2911_v12 = vadd.f32 %v2910_v11, %v7861_v26  ;;  %v3214_v34 = vmax.f32 %v2908_v30, 0.0 }
 0x32e   : > { %v3217_v54 = vmax.f32 %v2919_v32, 0.0 }
 0x32f   : > { %v3215_v35 = vmax.f32 %v2911_v12, 0.0 }
 0x330   : > { %v3309_v36 = vpack.c.bf16 %v3217_v54, %v3216_v33 }
 0x331   : > { %v3308_v37 = vpack.c.bf16 %v3215_v35, %v3214_v34  ;;  %v6364_v38 = vpop.f32.mrb[164].mxu0 }
 0x332   : > { %v2932_v40 = vadd.f32 %v6364_v38, %v7861_v26  ;;  %v2923_v45 = vpop.f32.mrb[165].mxu0 }
 0x333   : > { %v2924_v42 = vadd.f32 %v2923_v45, %v7861_v26  ;;  %v6365_v43 = vpop.f32.mrb[166].mxu0  ;;  %6502 = vmatprep.mubr.bf16.mxu1 %v3308_v37 }
 0x334   : > { %v2935_v47 = vadd.f32 %v6365_v43, %v7861_v26  ;;  %v2926_v48 = vpop.f32.mrb[167].mxu0  ;;  %6503 = vmatmul.mubr.bf16.gmra.mrb[232].mxu1 %v3309_v36  ;;  %v3220_v52 = vmax.f32 %v2932_v40, 0.0 }
 0x335   : > { %v2927_v51 = vadd.f32 %v2926_v48, %v7861_v26  ;;  %v3218_v49 = vmax.f32 %v2924_v42, 0.0 }
 0x336   : > { %v3221_v53 = vmax.f32 %v2935_v47, 0.0 }
 0x337   : > { %v3219_v55 = vmax.f32 %v2927_v51, 0.0 }
 0x338   : > { %v3311_v56 = vpack.c.bf16 %v3221_v53, %v3220_v52 }
 0x339   : > { %v3310_v28 = vpack.c.bf16 %v3219_v55, %v3218_v49  ;;  %v6368_v57 = vpop.f32.mrb[168].mxu0 }
 0x33a   : > { %v2948_v58 = vadd.f32 %v6368_v57, %v7861_v26  ;;  %v2939_v13 = vpop.f32.mrb[169].mxu0 }
 0x33b   : > { %v2940_v50 = vadd.f32 %v2939_v13, %v7861_v26  ;;  %v6369_v16 = vpop.f32.mrb[170].mxu0  ;;  %6506 = vmatprep.mubr.bf16.mxu1 %v3310_v28 }
 0x33c   : > { %v2951_v46 = vadd.f32 %v6369_v16, %v7861_v26  ;;  %v2942_v41 = vpop.f32.mrb[171].mxu0  ;;  %6507 = vmatmul.mubr.bf16.gmra.mrb[236].mxu1 %v3311_v56  ;;  %v3224_v59 = vmax.f32 %v2948_v58, 0.0 }
 0x33d   : > { %v2943_v14 = vadd.f32 %v2942_v41, %v7861_v26  ;;  %v3222_v24 = vmax.f32 %v2940_v50, 0.0 }
 0x33e   : > { %v3225_v61 = vmax.f32 %v2951_v46, 0.0 }
 0x33f   : > { %v3223_v7 = vmax.f32 %v2943_v14, 0.0 }
 0x340   : > { %v3313_v62 = vpack.c.bf16 %v3225_v61, %v3224_v59 }
 0x341   : > { %v3312_v63 = vpack.c.bf16 %v3223_v7, %v3222_v24  ;;  %v6372_v0 = vpop.f32.mrb[172].mxu0 }
 0x342   : > { %v2964_v1 = vadd.f32 %v6372_v0, %v7861_v26  ;;  %v2955_v2 = vpop.f32.mrb[173].mxu0 }
 0x343   : > { %v2956_v3 = vadd.f32 %v2955_v2, %v7861_v26  ;;  %v6373_v44 = vpop.f32.mrb[174].mxu0  ;;  %6510 = vmatprep.mubr.bf16.mxu1 %v3312_v63 }
 0x344   : > { %v2967_v4 = vadd.f32 %v6373_v44, %v7861_v26  ;;  %v2958_v5 = vpop.f32.mrb[175].mxu0  ;;  %6511 = vmatmul.mubr.bf16.gmra.mrb[240].mxu1 %v3313_v62  ;;  %v3228_v8 = vmax.f32 %v2964_v1, 0.0 }
 0x345   : > { %v2959_v6 = vadd.f32 %v2958_v5, %v7861_v26  ;;  %v3226_v15 = vmax.f32 %v2956_v3, 0.0 }
 0x346   : > { %v3229_v9 = vmax.f32 %v2967_v4, 0.0 }
 0x347   : > { %v3227_v17 = vmax.f32 %v2959_v6, 0.0 }
 0x348   : > { %v3315_v60 = vpack.c.bf16 %v3229_v9, %v3228_v8 }
 0x349   : > { %v3314_v18 = vpack.c.bf16 %v3227_v17, %v3226_v15  ;;  %v6376_v39 = vpop.f32.mrb[176].mxu0 }
 0x34a   : > { %v2980_v20 = vadd.f32 %v6376_v39, %v7861_v26  ;;  %v2971_v21 = vpop.f32.mrb[177].mxu0 }
 0x34b   : > { %v2972_v19 = vadd.f32 %v2971_v21, %v7861_v26  ;;  %v6377_v22 = vpop.f32.mrb[178].mxu0  ;;  %6514 = vmatprep.mubr.bf16.mxu1 %v3314_v18 }
 0x34c   : > { %v2983_v23 = vadd.f32 %v6377_v22, %v7861_v26  ;;  %v2974_v25 = vpop.f32.mrb[179].mxu0  ;;  %6515 = vmatmul.mubr.bf16.gmra.mrb[244].mxu1 %v3315_v60  ;;  %v3232_v29 = vmax.f32 %v2980_v20, 0.0 }
 0x34d   : > { %v2975_v27 = vadd.f32 %v2974_v25, %v7861_v26  ;;  %v3230_v31 = vmax.f32 %v2972_v19, 0.0 }
 0x34e   : > { %v3233_v30 = vmax.f32 %v2983_v23, 0.0 }
 0x34f   : > { %v3231_v32 = vmax.f32 %v2975_v27, 0.0 }
 0x350   : > { %v3317_v11 = vpack.c.bf16 %v3233_v30, %v3232_v29 }
 0x351   : > { %v3316_v12 = vpack.c.bf16 %v3231_v32, %v3230_v31  ;;  %v6380_v33 = vpop.f32.mrb[180].mxu0 }
 0x352   : > { %v2996_v54 = vadd.f32 %v6380_v33, %v7861_v26  ;;  %v2987_v34 = vpop.f32.mrb[181].mxu0 }
 0x353   : > { %v2988_v35 = vadd.f32 %v2987_v34, %v7861_v26  ;;  %v6381_v36 = vpop.f32.mrb[182].mxu0  ;;  %6518 = vmatprep.mubr.bf16.mxu1 %v3316_v12 }
 0x354   : > { %v2999_v37 = vadd.f32 %v6381_v36, %v7861_v26  ;;  %v2990_v38 = vpop.f32.mrb[183].mxu0  ;;  %6519 = vmatmul.mubr.bf16.gmra.mrb[248].mxu1 %v3317_v11  ;;  %v3236_v45 = vmax.f32 %v2996_v54, 0.0 }
 0x355   : > { %v2991_v40 = vadd.f32 %v2990_v38, %v7861_v26  ;;  %v3234_v43 = vmax.f32 %v2988_v35, 0.0 }
 0x356   : > { %v3237_v42 = vmax.f32 %v2999_v37, 0.0 }
 0x357   : > { %v3235_v47 = vmax.f32 %v2991_v40, 0.0  ;;  %v3356_v40 = vsub.s32 3, %v7495_v10 }
 0x358   : > { %v3319_v48 = vpack.c.bf16 %v3237_v42, %v3236_v45 }
 0x359   : > { %v3318_v51 = vpack.c.bf16 %v3235_v47, %v3234_v43  ;;  %v6384_v52 = vpop.f32.mrb[184].mxu0 }
 0x35a   : > { %v3012_v53 = vadd.f32 %v6384_v52, %v7861_v26  ;;  %v3003_v49 = vpop.f32.mrb[185].mxu0 }
 0x35b   : > { %v3004_v55 = vadd.f32 %v3003_v49, %v7861_v26  ;;  %v6385_v56 = vpop.f32.mrb[186].mxu0  ;;  %6522 = vmatprep.mubr.bf16.mxu1 %v3318_v51  ;;  %v7264_v49 = vld [vmem:[%s8464_s7] sm:$0x1f] }
 0x35c   : > { %v3015_v28 = vadd.f32 %v6385_v56, %v7861_v26  ;;  %v3006_v57 = vpop.f32.mrb[187].mxu0  ;;  %6523 = vmatmul.mubr.bf16.gmra.mrb[252].mxu1 %v3319_v48  ;;  %v3240_v13 = vmax.f32 %v3012_v53, 0.0 }
 0x35d   : > { %v3007_v58 = vadd.f32 %v3006_v57, %v7861_v26  ;;  %v3238_v16 = vmax.f32 %v3004_v55, 0.0  ;;  %v8013_v55 = vrot.slane %v7264_v49, %v3356_v40 }
 0x35e   : > { %v3241_v50 = vmax.f32 %v3015_v28, 0.0 }
 0x35f   : > { %v3239_v46 = vmax.f32 %v3007_v58, 0.0 }
 0x360   : > { %v3321_v41 = vpack.c.bf16 %v3241_v50, %v3240_v13 }
 0x361   : > { %v3320_v14 = vpack.c.bf16 %v3239_v46, %v3238_v16  ;;  %v6388_v59 = vpop.f32.mrb[188].mxu0 }
 0x362   : > { %v3028_v61 = vadd.f32 %v6388_v59, %v7861_v26  ;;  %v3019_v24 = vpop.f32.mrb[189].mxu0 }
 0x363   : > { %v3020_v7 = vadd.f32 %v3019_v24, %v7861_v26  ;;  %v6389_v62 = vpop.f32.mrb[190].mxu0  ;;  %6526 = vmatprep.mubr.bf16.mxu1 %v3320_v14 }
 0x364   : > { %v3031_v63 = vadd.f32 %v6389_v62, %v7861_v26  ;;  %v3022_v0 = vpop.f32.mrb[191].mxu0  ;;  %6527 = vmatmul.mubr.bf16.gmra.mrb[0].mxu1 %v3321_v41  ;;  %v3244_v2 = vmax.f32 %v3028_v61, 0.0 }
 0x365   : > { %v3023_v1 = vadd.f32 %v3022_v0, %v7861_v26  ;;  %v3242_v44 = vmax.f32 %v3020_v7, 0.0 }
 0x366   : > { %v3245_v3 = vmax.f32 %v3031_v63, 0.0 }
 0x367   : > { %v3243_v4 = vmax.f32 %v3023_v1, 0.0 }
 0x368   : > { %v3323_v5 = vpack.c.bf16 %v3245_v3, %v3244_v2 }
 0x369   : > { %v3322_v6 = vpack.c.bf16 %v3243_v4, %v3242_v44  ;;  %v6392_v8 = vpop.f32.mrb[192].mxu0 }
 0x36a   : > { %v3044_v9 = vadd.f32 %v6392_v8, %v7861_v26  ;;  %v3035_v15 = vpop.f32.mrb[193].mxu0 }
 0x36b   : > { %v3036_v17 = vadd.f32 %v3035_v15, %v7861_v26  ;;  %v6393_v60 = vpop.f32.mrb[194].mxu0  ;;  %6530 = vmatprep.mubr.bf16.mxu1 %v3322_v6 }
 0x36c   : > { %v3047_v18 = vadd.f32 %v6393_v60, %v7861_v26  ;;  %v3038_v39 = vpop.f32.mrb[195].mxu0  ;;  %6531 = vmatmul.mubr.bf16.gmra.mrb[4].mxu1 %v3323_v5  ;;  %v3248_v21 = vmax.f32 %v3044_v9, 0.0 }
 0x36d   : > { %v3039_v20 = vadd.f32 %v3038_v39, %v7861_v26  ;;  %v3246_v22 = vmax.f32 %v3036_v17, 0.0 }
 0x36e   : > { %v3249_v19 = vmax.f32 %v3047_v18, 0.0 }
 0x36f   : > { %v3247_v23 = vmax.f32 %v3039_v20, 0.0 }
 0x370   : > { %v3325_v25 = vpack.c.bf16 %v3249_v19, %v3248_v21 }
 0x371   : > { %v3324_v27 = vpack.c.bf16 %v3247_v23, %v3246_v22  ;;  %v6396_v29 = vpop.f32.mrb[196].mxu0 }
 0x372   : > { %v3060_v30 = vadd.f32 %v6396_v29, %v7861_v26  ;;  %v3051_v31 = vpop.f32.mrb[197].mxu0 }
 0x373   : > { %v3052_v32 = vadd.f32 %v3051_v31, %v7861_v26  ;;  %v6397_v11 = vpop.f32.mrb[198].mxu0  ;;  %6534 = vmatprep.mubr.bf16.mxu1 %v3324_v27 }
 0x374   : > { %v3063_v12 = vadd.f32 %v6397_v11, %v7861_v26  ;;  %v3054_v33 = vpop.f32.mrb[199].mxu0  ;;  %6535 = vmatmul.mubr.bf16.gmra.mrb[8].mxu1 %v3325_v25  ;;  %v3252_v34 = vmax.f32 %v3060_v30, 0.0 }
 0x375   : > { %v3055_v54 = vadd.f32 %v3054_v33, %v7861_v26  ;;  %v3250_v36 = vmax.f32 %v3052_v32, 0.0 }
 0x376   : > { %v3253_v35 = vmax.f32 %v3063_v12, 0.0 }
 0x377   : > { %v3251_v37 = vmax.f32 %v3055_v54, 0.0 }
 0x378   : > { %v3327_v38 = vpack.c.bf16 %v3253_v35, %v3252_v34 }
 0x379   : > { %v3326_v45 = vpack.c.bf16 %v3251_v37, %v3250_v36  ;;  %v6400_v42 = vpop.f32.mrb[200].mxu0 }
 0x37a   : > { %v3076_v43 = vadd.f32 %v6400_v42, %v7861_v26  ;;  %v3067_v47 = vpop.f32.mrb[201].mxu0 }
 0x37b   : > { %v3068_v48 = vadd.f32 %v3067_v47, %v7861_v26  ;;  %v6401_v51 = vpop.f32.mrb[202].mxu0  ;;  %6538 = vmatprep.mubr.bf16.mxu1 %v3326_v45 }
 0x37c   : > { %v3079_v52 = vadd.f32 %v6401_v51, %v7861_v26  ;;  %v3070_v53 = vpop.f32.mrb[203].mxu0  ;;  %6539 = vmatmul.mubr.bf16.gmra.mrb[12].mxu1 %v3327_v38  ;;  %v3256_v28 = vmax.f32 %v3076_v43, 0.0 }
 0x37d   : > { %v3071_v56 = vadd.f32 %v3070_v53, %v7861_v26  ;;  %v3254_v58 = vmax.f32 %v3068_v48, 0.0 }
 0x37e   : > { %v3257_v57 = vmax.f32 %v3079_v52, 0.0 }
 0x37f   : > { %v3255_v13 = vmax.f32 %v3071_v56, 0.0  ;;  %v6436_v50 = vpop.f32.mrb[164].mxu1 }
 0x380   : > { %v3329_v16 = vpack.c.bf16 %v3257_v57, %v3256_v28  ;;  %v3449_v46 = vadd.f32 %v6436_v50, %v8013_v55  ;;  %v3440_v41 = vpop.f32.mrb[165].mxu1 }
 0x381   : > { %v3328_v14 = vpack.c.bf16 %v3255_v13, %v3254_v58  ;;  %v3441_v59 = vadd.f32 %v3440_v41, %v8013_v55  ;;  %v6404_v61 = vpop.f32.mrb[204].mxu0  ;;  %v6437_v24 = vpop.f32.mrb[166].mxu1 }
 0x382   : > { %v3092_v7 = vadd.f32 %v6404_v61, %v7861_v26  ;;  %v3452_v62 = vadd.f32 %v6437_v24, %v8013_v55  ;;  %v3083_v63 = vpop.f32.mrb[205].mxu0  ;;  %v3443_v0 = vpop.f32.mrb[167].mxu1  ;;  %v3953_v44 = vmax.f32 %v3449_v46, 0.0 }
 0x383   : > { %v3084_v1 = vadd.f32 %v3083_v63, %v7861_v26  ;;  %v3444_v2 = vadd.f32 %v3443_v0, %v8013_v55  ;;  %v6405_v3 = vpop.f32.mrb[206].mxu0  ;;  %6542 = vmatprep.mubr.bf16.mxu1 %v3328_v14  ;;  %v3951_v8 = vmax.f32 %v3441_v59, 0.0 }
 0x384   : > { %v3954_v4 = vmax.f32 %v3452_v62, 0.0  ;;  %v3095_v5 = vadd.f32 %v6405_v3, %v7861_v26  ;;  %v3086_v6 = vpop.f32.mrb[207].mxu0  ;;  %6543 = vmatmul.mubr.bf16.gmra.mrb[16].mxu1 %v3329_v16  ;;  %v3260_v17 = vmax.f32 %v3092_v7, 0.0 }
 0x385   : > { %v3952_v9 = vmax.f32 %v3444_v2, 0.0  ;;  %v3087_v15 = vadd.f32 %v3086_v6, %v7861_v26  ;;  %v3258_v39 = vmax.f32 %v3084_v1, 0.0 }
 0x386   : > { %v4080_v60 = vpack.c.bf16 %v3954_v4, %v3953_v44  ;;  %v3261_v18 = vmax.f32 %v3095_v5, 0.0 }
 0x387   : > { %v4079_v20 = vpack.c.bf16 %v3952_v9, %v3951_v8  ;;  %v3259_v21 = vmax.f32 %v3087_v15, 0.0  ;;  %v6440_v19 = vpop.f32.mrb[168].mxu1 }
 0x388   : > { %v3331_v22 = vpack.c.bf16 %v3261_v18, %v3260_v17  ;;  %v3465_v23 = vadd.f32 %v6440_v19, %v8013_v55  ;;  %v3456_v25 = vpop.f32.mrb[169].mxu1 }
 0x389   : > { %v3330_v27 = vpack.c.bf16 %v3259_v21, %v3258_v39  ;;  %v3457_v29 = vadd.f32 %v3456_v25, %v8013_v55  ;;  %v6408_v30 = vpop.f32.mrb[208].mxu0  ;;  %v6441_v31 = vpop.f32.mrb[170].mxu1  ;;  %6578 = vmatprep.mubr.bf16.mxu0 %v4079_v20 }
 0x38a   : > { %v3108_v32 = vadd.f32 %v6408_v30, %v7861_v26  ;;  %v3468_v11 = vadd.f32 %v6441_v31, %v8013_v55  ;;  %v3099_v12 = vpop.f32.mrb[209].mxu0  ;;  %v3459_v33 = vpop.f32.mrb[171].mxu1  ;;  %6579 = vmatmul.mubr.bf16.vlgmr.msra.gmra.mrb[220].mxu0 %v4080_v60  ;;  %v3957_v36 = vmax.f32 %v3465_v23, 0.0 }
 0x38b   : > { %v3100_v54 = vadd.f32 %v3099_v12, %v7861_v26  ;;  %v3460_v34 = vadd.f32 %v3459_v33, %v8013_v55  ;;  %v6409_v35 = vpop.f32.mrb[210].mxu0  ;;  %6546 = vmatprep.mubr.bf16.mxu1 %v3330_v27  ;;  %v3955_v45 = vmax.f32 %v3457_v29, 0.0 }
 0x38c   : > { %v3958_v37 = vmax.f32 %v3468_v11, 0.0  ;;  %v3111_v38 = vadd.f32 %v6409_v35, %v7861_v26  ;;  %v3102_v40 = vpop.f32.mrb[211].mxu0  ;;  %6547 = vmatmul.mubr.bf16.gmra.mrb[20].mxu1 %v3331_v22  ;;  %v3264_v47 = vmax.f32 %v3108_v32, 0.0 }
 0x38d   : > { %v3956_v42 = vmax.f32 %v3460_v34, 0.0  ;;  %v3103_v43 = vadd.f32 %v3102_v40, %v7861_v26  ;;  %v3262_v52 = vmax.f32 %v3100_v54, 0.0 }
 0x38e   : > { %v4082_v48 = vpack.c.bf16 %v3958_v37, %v3957_v36  ;;  %v3265_v51 = vmax.f32 %v3111_v38, 0.0 }
 0x38f   : > { %v4081_v53 = vpack.c.bf16 %v3956_v42, %v3955_v45  ;;  %v3263_v49 = vmax.f32 %v3103_v43, 0.0  ;;  %v6444_v56 = vpop.f32.mrb[172].mxu1 }
 0x390   : > { %v3333_v28 = vpack.c.bf16 %v3265_v51, %v3264_v47  ;;  %v3481_v57 = vadd.f32 %v6444_v56, %v8013_v55  ;;  %v3472_v58 = vpop.f32.mrb[173].mxu1 }
 0x391   : > { %v3332_v13 = vpack.c.bf16 %v3263_v49, %v3262_v52  ;;  %v3473_v50 = vadd.f32 %v3472_v58, %v8013_v55  ;;  %v6412_v16 = vpop.f32.mrb[212].mxu0  ;;  %v6445_v46 = vpop.f32.mrb[174].mxu1  ;;  %6582 = vmatprep.mubr.bf16.mxu0 %v4081_v53 }
 0x392   : > { %v3124_v41 = vadd.f32 %v6412_v16, %v7861_v26  ;;  %v3484_v14 = vadd.f32 %v6445_v46, %v8013_v55  ;;  %v3115_v59 = vpop.f32.mrb[213].mxu0  ;;  %v3475_v61 = vpop.f32.mrb[175].mxu1  ;;  %6583 = vmatmul.mubr.bf16.gmra.mrb[224].mxu0 %v4082_v48  ;;  %v3961_v63 = vmax.f32 %v3481_v57, 0.0 }
 0x393   : > { %v3116_v24 = vadd.f32 %v3115_v59, %v7861_v26  ;;  %v3476_v7 = vadd.f32 %v3475_v61, %v8013_v55  ;;  %v6413_v62 = vpop.f32.mrb[214].mxu0  ;;  %6550 = vmatprep.mubr.bf16.mxu1 %v3332_v13  ;;  %v3959_v3 = vmax.f32 %v3473_v50, 0.0 }
 0x394   : > { %v3962_v0 = vmax.f32 %v3484_v14, 0.0  ;;  %v3127_v1 = vadd.f32 %v6413_v62, %v7861_v26  ;;  %v3118_v2 = vpop.f32.mrb[215].mxu0  ;;  %6551 = vmatmul.mubr.bf16.gmra.mrb[24].mxu1 %v3333_v28  ;;  %v3268_v5 = vmax.f32 %v3124_v41, 0.0 }
 0x395   : > { %v3960_v44 = vmax.f32 %v3476_v7, 0.0  ;;  %v3119_v4 = vadd.f32 %v3118_v2, %v7861_v26  ;;  %v3266_v9 = vmax.f32 %v3116_v24, 0.0 }
 0x396   : > { %v4084_v6 = vpack.c.bf16 %v3962_v0, %v3961_v63  ;;  %v3269_v8 = vmax.f32 %v3127_v1, 0.0 }
 0x397   : > { %v4083_v15 = vpack.c.bf16 %v3960_v44, %v3959_v3  ;;  %v3267_v17 = vmax.f32 %v3119_v4, 0.0  ;;  %v6448_v60 = vpop.f32.mrb[176].mxu1 }
 0x398   : > { %v3335_v18 = vpack.c.bf16 %v3269_v8, %v3268_v5  ;;  %v3497_v39 = vadd.f32 %v6448_v60, %v8013_v55  ;;  %v3488_v20 = vpop.f32.mrb[177].mxu1 }
 0x399   : > { %v3334_v21 = vpack.c.bf16 %v3267_v17, %v3266_v9  ;;  %v3489_v19 = vadd.f32 %v3488_v20, %v8013_v55  ;;  %v6416_v22 = vpop.f32.mrb[216].mxu0  ;;  %v6449_v23 = vpop.f32.mrb[178].mxu1  ;;  %6586 = vmatprep.mubr.bf16.mxu0 %v4083_v15 }
 0x39a   : > { %v3140_v25 = vadd.f32 %v6416_v22, %v7861_v26  ;;  %v3500_v27 = vadd.f32 %v6449_v23, %v8013_v55  ;;  %v3131_v29 = vpop.f32.mrb[217].mxu0  ;;  %v3491_v30 = vpop.f32.mrb[179].mxu1  ;;  %6587 = vmatmul.mubr.bf16.gmra.mrb[228].mxu0 %v4084_v6  ;;  %v3965_v12 = vmax.f32 %v3497_v39, 0.0 }
 0x39b   : > { %v3132_v31 = vadd.f32 %v3131_v29, %v7861_v26  ;;  %v3492_v32 = vadd.f32 %v3491_v30, %v8013_v55  ;;  %v6417_v11 = vpop.f32.mrb[218].mxu0  ;;  %6554 = vmatprep.mubr.bf16.mxu1 %v3334_v21  ;;  %v3963_v35 = vmax.f32 %v3489_v19, 0.0 }
 0x39c   : > { %v3966_v33 = vmax.f32 %v3500_v27, 0.0  ;;  %v3143_v54 = vadd.f32 %v6417_v11, %v7861_v26  ;;  %v3134_v34 = vpop.f32.mrb[219].mxu0  ;;  %6555 = vmatmul.mubr.bf16.gmra.mrb[28].mxu1 %v3335_v18  ;;  %v3272_v38 = vmax.f32 %v3140_v25, 0.0 }
 0x39d   : > { %v3964_v36 = vmax.f32 %v3492_v32, 0.0  ;;  %v3135_v37 = vadd.f32 %v3134_v34, %v7861_v26  ;;  %v3270_v42 = vmax.f32 %v3132_v31, 0.0 }
 0x39e   : > { %v4086_v40 = vpack.c.bf16 %v3966_v33, %v3965_v12  ;;  %v3273_v45 = vmax.f32 %v3143_v54, 0.0 }
 0x39f   : > { %v4085_v43 = vpack.c.bf16 %v3964_v36, %v3963_v35  ;;  %v3271_v47 = vmax.f32 %v3135_v37, 0.0  ;;  %v6452_v48 = vpop.f32.mrb[180].mxu1 }
 0x3a0   : > { %v3337_v51 = vpack.c.bf16 %v3273_v45, %v3272_v38  ;;  %v3513_v52 = vadd.f32 %v6452_v48, %v8013_v55  ;;  %v3504_v53 = vpop.f32.mrb[181].mxu1 }
 0x3a1   : > { %v3336_v49 = vpack.c.bf16 %v3271_v47, %v3270_v42  ;;  %v3505_v56 = vadd.f32 %v3504_v53, %v8013_v55  ;;  %v6453_v28 = vpop.f32.mrb[182].mxu1  ;;  %6590 = vmatprep.mubr.bf16.mxu0 %v4085_v43 }
 0x3a2   : > { %v3516_v57 = vadd.f32 %v6453_v28, %v8013_v55  ;;  %v3507_v58 = vpop.f32.mrb[183].mxu1  ;;  %6591 = vmatmul.mubr.bf16.gmra.mrb[232].mxu0 %v4086_v40  ;;  %v3969_v13 = vmax.f32 %v3513_v52, 0.0 }
 0x3a3   : > { %v3508_v26 = vadd.f32 %v3507_v58, %v8013_v55  ;;  %6558 = vmatprep.mubr.bf16.mxu1 %v3336_v49  ;;  %v3967_v16 = vmax.f32 %v3505_v56, 0.0 }
 0x3a4   : > { %v3970_v50 = vmax.f32 %v3516_v57, 0.0  ;;  %6559 = vmatmul.mubr.bf16.gmra.mrb[32].mxu1 %v3337_v51 }
 0x3a5   : > { %v3968_v46 = vmax.f32 %v3508_v26, 0.0 }
 0x3a6   : > { %v4088_v41 = vpack.c.bf16 %v3970_v50, %v3969_v13 }
 0x3a7   : > { %v4087_v14 = vpack.c.bf16 %v3968_v46, %v3967_v16  ;;  %v6456_v59 = vpop.f32.mrb[184].mxu1 }
 0x3a8   : > { %v3529_v61 = vadd.f32 %v6456_v59, %v8013_v55  ;;  %v3520_v24 = vpop.f32.mrb[185].mxu1 }
 0x3a9   : > { %v3521_v7 = vadd.f32 %v3520_v24, %v8013_v55  ;;  %v6457_v62 = vpop.f32.mrb[186].mxu1  ;;  %6594 = vmatprep.mubr.bf16.mxu0 %v4087_v14 }
 0x3aa   : > { %v3532_v63 = vadd.f32 %v6457_v62, %v8013_v55  ;;  %v3523_v0 = vpop.f32.mrb[187].mxu1  ;;  %6595 = vmatmul.mubr.bf16.gmra.mrb[236].mxu0 %v4088_v41  ;;  %v3973_v2 = vmax.f32 %v3529_v61, 0.0 }
 0x3ab   : > { %v3524_v1 = vadd.f32 %v3523_v0, %v8013_v55  ;;  %v3971_v44 = vmax.f32 %v3521_v7, 0.0 }
 0x3ac   : > { %v3974_v3 = vmax.f32 %v3532_v63, 0.0 }
 0x3ad   : > { %v3972_v4 = vmax.f32 %v3524_v1, 0.0 }
 0x3ae   : > { %v4090_v5 = vpack.c.bf16 %v3974_v3, %v3973_v2 }
 0x3af   : > { %v4089_v6 = vpack.c.bf16 %v3972_v4, %v3971_v44  ;;  %v6460_v8 = vpop.f32.mrb[188].mxu1 }
 0x3b0   : > { %v3545_v9 = vadd.f32 %v6460_v8, %v8013_v55  ;;  %v3536_v15 = vpop.f32.mrb[189].mxu1 }
 0x3b1   : > { %v3537_v17 = vadd.f32 %v3536_v15, %v8013_v55  ;;  %v6461_v60 = vpop.f32.mrb[190].mxu1  ;;  %6598 = vmatprep.mubr.bf16.mxu0 %v4089_v6 }
 0x3b2   : > { %v3548_v18 = vadd.f32 %v6461_v60, %v8013_v55  ;;  %v3539_v39 = vpop.f32.mrb[191].mxu1  ;;  %6599 = vmatmul.mubr.bf16.gmra.mrb[240].mxu0 %v4090_v5  ;;  %v3977_v21 = vmax.f32 %v3545_v9, 0.0 }
 0x3b3   : > { %v3540_v20 = vadd.f32 %v3539_v39, %v8013_v55  ;;  %v3975_v22 = vmax.f32 %v3537_v17, 0.0 }
 0x3b4   : > { %v3978_v19 = vmax.f32 %v3548_v18, 0.0 }
 0x3b5   : > { %v3976_v23 = vmax.f32 %v3540_v20, 0.0 }
 0x3b6   : > { %v4092_v25 = vpack.c.bf16 %v3978_v19, %v3977_v21 }
 0x3b7   : > { %v4091_v27 = vpack.c.bf16 %v3976_v23, %v3975_v22  ;;  %v6464_v29 = vpop.f32.mrb[192].mxu1 }
 0x3b8   : > { %v3561_v30 = vadd.f32 %v6464_v29, %v8013_v55  ;;  %v3552_v31 = vpop.f32.mrb[193].mxu1 }
 0x3b9   : > { %v3553_v32 = vadd.f32 %v3552_v31, %v8013_v55  ;;  %v6465_v11 = vpop.f32.mrb[194].mxu1  ;;  %6602 = vmatprep.mubr.bf16.mxu0 %v4091_v27 }
 0x3ba   : > { %v3564_v12 = vadd.f32 %v6465_v11, %v8013_v55  ;;  %v3555_v33 = vpop.f32.mrb[195].mxu1  ;;  %6603 = vmatmul.mubr.bf16.gmra.mrb[244].mxu0 %v4092_v25  ;;  %v3981_v34 = vmax.f32 %v3561_v30, 0.0 }
 0x3bb   : > { %v3556_v54 = vadd.f32 %v3555_v33, %v8013_v55  ;;  %v3979_v36 = vmax.f32 %v3553_v32, 0.0 }
 0x3bc   : > { %v3982_v35 = vmax.f32 %v3564_v12, 0.0 }
 0x3bd   : > { %v3980_v37 = vmax.f32 %v3556_v54, 0.0 }
 0x3be   : > { %v4094_v38 = vpack.c.bf16 %v3982_v35, %v3981_v34 }
 0x3bf   : > { %v4093_v40 = vpack.c.bf16 %v3980_v37, %v3979_v36  ;;  %v6468_v45 = vpop.f32.mrb[196].mxu1 }
 0x3c0   : > { %v3577_v42 = vadd.f32 %v6468_v45, %v8013_v55  ;;  %v3568_v43 = vpop.f32.mrb[197].mxu1 }
 0x3c1   : > { %v3569_v47 = vadd.f32 %v3568_v43, %v8013_v55  ;;  %v6469_v48 = vpop.f32.mrb[198].mxu1  ;;  %6606 = vmatprep.mubr.bf16.mxu0 %v4093_v40 }
 0x3c2   : > { %v3580_v51 = vadd.f32 %v6469_v48, %v8013_v55  ;;  %v3571_v52 = vpop.f32.mrb[199].mxu1  ;;  %6607 = vmatmul.mubr.bf16.gmra.mrb[248].mxu0 %v4094_v38  ;;  %v3985_v49 = vmax.f32 %v3577_v42, 0.0 }
 0x3c3   : > { %v3572_v53 = vadd.f32 %v3571_v52, %v8013_v55  ;;  %v3983_v28 = vmax.f32 %v3569_v47, 0.0 }
 0x3c4   : > { %v3986_v56 = vmax.f32 %v3580_v51, 0.0 }
 0x3c5   : > { %v3984_v57 = vmax.f32 %v3572_v53, 0.0 }
 0x3c6   : > { %v4096_v58 = vpack.c.bf16 %v3986_v56, %v3985_v49 }
 0x3c7   : > { %v4095_v26 = vpack.c.bf16 %v3984_v57, %v3983_v28  ;;  %v6472_v13 = vpop.f32.mrb[200].mxu1 }
 0x3c8   : > { %v3593_v50 = vadd.f32 %v6472_v13, %v8013_v55  ;;  %v3584_v16 = vpop.f32.mrb[201].mxu1 }
 0x3c9   : > { %v3585_v46 = vadd.f32 %v3584_v16, %v8013_v55  ;;  %v6473_v41 = vpop.f32.mrb[202].mxu1  ;;  %6610 = vmatprep.mubr.bf16.mxu0 %v4095_v26 }
 0x3ca   : > { %v3596_v14 = vadd.f32 %v6473_v41, %v8013_v55  ;;  %v3587_v59 = vpop.f32.mrb[203].mxu1  ;;  %6611 = vmatmul.mubr.bf16.gmra.mrb[252].mxu0 %v4096_v58  ;;  %v3989_v24 = vmax.f32 %v3593_v50, 0.0 }
 0x3cb   : > { %v3588_v61 = vadd.f32 %v3587_v59, %v8013_v55  ;;  %v3987_v62 = vmax.f32 %v3585_v46, 0.0 }
 0x3cc   : > { %v3990_v7 = vmax.f32 %v3596_v14, 0.0 }
 0x3cd   : > { %v3988_v63 = vmax.f32 %v3588_v61, 0.0 }
 0x3ce   : > { %v4098_v0 = vpack.c.bf16 %v3990_v7, %v3989_v24 }
 0x3cf   : > { %v4097_v1 = vpack.c.bf16 %v3988_v63, %v3987_v62  ;;  %v6476_v2 = vpop.f32.mrb[204].mxu1 }
 0x3d0   : > { %v3609_v3 = vadd.f32 %v6476_v2, %v8013_v55  ;;  %v3600_v44 = vpop.f32.mrb[205].mxu1 }
 0x3d1   : > { %v3601_v4 = vadd.f32 %v3600_v44, %v8013_v55  ;;  %v6477_v5 = vpop.f32.mrb[206].mxu1  ;;  %6614 = vmatprep.mubr.bf16.mxu0 %v4097_v1 }
 0x3d2   : > { %v3612_v6 = vadd.f32 %v6477_v5, %v8013_v55  ;;  %v3603_v8 = vpop.f32.mrb[207].mxu1  ;;  %6615 = vmatmul.mubr.bf16.gmra.mrb[0].mxu0 %v4098_v0  ;;  %v3993_v15 = vmax.f32 %v3609_v3, 0.0 }
 0x3d3   : > { %v3604_v9 = vadd.f32 %v3603_v8, %v8013_v55  ;;  %v3991_v60 = vmax.f32 %v3601_v4, 0.0 }
 0x3d4   : > { %v3994_v17 = vmax.f32 %v3612_v6, 0.0 }
 0x3d5   : > { %v3992_v18 = vmax.f32 %v3604_v9, 0.0 }
 0x3d6   : > { %v4100_v39 = vpack.c.bf16 %v3994_v17, %v3993_v15 }
 0x3d7   : > { %v4099_v20 = vpack.c.bf16 %v3992_v18, %v3991_v60  ;;  %v6480_v21 = vpop.f32.mrb[208].mxu1 }
 0x3d8   : > { %v3625_v19 = vadd.f32 %v6480_v21, %v8013_v55  ;;  %v3616_v22 = vpop.f32.mrb[209].mxu1 }
 0x3d9   : > { %v3617_v23 = vadd.f32 %v3616_v22, %v8013_v55  ;;  %v6481_v25 = vpop.f32.mrb[210].mxu1  ;;  %6618 = vmatprep.mubr.bf16.mxu0 %v4099_v20 }
 0x3da   : > { %v3628_v27 = vadd.f32 %v6481_v25, %v8013_v55  ;;  %v3619_v29 = vpop.f32.mrb[211].mxu1  ;;  %6619 = vmatmul.mubr.bf16.gmra.mrb[4].mxu0 %v4100_v39  ;;  %v3997_v31 = vmax.f32 %v3625_v19, 0.0 }
 0x3db   : > { %v3620_v30 = vadd.f32 %v3619_v29, %v8013_v55  ;;  %v3995_v11 = vmax.f32 %v3617_v23, 0.0 }
 0x3dc   : > { %v3998_v32 = vmax.f32 %v3628_v27, 0.0 }
 0x3dd   : > { %v3996_v12 = vmax.f32 %v3620_v30, 0.0 }
 0x3de   : > { %v4102_v33 = vpack.c.bf16 %v3998_v32, %v3997_v31 }
 0x3df   : > { %v4101_v54 = vpack.c.bf16 %v3996_v12, %v3995_v11  ;;  %v6484_v34 = vpop.f32.mrb[212].mxu1 }
 0x3e0   : > { %v3641_v35 = vadd.f32 %v6484_v34, %v8013_v55  ;;  %v3632_v36 = vpop.f32.mrb[213].mxu1 }
 0x3e1   : > { %v3633_v37 = vadd.f32 %v3632_v36, %v8013_v55  ;;  %v6485_v38 = vpop.f32.mrb[214].mxu1  ;;  %6622 = vmatprep.mubr.bf16.mxu0 %v4101_v54 }
 0x3e2   : > { %v3644_v40 = vadd.f32 %v6485_v38, %v8013_v55  ;;  %v3635_v45 = vpop.f32.mrb[215].mxu1  ;;  %6623 = vmatmul.mubr.bf16.gmra.mrb[8].mxu0 %v4102_v33  ;;  %v4001_v43 = vmax.f32 %v3641_v35, 0.0 }
 0x3e3   : > { %v3636_v42 = vadd.f32 %v3635_v45, %v8013_v55  ;;  %v3999_v48 = vmax.f32 %v3633_v37, 0.0 }
 0x3e4   : > { %v4002_v47 = vmax.f32 %v3644_v40, 0.0 }
 0x3e5   : > { %v4000_v51 = vmax.f32 %v3636_v42, 0.0 }
 0x3e6   : > { %v4104_v52 = vpack.c.bf16 %v4002_v47, %v4001_v43 }
 0x3e7   : > { %v4103_v53 = vpack.c.bf16 %v4000_v51, %v3999_v48  ;;  %v6488_v49 = vpop.f32.mrb[216].mxu1 }
 0x3e8   : > { %v3657_v56 = vadd.f32 %v6488_v49, %v8013_v55  ;;  %v3648_v28 = vpop.f32.mrb[217].mxu1 }
 0x3e9   : > { %v3649_v57 = vadd.f32 %v3648_v28, %v8013_v55  ;;  %v6489_v58 = vpop.f32.mrb[218].mxu1  ;;  %6626 = vmatprep.mubr.bf16.mxu0 %v4103_v53 }
 0x3ea   : > { %v3660_v26 = vadd.f32 %v6489_v58, %v8013_v55  ;;  %v3651_v13 = vpop.f32.mrb[219].mxu1  ;;  %6627 = vmatmul.mubr.bf16.gmra.mrb[12].mxu0 %v4104_v52  ;;  %v4005_v16 = vmax.f32 %v3657_v56, 0.0 }
 0x3eb   : > { %v3652_v50 = vadd.f32 %v3651_v13, %v8013_v55  ;;  %v4003_v41 = vmax.f32 %v3649_v57, 0.0 }
 0x3ec   : > { %v4006_v46 = vmax.f32 %v3660_v26, 0.0 }
 0x3ed   : > { %v4004_v14 = vmax.f32 %v3652_v50, 0.0 }
 0x3ee   : > { %v4106_v59 = vpack.c.bf16 %v4006_v46, %v4005_v16 }
 0x3ef   : > { %v4105_v61 = vpack.c.bf16 %v4004_v14, %v4003_v41  ;;  %v6492_v24 = vpop.f32.mrb[220].mxu1 }
 0x3f0   : > { %v3673_v7 = vadd.f32 %v6492_v24, %v8013_v55  ;;  %v3664_v62 = vpop.f32.mrb[221].mxu1 }
 0x3f1   : > { %v3665_v63 = vadd.f32 %v3664_v62, %v8013_v55  ;;  %v6493_v0 = vpop.f32.mrb[222].mxu1  ;;  %6630 = vmatprep.mubr.bf16.mxu0 %v4105_v61 }
 0x3f2   : > { %v3676_v1 = vadd.f32 %v6493_v0, %v8013_v55  ;;  %v3667_v2 = vpop.f32.mrb[223].mxu1  ;;  %6631 = vmatmul.mubr.bf16.gmra.mrb[16].mxu0 %v4106_v59  ;;  %v4009_v44 = vmax.f32 %v3673_v7, 0.0 }
 0x3f3   : > { %v3668_v3 = vadd.f32 %v3667_v2, %v8013_v55  ;;  %v4007_v5 = vmax.f32 %v3665_v63, 0.0 }
 0x3f4   : > { %v4010_v4 = vmax.f32 %v3676_v1, 0.0 }
 0x3f5   : > { %v4008_v6 = vmax.f32 %v3668_v3, 0.0 }
 0x3f6   : > { %v4108_v8 = vpack.c.bf16 %v4010_v4, %v4009_v44 }
 0x3f7   : > { %v4107_v9 = vpack.c.bf16 %v4008_v6, %v4007_v5  ;;  %v6496_v15 = vpop.f32.mrb[224].mxu1 }
 0x3f8   : > { %v3689_v17 = vadd.f32 %v6496_v15, %v8013_v55  ;;  %v3680_v60 = vpop.f32.mrb[225].mxu1 }
 0x3f9   : > { %v3681_v18 = vadd.f32 %v3680_v60, %v8013_v55  ;;  %v6497_v39 = vpop.f32.mrb[226].mxu1  ;;  %6634 = vmatprep.mubr.bf16.mxu0 %v4107_v9 }
 0x3fa   : > { %v3692_v20 = vadd.f32 %v6497_v39, %v8013_v55  ;;  %v3683_v21 = vpop.f32.mrb[227].mxu1  ;;  %6635 = vmatmul.mubr.bf16.gmra.mrb[20].mxu0 %v4108_v8  ;;  %v4013_v22 = vmax.f32 %v3689_v17, 0.0 }
 0x3fb   : > { %v3684_v19 = vadd.f32 %v3683_v21, %v8013_v55  ;;  %v4011_v25 = vmax.f32 %v3681_v18, 0.0 }
 0x3fc   : > { %v4014_v23 = vmax.f32 %v3692_v20, 0.0 }
 0x3fd   : > { %v4012_v27 = vmax.f32 %v3684_v19, 0.0 }
 0x3fe   : > { %v4110_v29 = vpack.c.bf16 %v4014_v23, %v4013_v22 }
 0x3ff   : > { %v4109_v30 = vpack.c.bf16 %v4012_v27, %v4011_v25  ;;  %v6500_v31 = vpop.f32.mrb[228].mxu1 }
 0x400   : > { %v3705_v32 = vadd.f32 %v6500_v31, %v8013_v55  ;;  %v3696_v11 = vpop.f32.mrb[229].mxu1 }
 0x401   : > { %v3697_v12 = vadd.f32 %v3696_v11, %v8013_v55  ;;  %v6501_v33 = vpop.f32.mrb[230].mxu1  ;;  %6638 = vmatprep.mubr.bf16.mxu0 %v4109_v30 }
 0x402   : > { %v3708_v54 = vadd.f32 %v6501_v33, %v8013_v55  ;;  %v3699_v34 = vpop.f32.mrb[231].mxu1  ;;  %6639 = vmatmul.mubr.bf16.gmra.mrb[24].mxu0 %v4110_v29  ;;  %v4017_v36 = vmax.f32 %v3705_v32, 0.0 }
 0x403   : > { %v3700_v35 = vadd.f32 %v3699_v34, %v8013_v55  ;;  %v4015_v38 = vmax.f32 %v3697_v12, 0.0 }
 0x404   : > { %v4018_v37 = vmax.f32 %v3708_v54, 0.0 }
 0x405   : > { %v4016_v40 = vmax.f32 %v3700_v35, 0.0 }
 0x406   : > { %v4112_v45 = vpack.c.bf16 %v4018_v37, %v4017_v36 }
 0x407   : > { %v4111_v42 = vpack.c.bf16 %v4016_v40, %v4015_v38  ;;  %v6504_v43 = vpop.f32.mrb[232].mxu1 }
 0x408   : > { %v3721_v47 = vadd.f32 %v6504_v43, %v8013_v55  ;;  %v3712_v48 = vpop.f32.mrb[233].mxu1 }
 0x409   : > { %v3713_v51 = vadd.f32 %v3712_v48, %v8013_v55  ;;  %v6505_v52 = vpop.f32.mrb[234].mxu1  ;;  %6642 = vmatprep.mubr.bf16.mxu0 %v4111_v42 }
 0x40a   : > { %v3724_v53 = vadd.f32 %v6505_v52, %v8013_v55  ;;  %v3715_v49 = vpop.f32.mrb[235].mxu1  ;;  %6643 = vmatmul.mubr.bf16.gmra.mrb[28].mxu0 %v4112_v45  ;;  %v4021_v28 = vmax.f32 %v3721_v47, 0.0 }
 0x40b   : > { %v3716_v56 = vadd.f32 %v3715_v49, %v8013_v55  ;;  %v4019_v58 = vmax.f32 %v3713_v51, 0.0 }
 0x40c   : > { %v4022_v57 = vmax.f32 %v3724_v53, 0.0 }
 0x40d   : > { %v4020_v26 = vmax.f32 %v3716_v56, 0.0 }
 0x40e   : > { %v4114_v13 = vpack.c.bf16 %v4022_v57, %v4021_v28 }
 0x40f   : > { %v4113_v50 = vpack.c.bf16 %v4020_v26, %v4019_v58  ;;  %v6508_v16 = vpop.f32.mrb[236].mxu1 }
 0x410   : > { %v3737_v46 = vadd.f32 %v6508_v16, %v8013_v55  ;;  %v3728_v41 = vpop.f32.mrb[237].mxu1 }
 0x411   : > { %v3729_v14 = vadd.f32 %v3728_v41, %v8013_v55  ;;  %v6509_v59 = vpop.f32.mrb[238].mxu1  ;;  %6646 = vmatprep.mubr.bf16.mxu0 %v4113_v50 }
 0x412   : > { %v3740_v61 = vadd.f32 %v6509_v59, %v8013_v55  ;;  %v3731_v24 = vpop.f32.mrb[239].mxu1  ;;  %6647 = vmatmul.mubr.bf16.gmra.mrb[32].mxu0 %v4114_v13  ;;  %v4025_v62 = vmax.f32 %v3737_v46, 0.0 }
 0x413   : > { %v3732_v7 = vadd.f32 %v3731_v24, %v8013_v55  ;;  %v4023_v0 = vmax.f32 %v3729_v14, 0.0 }
 0x414   : > { %v4026_v63 = vmax.f32 %v3740_v61, 0.0 }
 0x415   : > { %v4024_v1 = vmax.f32 %v3732_v7, 0.0 }
 0x416   : > { %v4116_v2 = vpack.c.bf16 %v4026_v63, %v4025_v62 }
 0x417   : > { %v4115_v3 = vpack.c.bf16 %v4024_v1, %v4023_v0  ;;  %v6512_v44 = vpop.f32.mrb[240].mxu1 }
 0x418   : > { %v3753_v4 = vadd.f32 %v6512_v44, %v8013_v55  ;;  %v3744_v5 = vpop.f32.mrb[241].mxu1 }
 0x419   : > { %v3745_v6 = vadd.f32 %v3744_v5, %v8013_v55  ;;  %v6513_v8 = vpop.f32.mrb[242].mxu1  ;;  %6650 = vmatprep.mubr.bf16.mxu0 %v4115_v3 }
 0x41a   : > { %v3756_v9 = vadd.f32 %v6513_v8, %v8013_v55  ;;  %v3747_v15 = vpop.f32.mrb[243].mxu1  ;;  %6651 = vmatmul.mubr.bf16.gmra.mrb[36].mxu0 %v4116_v2  ;;  %v4029_v60 = vmax.f32 %v3753_v4, 0.0 }
 0x41b   : > { %v3748_v17 = vadd.f32 %v3747_v15, %v8013_v55  ;;  %v4027_v39 = vmax.f32 %v3745_v6, 0.0 }
 0x41c   : > { %v4030_v18 = vmax.f32 %v3756_v9, 0.0 }
 0x41d   : > { %v4028_v20 = vmax.f32 %v3748_v17, 0.0 }
 0x41e   : > { %v4118_v21 = vpack.c.bf16 %v4030_v18, %v4029_v60 }
 0x41f   : > { %v4117_v19 = vpack.c.bf16 %v4028_v20, %v4027_v39  ;;  %v6516_v22 = vpop.f32.mrb[244].mxu1 }
 0x420   : > { %v3769_v23 = vadd.f32 %v6516_v22, %v8013_v55  ;;  %v3760_v25 = vpop.f32.mrb[245].mxu1 }
 0x421   : > { %v3761_v27 = vadd.f32 %v3760_v25, %v8013_v55  ;;  %v6517_v29 = vpop.f32.mrb[246].mxu1  ;;  %6654 = vmatprep.mubr.bf16.mxu0 %v4117_v19 }
 0x422   : > { %v3772_v30 = vadd.f32 %v6517_v29, %v8013_v55  ;;  %v3763_v31 = vpop.f32.mrb[247].mxu1  ;;  %6655 = vmatmul.mubr.bf16.gmra.mrb[40].mxu0 %v4118_v21  ;;  %v4033_v11 = vmax.f32 %v3769_v23, 0.0 }
 0x423   : > { %v3764_v32 = vadd.f32 %v3763_v31, %v8013_v55  ;;  %v4031_v33 = vmax.f32 %v3761_v27, 0.0 }
 0x424   : > { %v4034_v12 = vmax.f32 %v3772_v30, 0.0 }
 0x425   : > { %v4032_v54 = vmax.f32 %v3764_v32, 0.0 }
 0x426   : > { %v4120_v34 = vpack.c.bf16 %v4034_v12, %v4033_v11 }
 0x427   : > { %v4119_v35 = vpack.c.bf16 %v4032_v54, %v4031_v33  ;;  %v6520_v36 = vpop.f32.mrb[248].mxu1 }
 0x428   : > { %v3785_v37 = vadd.f32 %v6520_v36, %v8013_v55  ;;  %v3776_v38 = vpop.f32.mrb[249].mxu1 }
 0x429   : > { %v3777_v40 = vadd.f32 %v3776_v38, %v8013_v55  ;;  %v6521_v45 = vpop.f32.mrb[250].mxu1  ;;  %6658 = vmatprep.mubr.bf16.mxu0 %v4119_v35 }
 0x42a   : > { %v3788_v42 = vadd.f32 %v6521_v45, %v8013_v55  ;;  %v3779_v43 = vpop.f32.mrb[251].mxu1  ;;  %6659 = vmatmul.mubr.bf16.gmra.mrb[44].mxu0 %v4120_v34  ;;  %v4037_v48 = vmax.f32 %v3785_v37, 0.0 }
 0x42b   : > { %v3780_v47 = vadd.f32 %v3779_v43, %v8013_v55  ;;  %v4035_v52 = vmax.f32 %v3777_v40, 0.0 }
 0x42c   : > { %v4038_v51 = vmax.f32 %v3788_v42, 0.0 }
 0x42d   : > { %v4036_v53 = vmax.f32 %v3780_v47, 0.0 }
 0x42e   : > { %v4122_v49 = vpack.c.bf16 %v4038_v51, %v4037_v48 }
 0x42f   : > { %v4121_v56 = vpack.c.bf16 %v4036_v53, %v4035_v52  ;;  %v6524_v28 = vpop.f32.mrb[252].mxu1 }
 0x430   : > { %v3801_v57 = vadd.f32 %v6524_v28, %v8013_v55  ;;  %v3792_v58 = vpop.f32.mrb[253].mxu1 }
 0x431   : > { %v3793_v26 = vadd.f32 %v3792_v58, %v8013_v55  ;;  %v6525_v13 = vpop.f32.mrb[254].mxu1  ;;  %6662 = vmatprep.mubr.bf16.mxu0 %v4121_v56 }
 0x432   : > { %v3804_v50 = vadd.f32 %v6525_v13, %v8013_v55  ;;  %v3795_v16 = vpop.f32.mrb[255].mxu1  ;;  %6663 = vmatmul.mubr.bf16.gmra.mrb[48].mxu0 %v4122_v49  ;;  %v4041_v41 = vmax.f32 %v3801_v57, 0.0 }
 0x433   : > { %v3796_v46 = vadd.f32 %v3795_v16, %v8013_v55  ;;  %v4039_v59 = vmax.f32 %v3793_v26, 0.0 }
 0x434   : > { %v4042_v14 = vmax.f32 %v3804_v50, 0.0 }
 0x435   : > { %v4040_v61 = vmax.f32 %v3796_v46, 0.0 }
 0x436   : > { %v4124_v24 = vpack.c.bf16 %v4042_v14, %v4041_v41 }
 0x437   : > { %v4123_v7 = vpack.c.bf16 %v4040_v61, %v4039_v59  ;;  %v6528_v62 = vpop.f32.mrb[0].mxu1 }
 0x438   : > { %v3817_v63 = vadd.f32 %v6528_v62, %v8013_v55  ;;  %v3808_v0 = vpop.f32.mrb[1].mxu1 }
 0x439   : > { %v3809_v1 = vadd.f32 %v3808_v0, %v8013_v55  ;;  %v6529_v2 = vpop.f32.mrb[2].mxu1  ;;  %6666 = vmatprep.mubr.bf16.mxu0 %v4123_v7 }
 0x43a   : > { %v3820_v3 = vadd.f32 %v6529_v2, %v8013_v55  ;;  %v3811_v44 = vpop.f32.mrb[3].mxu1  ;;  %6667 = vmatmul.mubr.bf16.gmra.mrb[52].mxu0 %v4124_v24  ;;  %v4045_v5 = vmax.f32 %v3817_v63, 0.0 }
 0x43b   : > { %v3812_v4 = vadd.f32 %v3811_v44, %v8013_v55  ;;  %v4043_v8 = vmax.f32 %v3809_v1, 0.0 }
 0x43c   : > { %v4046_v6 = vmax.f32 %v3820_v3, 0.0 }
 0x43d   : > { %v4044_v9 = vmax.f32 %v3812_v4, 0.0 }
 0x43e   : > { %v4126_v15 = vpack.c.bf16 %v4046_v6, %v4045_v5 }
 0x43f   : > { %v4125_v17 = vpack.c.bf16 %v4044_v9, %v4043_v8  ;;  %v6532_v60 = vpop.f32.mrb[4].mxu1 }
 0x440   : > { %v3833_v18 = vadd.f32 %v6532_v60, %v8013_v55  ;;  %v3824_v39 = vpop.f32.mrb[5].mxu1 }
 0x441   : > { %v3825_v20 = vadd.f32 %v3824_v39, %v8013_v55  ;;  %v6533_v21 = vpop.f32.mrb[6].mxu1  ;;  %6670 = vmatprep.mubr.bf16.mxu0 %v4125_v17 }
 0x442   : > { %v3836_v19 = vadd.f32 %v6533_v21, %v8013_v55  ;;  %v3827_v22 = vpop.f32.mrb[7].mxu1  ;;  %6671 = vmatmul.mubr.bf16.gmra.mrb[56].mxu0 %v4126_v15  ;;  %v4049_v25 = vmax.f32 %v3833_v18, 0.0 }
 0x443   : > { %v3828_v23 = vadd.f32 %v3827_v22, %v8013_v55  ;;  %v4047_v29 = vmax.f32 %v3825_v20, 0.0 }
 0x444   : > { %v4050_v27 = vmax.f32 %v3836_v19, 0.0 }
 0x445   : > { %v4048_v30 = vmax.f32 %v3828_v23, 0.0 }
 0x446   : > { %v4128_v31 = vpack.c.bf16 %v4050_v27, %v4049_v25 }
 0x447   : > { %v4127_v32 = vpack.c.bf16 %v4048_v30, %v4047_v29  ;;  %v6536_v11 = vpop.f32.mrb[8].mxu1 }
 0x448   : > { %v3849_v12 = vadd.f32 %v6536_v11, %v8013_v55  ;;  %v3840_v33 = vpop.f32.mrb[9].mxu1 }
 0x449   : > { %v3841_v54 = vadd.f32 %v3840_v33, %v8013_v55  ;;  %v6537_v34 = vpop.f32.mrb[10].mxu1  ;;  %6674 = vmatprep.mubr.bf16.mxu0 %v4127_v32 }
 0x44a   : > { %v3852_v35 = vadd.f32 %v6537_v34, %v8013_v55  ;;  %v3843_v36 = vpop.f32.mrb[11].mxu1  ;;  %6675 = vmatmul.mubr.bf16.gmra.mrb[60].mxu0 %v4128_v31  ;;  %v4053_v38 = vmax.f32 %v3849_v12, 0.0 }
 0x44b   : > { %v3844_v37 = vadd.f32 %v3843_v36, %v8013_v55  ;;  %v4051_v45 = vmax.f32 %v3841_v54, 0.0 }
 0x44c   : > { %v4054_v40 = vmax.f32 %v3852_v35, 0.0 }
 0x44d   : > { %v4052_v42 = vmax.f32 %v3844_v37, 0.0 }
 0x44e   : > { %v4130_v43 = vpack.c.bf16 %v4054_v40, %v4053_v38 }
 0x44f   : > { %v4129_v47 = vpack.c.bf16 %v4052_v42, %v4051_v45  ;;  %v6540_v48 = vpop.f32.mrb[12].mxu1 }
 0x450   : > { %v3865_v51 = vadd.f32 %v6540_v48, %v8013_v55  ;;  %v3856_v52 = vpop.f32.mrb[13].mxu1 }
 0x451   : > { %v3857_v53 = vadd.f32 %v3856_v52, %v8013_v55  ;;  %v6541_v49 = vpop.f32.mrb[14].mxu1  ;;  %6678 = vmatprep.mubr.bf16.mxu0 %v4129_v47 }
 0x452   : > { %v3868_v56 = vadd.f32 %v6541_v49, %v8013_v55  ;;  %v3859_v28 = vpop.f32.mrb[15].mxu1  ;;  %6679 = vmatmul.mubr.bf16.gmra.mrb[64].mxu0 %v4130_v43  ;;  %v4057_v58 = vmax.f32 %v3865_v51, 0.0 }
 0x453   : > { %v3860_v57 = vadd.f32 %v3859_v28, %v8013_v55  ;;  %v4055_v13 = vmax.f32 %v3857_v53, 0.0 }
 0x454   : > { %v4058_v26 = vmax.f32 %v3868_v56, 0.0 }
 0x455   : > { %v4056_v50 = vmax.f32 %v3860_v57, 0.0 }
 0x456   : > { %v4132_v16 = vpack.c.bf16 %v4058_v26, %v4057_v58 }
 0x457   : > { %v4131_v46 = vpack.c.bf16 %v4056_v50, %v4055_v13  ;;  %v6544_v41 = vpop.f32.mrb[16].mxu1 }
 0x458   : > { %v3881_v14 = vadd.f32 %v6544_v41, %v8013_v55  ;;  %v3872_v59 = vpop.f32.mrb[17].mxu1  ;;  %v4161_v41 = vsub.s32 4, %v7495_v10 }
 0x459   : > { %v3873_v61 = vadd.f32 %v3872_v59, %v8013_v55  ;;  %v6545_v24 = vpop.f32.mrb[18].mxu1  ;;  %6682 = vmatprep.mubr.bf16.mxu0 %v4131_v46 }
 0x45a   : > { %v3884_v7 = vadd.f32 %v6545_v24, %v8013_v55  ;;  %v3875_v62 = vpop.f32.mrb[19].mxu1  ;;  %6683 = vmatmul.mubr.bf16.gmra.mrb[68].mxu0 %v4132_v16  ;;  %v4061_v0 = vmax.f32 %v3881_v14, 0.0 }
 0x45b   : > { %v3876_v63 = vadd.f32 %v3875_v62, %v8013_v55  ;;  %v4059_v2 = vmax.f32 %v3873_v61, 0.0 }
 0x45c   : > { %v4062_v1 = vmax.f32 %v3884_v7, 0.0 }
 0x45d   : > { %v4060_v3 = vmax.f32 %v3876_v63, 0.0  ;;  %v8144_v44 = vpop.f32.mrb[220].mxu0 }
 0x45e   : > { %v4134_v4 = vpack.c.bf16 %v4062_v1, %v4061_v0  ;;  %v8146_v5 = vpop.f32.mrb[221].mxu0 }
 0x45f   : > { %v4133_v6 = vpack.c.bf16 %v4060_v3, %v4059_v2  ;;  %v6548_v8 = vpop.f32.mrb[20].mxu1  ;;  %v8148_v9 = vpop.f32.mrb[222].mxu0  ;;  %v7265_v3 = vld [vmem:[%s8464_s7] sm:$0x1f] }
 0x460   : > { %v3897_v15 = vadd.f32 %v6548_v8, %v8013_v55  ;;  %v3888_v17 = vpop.f32.mrb[21].mxu1  ;;  %v8151_v60 = vpop.f32.mrb[223].mxu0 }
 0x461   : > { %v3889_v18 = vadd.f32 %v3888_v17, %v8013_v55  ;;  %v6549_v39 = vpop.f32.mrb[22].mxu1  ;;  %6686 = vmatprep.mubr.bf16.mxu0 %v4133_v6 }
 0x462   : > { %v3900_v20 = vadd.f32 %v6549_v39, %v8013_v55  ;;  %v3891_v21 = vpop.f32.mrb[23].mxu1  ;;  %6687 = vmatmul.mubr.bf16.gmra.mrb[72].mxu0 %v4134_v4  ;;  %v4065_v22 = vmax.f32 %v3897_v15, 0.0  ;;  %v8190_v4 = vrot.slane %v7265_v3, %v4161_v41 }
 0x463   : > { %v3892_v19 = vadd.f32 %v3891_v21, %v8013_v55  ;;  %v4063_v25 = vmax.f32 %v3889_v18, 0.0 }
 0x464   : > { %v4066_v23 = vmax.f32 %v3900_v20, 0.0  ;;  %v4254_v21 = vadd.f32 %v8144_v44, %v8190_v4 }
 0x465   : > { %v4064_v27 = vmax.f32 %v3892_v19, 0.0  ;;  %v8156_v29 = vpop.f32.mrb[224].mxu0 }
 0x466   : > { %v4136_v30 = vpack.c.bf16 %v4066_v23, %v4065_v22  ;;  %v8158_v31 = vpop.f32.mrb[225].mxu0  ;;  %v4246_v23 = vadd.f32 %v8146_v5, %v8190_v4 }
 0x467   : > { %v4135_v32 = vpack.c.bf16 %v4064_v27, %v4063_v25  ;;  %v6552_v11 = vpop.f32.mrb[24].mxu1  ;;  %v8160_v12 = vpop.f32.mrb[226].mxu0 }
 0x468   : > { %v3913_v33 = vadd.f32 %v6552_v11, %v8013_v55  ;;  %v3904_v54 = vpop.f32.mrb[25].mxu1  ;;  %v8163_v34 = vpop.f32.mrb[227].mxu0 }
 0x469   : > { %v3905_v35 = vadd.f32 %v3904_v54, %v8013_v55  ;;  %v6553_v36 = vpop.f32.mrb[26].mxu1  ;;  %6690 = vmatprep.mubr.bf16.mxu0 %v4135_v32  ;;  %v4257_v32 = vadd.f32 %v8148_v9, %v8190_v4 }
 0x46a   : > { %v3916_v37 = vadd.f32 %v6553_v36, %v8013_v55  ;;  %v3907_v38 = vpop.f32.mrb[27].mxu1  ;;  %6691 = vmatmul.mubr.bf16.gmra.mrb[76].mxu0 %v4136_v30  ;;  %v4069_v45 = vmax.f32 %v3913_v33, 0.0 }
 0x46b   : > { %v3908_v40 = vadd.f32 %v3907_v38, %v8013_v55  ;;  %v4067_v43 = vmax.f32 %v3905_v35, 0.0 }
 0x46c   : > { %v4070_v42 = vmax.f32 %v3916_v37, 0.0  ;;  %v4758_v37 = vmax.f32 %v4254_v21, 0.0 }
 0x46d   : > { %v4068_v47 = vmax.f32 %v3908_v40, 0.0  ;;  %v8168_v48 = vpop.f32.mrb[228].mxu0 }
 0x46e   : > { %v4138_v51 = vpack.c.bf16 %v4070_v42, %v4069_v45  ;;  %v8170_v52 = vpop.f32.mrb[229].mxu0  ;;  %v4756_v45 = vmax.f32 %v4246_v23, 0.0 }
 0x46f   : > { %v4137_v53 = vpack.c.bf16 %v4068_v47, %v4067_v43  ;;  %v6556_v49 = vpop.f32.mrb[28].mxu1  ;;  %v8172_v56 = vpop.f32.mrb[230].mxu0  ;;  %v4759_v43 = vmax.f32 %v4257_v32, 0.0 }
 0x470   : > { %v3929_v28 = vadd.f32 %v6556_v49, %v8013_v55  ;;  %v3920_v57 = vpop.f32.mrb[29].mxu1  ;;  %v8175_v58 = vpop.f32.mrb[231].mxu0 }
 0x471   : > { %v3921_v26 = vadd.f32 %v3920_v57, %v8013_v55  ;;  %v6557_v13 = vpop.f32.mrb[30].mxu1  ;;  %6694 = vmatprep.mubr.bf16.mxu0 %v4137_v53 }
 0x472   : > { %v3932_v50 = vadd.f32 %v6557_v13, %v8013_v55  ;;  %v3923_v16 = vpop.f32.mrb[31].mxu1  ;;  %6695 = vmatmul.mubr.bf16.gmra.mrb[80].mxu0 %v4138_v51  ;;  %v4073_v14 = vmax.f32 %v3929_v28, 0.0  ;;  %v4270_v28 = vadd.f32 %v8156_v29, %v8190_v4 }
 0x473   : > { %v3924_v46 = vadd.f32 %v3923_v16, %v8013_v55  ;;  %v4071_v61 = vmax.f32 %v3921_v26, 0.0  ;;  %v4262_v26 = vadd.f32 %v8158_v31, %v8190_v4  ;;  %v4273_v16 = vadd.f32 %v8160_v12, %v8190_v4 }
 0x474   : > { %v4074_v59 = vmax.f32 %v3932_v50, 0.0  ;;  %v4762_v29 = vmax.f32 %v4270_v28, 0.0 }
 0x475   : > { %v4072_v24 = vmax.f32 %v3924_v46, 0.0  ;;  %v8181_v7 = vpop.f32.mrb[232].mxu0  ;;  %v4763_v12 = vmax.f32 %v4273_v16, 0.0 }
 0x476   : > { %v4140_v62 = vpack.c.bf16 %v4074_v59, %v4073_v14  ;;  %v8183_v63 = vpop.f32.mrb[233].mxu0  ;;  %v4265_v14 = vadd.f32 %v8163_v34, %v8190_v4  ;;  %v4286_v34 = vadd.f32 %v8168_v48, %v8190_v4 }
 0x477   : > { %v4139_v0 = vpack.c.bf16 %v4072_v24, %v4071_v61  ;;  %v6560_v1 = vpop.f32.mrb[32].mxu1  ;;  %v8185_v2 = vpop.f32.mrb[234].mxu0 }
 0x478   : > { %v3945_v10 = vadd.f32 %v6560_v1, %v8013_v55  ;;  %v3936_v6 = vpop.f32.mrb[33].mxu1  ;;  %v8193_v8 = vpop.f32.mrb[235].mxu0  ;;  %v4766_v48 = vmax.f32 %v4286_v34, 0.0 }
 0x479   : > { %v3937_v15 = vadd.f32 %v3936_v6, %v8013_v55  ;;  %v6561_v17 = vpop.f32.mrb[34].mxu1  ;;  %6698 = vmatprep.mubr.bf16.mxu0 %v4139_v0  ;;  %v4760_v0 = vmax.f32 %v4262_v26, 0.0 }
 0x47a   : > { %v3948_v18 = vadd.f32 %v6561_v17, %v8013_v55  ;;  %v3939_v39 = vpop.f32.mrb[35].mxu1  ;;  %6699 = vmatmul.mubr.bf16.gmra.mrb[84].mxu0 %v4140_v62  ;;  %v4077_v19 = vmax.f32 %v3945_v10, 0.0 }
 0x47b   : > { %v3940_v20 = vadd.f32 %v3939_v39, %v8013_v55  ;;  %v4075_v25 = vmax.f32 %v3937_v15, 0.0  ;;  %v4249_v55 = vadd.f32 %v8151_v60, %v8190_v4  ;;  %v4761_v15 = vmax.f32 %v4265_v14, 0.0 }
 0x47c   : > { %v4078_v22 = vmax.f32 %v3948_v18, 0.0 }
 0x47d   : > { %v4076_v27 = vmax.f32 %v3940_v20, 0.0  ;;  %v6596_v30 = vpop.f32.mrb[236].mxu0  ;;  %v4757_v53 = vmax.f32 %v4249_v55, 0.0  ;;  %v4278_v20 = vadd.f32 %v8170_v52, %v8190_v4 }
 0x47e   : > { %v4142_v11 = vpack.c.bf16 %v4078_v22, %v4077_v19  ;;  %v4318_v33 = vadd.f32 %v6596_v30, %v8190_v4  ;;  %v4309_v54 = vpop.f32.mrb[237].mxu0  ;;  %v4289_v22 = vadd.f32 %v8172_v56, %v8190_v4 }
 0x47f   : > { %v4141_v35 = vpack.c.bf16 %v4076_v27, %v4075_v25  ;;  %v4310_v44 = vadd.f32 %v4309_v54, %v8190_v4  ;;  %v6597_v36 = vpop.f32.mrb[238].mxu0  ;;  %v4281_v27 = vadd.f32 %v8175_v58, %v8190_v4  ;;  %v4764_v54 = vmax.f32 %v4278_v20, 0.0 }
 0x480   : > { %v4774_v38 = vmax.f32 %v4318_v33, 0.0  ;;  %v4321_v5 = vadd.f32 %v6597_v36, %v8190_v4  ;;  %v4312_v40 = vpop.f32.mrb[239].mxu0  ;;  %v4767_v56 = vmax.f32 %v4289_v22, 0.0  ;;  %v4302_v58 = vadd.f32 %v8181_v7, %v8190_v4 }
 0x481   : > { %v4772_v42 = vmax.f32 %v4310_v44, 0.0  ;;  %v4313_v9 = vadd.f32 %v4312_v40, %v8190_v4  ;;  %6702 = vmatprep.mubr.bf16.mxu0 %v4141_v35 }
 0x482   : > { %v4775_v47 = vmax.f32 %v4321_v5, 0.0  ;;  %6703 = vmatmul.mubr.bf16.gmra.mrb[88].mxu0 %v4142_v11  ;;  %v6721_v51 = vpack.i.bf16 %v4758_v37, %v4774_v38  ;;  %v4765_v37 = vmax.f32 %v4281_v27, 0.0  ;;  %v4770_v7 = vmax.f32 %v4302_v58, 0.0 }
 0x483   : > { %v4773_v60 = vmax.f32 %v4313_v9, 0.0  ;;  %v6717_v49 = vpack.i.bf16 %v4756_v45, %v4772_v42  ;;  %v4294_v45 = vadd.f32 %v8183_v63, %v8190_v4 }
 0x484   : > { %v6723_v57 = vpack.i.bf16 %v4759_v43, %v4775_v47  ;;  %v4305_v43 = vadd.f32 %v8185_v2, %v8190_v4 }
 0x485   : > { %v6600_v13 = vpop.f32.mrb[240].mxu0  ;;  %6718 = vxpose.xlu0.b32.start [1/16] %v6717_v49, 128  ;;  %v6719_v50 = vpack.i.bf16 %v4757_v53, %v4773_v60  ;;  %v4297_v53 = vadd.f32 %v8193_v8, %v8190_v4  ;;  %v4768_v26 = vmax.f32 %v4294_v45, 0.0 }
 0x486   : > { %v4334_v46 = vadd.f32 %v6600_v13, %v8190_v4  ;;  %v4325_v41 = vpop.f32.mrb[241].mxu0  ;;  %v4771_v2 = vmax.f32 %v4305_v43, 0.0 }
 0x487   : > { %v4326_v59 = vadd.f32 %v4325_v41, %v8190_v4  ;;  %v6601_v61 = vpop.f32.mrb[242].mxu0  ;;  %v4769_v41 = vmax.f32 %v4297_v53, 0.0 }
 0x488   : > { %v4778_v24 = vmax.f32 %v4334_v46, 0.0  ;;  %v4337_v62 = vadd.f32 %v6601_v61, %v8190_v4  ;;  %v4328_v31 = vpop.f32.mrb[243].mxu0 }
 0x489   : > { %v4776_v1 = vmax.f32 %v4326_v59, 0.0  ;;  %v4329_v3 = vadd.f32 %v4328_v31, %v8190_v4  ;;  %6720 = vxpose.xlu0.b32.cont [2/16] %v6719_v50, 128 }
 0x48a   : > { %v4779_v10 = vmax.f32 %v4337_v62, 0.0  ;;  %v6729_v6 = vpack.i.bf16 %v4762_v29, %v4778_v24 }
 0x48b   : > { %v4777_v17 = vmax.f32 %v4329_v3, 0.0  ;;  %v6725_v18 = vpack.i.bf16 %v4760_v0, %v4776_v1 }
 0x48c   : > { %v6731_v39 = vpack.i.bf16 %v4763_v12, %v4779_v10 }
 0x48d   : > { %v6604_v21 = vpop.f32.mrb[244].mxu0  ;;  %6722 = vxpose.xlu0.b32.cont [3/16] %v6721_v51, 128  ;;  %v6727_v19 = vpack.i.bf16 %v4761_v15, %v4777_v17 }
 0x48e   : > { %v4350_v23 = vadd.f32 %v6604_v21, %v8190_v4  ;;  %v4341_v25 = vpop.f32.mrb[245].mxu0 }
 0x48f   : > { %v4342_v30 = vadd.f32 %v4341_v25, %v8190_v4  ;;  %v6605_v32 = vpop.f32.mrb[246].mxu0 }
 0x490   : > { %v4782_v11 = vmax.f32 %v4350_v23, 0.0  ;;  %v4353_v33 = vadd.f32 %v6605_v32, %v8190_v4  ;;  %v4344_v52 = vpop.f32.mrb[247].mxu0 }
 0x491   : > { %v4780_v55 = vmax.f32 %v4342_v30, 0.0  ;;  %v4345_v35 = vadd.f32 %v4344_v52, %v8190_v4  ;;  %6724 = vxpose.xlu0.b32.cont [4/16] %v6723_v57, 128 }
 0x492   : > { %v4783_v44 = vmax.f32 %v4353_v33, 0.0  ;;  %v6737_v36 = vpack.i.bf16 %v4766_v48, %v4782_v11 }
 0x493   : > { %v4781_v38 = vmax.f32 %v4345_v35, 0.0  ;;  %v6733_v5 = vpack.i.bf16 %v4764_v54, %v4780_v55 }
 0x494   : > { %v6739_v40 = vpack.i.bf16 %v4767_v56, %v4783_v44 }
 0x495   : > { %v6608_v42 = vpop.f32.mrb[248].mxu0  ;;  %6726 = vxpose.xlu0.b32.cont [5/16] %v6725_v18, 128  ;;  %v6735_v9 = vpack.i.bf16 %v4765_v37, %v4781_v38 }
 0x496   : > { %v4366_v47 = vadd.f32 %v6608_v42, %v8190_v4  ;;  %v4357_v51 = vpop.f32.mrb[249].mxu0 }
 0x497   : > { %v4358_v60 = vadd.f32 %v4357_v51, %v8190_v4  ;;  %v6609_v49 = vpop.f32.mrb[250].mxu0 }
 0x498   : > { %v4786_v28 = vmax.f32 %v4366_v47, 0.0  ;;  %v4369_v57 = vadd.f32 %v6609_v49, %v8190_v4  ;;  %v4360_v63 = vpop.f32.mrb[251].mxu0 }
 0x499   : > { %v4784_v13 = vmax.f32 %v4358_v60, 0.0  ;;  %v4361_v50 = vadd.f32 %v4360_v63, %v8190_v4  ;;  %6728 = vxpose.xlu0.b32.cont [6/16] %v6727_v19, 128 }
 0x49a   : > { %v4787_v16 = vmax.f32 %v4369_v57, 0.0  ;;  %v6745_v46 = vpack.i.bf16 %v4770_v7, %v4786_v28 }
 0x49b   : > { %v4785_v14 = vmax.f32 %v4361_v50, 0.0  ;;  %v6741_v59 = vpack.i.bf16 %v4768_v26, %v4784_v13 }
 0x49c   : > { %v6747_v8 = vpack.i.bf16 %v4771_v2, %v4787_v16 }
 0x49d   : > { %6730 = vxpose.xlu0.b32.cont [7/16] %v6729_v6, 128  ;;  %v6743_v61 = vpack.i.bf16 %v4769_v41, %v4785_v14  ;;  %v6612_v29 = vpop.f32.mrb[252].mxu0 }
 0x49e   : > { %v4373_v24 = vpop.f32.mrb[253].mxu0  ;;  %v4382_v21 = vadd.f32 %v6612_v29, %v8190_v4 }
 0x49f   : > { %v6613_v62 = vpop.f32.mrb[254].mxu0  ;;  %v4374_v19 = vadd.f32 %v4373_v24, %v8190_v4 }
 0x4a0   : > { %v4376_v31 = vpop.f32.mrb[255].mxu0  ;;  %v4385_v23 = vadd.f32 %v6613_v62, %v8190_v4  ;;  %v4790_v11 = vmax.f32 %v4382_v21, 0.0 }
 0x4a1   : > { %6732 = vxpose.xlu0.b32.cont [8/16] %v6731_v39, 128  ;;  %v4377_v30 = vadd.f32 %v4376_v31, %v8190_v4  ;;  %v4788_v55 = vmax.f32 %v4374_v19, 0.0 }
 0x4a2   : > { %v4791_v44 = vmax.f32 %v4385_v23, 0.0 }
 0x4a3   : > { %v4789_v38 = vmax.f32 %v4377_v30, 0.0 }
 0x4a5   : > { %6734 = vxpose.xlu0.b32.cont [9/16] %v6733_v5, 128  ;;  %v6616_v0 = vpop.f32.mrb[0].mxu0 }
 0x4a6   : > { %v4389_v1 = vpop.f32.mrb[1].mxu0 }
 0x4a7   : > { %v6617_v3 = vpop.f32.mrb[2].mxu0  ;;  %v4390_v42 = vadd.f32 %v4389_v1, %v8190_v4 }
 0x4a8   : > { %v4392_v12 = vpop.f32.mrb[3].mxu0  ;;  %v4401_v47 = vadd.f32 %v6617_v3, %v8190_v4 }
 0x4a9   : > { %6736 = vxpose.xlu0.b32.cont [10/16] %v6735_v9, 128  ;;  %v4393_v60 = vadd.f32 %v4392_v12, %v8190_v4  ;;  %v4792_v13 = vmax.f32 %v4390_v42, 0.0 }
 0x4aa   : > { %v4795_v16 = vmax.f32 %v4401_v47, 0.0 }
 0x4ab   : > { %v4793_v14 = vmax.f32 %v4393_v60, 0.0 }
 0x4ad   : > { %6738 = vxpose.xlu0.b32.cont [11/16] %v6737_v36, 128  ;;  %v6620_v10 = vpop.f32.mrb[4].mxu0 }
 0x4ae   : > { %v4405_v15 = vpop.f32.mrb[5].mxu0 }
 0x4af   : > { %v8246_v17 = vpop.f32.mrb[6].mxu0  ;;  %v4406_v24 = vadd.f32 %v4405_v15, %v8190_v4 }
 0x4b0   : > { %v8248_v18 = vpop.f32.mrb[7].mxu0 }
 0x4b1   : > { %6740 = vxpose.xlu0.b32.cont [12/16] %v6739_v40, 128  ;;  %v4398_v40 = vadd.f32 %v6616_v0, %v8190_v4  ;;  %v4417_v0 = vadd.f32 %v8246_v17, %v8190_v4  ;;  %v4409_v12 = vadd.f32 %v8248_v18, %v8190_v4 }
 0x4b3   : > { %v4794_v28 = vmax.f32 %v4398_v40, 0.0  ;;  %v4799_v17 = vmax.f32 %v4417_v0, 0.0 }
 0x4b5   : > { %6742 = vxpose.xlu0.b32.cont [13/16] %v6741_v59, 128  ;;  %v8250_v6 = vpop.f32.mrb[8].mxu0 }
 0x4b6   : > { %v8252_v34 = vpop.f32.mrb[9].mxu0  ;;  %v4430_v18 = vadd.f32 %v8250_v6, %v8190_v4 }
 0x4b7   : > { %v8254_v39 = vpop.f32.mrb[10].mxu0 }
 0x4b8   : > { %v8256_v20 = vpop.f32.mrb[11].mxu0  ;;  %v4802_v6 = vmax.f32 %v4430_v18, 0.0 }
 0x4b9   : > { %6744 = vxpose.xlu0.b32.cont [14/16] %v6743_v61, 128  ;;  %v4414_v61 = vadd.f32 %v6620_v10, %v8190_v4 }
 0x4bd   : > { %6746 = vxpose.xlu0.b32.cont [15/16] %v6745_v46, 128  ;;  %v6628_v22 = vpop.f32.mrb[12].mxu0 }
 0x4be   : > { %v4446_v25 = vadd.f32 %v6628_v22, %v8190_v4  ;;  %v4437_v27 = vpop.f32.mrb[13].mxu0  ;;  %v4798_v22 = vmax.f32 %v4414_v61, 0.0 }
 0x4bf   : > { %v4438_v32 = vadd.f32 %v4437_v27, %v8190_v4  ;;  %v6629_v48 = vpop.f32.mrb[14].mxu0 }
 0x4c0   : > { %v4806_v33 = vmax.f32 %v4446_v25, 0.0  ;;  %v4449_v52 = vadd.f32 %v6629_v48, %v8190_v4  ;;  %v4440_v54 = vpop.f32.mrb[15].mxu0  ;;  %v4796_v25 = vmax.f32 %v4406_v24, 0.0 }
 0x4c1   : > { %6748 = vxpose.xlu0.b32.end [16/16] %v6747_v8, 128  ;;  %v4804_v35 = vmax.f32 %v4438_v32, 0.0  ;;  %v4441_v56 = vadd.f32 %v4440_v54, %v8190_v4 }
 0x4c2   : > { %v4807_v36 = vmax.f32 %v4449_v52, 0.0  ;;  %v6833_v37 = vpack.i.bf16 %v4790_v11, %v4806_v33  ;;  %v4797_v11 = vmax.f32 %v4409_v12, 0.0 }
 0x4c3   : > { %v4805_v5 = vmax.f32 %v4441_v56, 0.0  ;;  %v6829_v58 = vpack.i.bf16 %v4788_v55, %v4804_v35  ;;  %v4422_v55 = vadd.f32 %v8252_v34, %v8190_v4 }
 0x4c4   : > { %v6835_v45 = vpack.i.bf16 %v4791_v44, %v4807_v36  ;;  %v4433_v44 = vadd.f32 %v8254_v39, %v8190_v4 }
 0x4c5   : > { %6830 = vxpose.xlu1.b32.start [1/16] %v6829_v58, 128  ;;  %v6831_v9 = vpack.i.bf16 %v4789_v38, %v4805_v5  ;;  %v6632_v43 = vpop.f32.mrb[16].mxu0  ;;  %v4425_v38 = vadd.f32 %v8256_v20, %v8190_v4  ;;  %v4800_v42 = vmax.f32 %v4422_v55, 0.0 }
 0x4c6   : > { %v4462_v51 = vadd.f32 %v6632_v43, %v8190_v4  ;;  %v4453_v53 = vpop.f32.mrb[17].mxu0  ;;  %v4803_v39 = vmax.f32 %v4433_v44, 0.0 }
 0x4c7   : > { %v4454_v49 = vadd.f32 %v4453_v53, %v8190_v4  ;;  %v6633_v7 = vpop.f32.mrb[18].mxu0  ;;  %v4801_v53 = vmax.f32 %v4425_v38, 0.0 }
 0x4c8   : > { %v4810_v57 = vmax.f32 %v4462_v51, 0.0  ;;  %v4465_v63 = vadd.f32 %v6633_v7, %v8190_v4  ;;  %v4456_v26 = vpop.f32.mrb[19].mxu0 }
 0x4c9   : > { %6832 = vxpose.xlu1.b32.cont [2/16] %v6831_v9, 128  ;;  %v4808_v50 = vmax.f32 %v4454_v49, 0.0  ;;  %v4457_v2 = vadd.f32 %v4456_v26, %v8190_v4 }
 0x4ca   : > { %v4811_v46 = vmax.f32 %v4465_v63, 0.0  ;;  %v6841_v41 = vpack.i.bf16 %v4794_v28, %v4810_v57 }
 0x4cb   : > { %v4809_v59 = vmax.f32 %v4457_v2, 0.0  ;;  %v6837_v8 = vpack.i.bf16 %v4792_v13, %v4808_v50 }
 0x4cc   : > { %v6843_v29 = vpack.i.bf16 %v4795_v16, %v4811_v46 }
 0x4cd   : > { %6834 = vxpose.xlu1.b32.cont [3/16] %v6833_v37, 128  ;;  %v6636_v62 = vpop.f32.mrb[20].mxu0  ;;  %v6839_v31 = vpack.i.bf16 %v4793_v14, %v4809_v59 }
 0x4ce   : > { %v4478_v1 = vadd.f32 %v6636_v62, %v8190_v4  ;;  %v4469_v3 = vpop.f32.mrb[21].mxu0 }
 0x4cf   : > { %v4470_v21 = vadd.f32 %v4469_v3, %v8190_v4  ;;  %v6637_v19 = vpop.f32.mrb[22].mxu0 }
 0x4d0   : > { %v4814_v10 = vmax.f32 %v4478_v1, 0.0  ;;  %v4481_v23 = vadd.f32 %v6637_v19, %v8190_v4  ;;  %v4472_v15 = vpop.f32.mrb[23].mxu0 }
 0x4d1   : > { %6836 = vxpose.xlu1.b32.cont [4/16] %v6835_v45, 128  ;;  %v4812_v27 = vmax.f32 %v4470_v21, 0.0  ;;  %v4473_v30 = vadd.f32 %v4472_v15, %v8190_v4 }
 0x4d2   : > { %v4815_v32 = vmax.f32 %v4481_v23, 0.0  ;;  %v6849_v48 = vpack.i.bf16 %v4798_v22, %v4814_v10 }
 0x4d3   : > { %v4813_v33 = vmax.f32 %v4473_v30, 0.0  ;;  %v6845_v52 = vpack.i.bf16 %v4796_v25, %v4812_v27 }
 0x4d4   : > { %v6851_v54 = vpack.i.bf16 %v4799_v17, %v4815_v32 }
 0x4d5   : > { %6838 = vxpose.xlu1.b32.cont [5/16] %v6837_v8, 128  ;;  %v6640_v35 = vpop.f32.mrb[24].mxu0  ;;  %v6847_v56 = vpack.i.bf16 %v4797_v11, %v4813_v33 }
 0x4d6   : > { %v4494_v36 = vadd.f32 %v6640_v35, %v8190_v4  ;;  %v4485_v37 = vpop.f32.mrb[25].mxu0 }
 0x4d7   : > { %v4486_v5 = vadd.f32 %v4485_v37, %v8190_v4  ;;  %v6641_v58 = vpop.f32.mrb[26].mxu0 }
 0x4d8   : > { %v4818_v40 = vmax.f32 %v4494_v36, 0.0  ;;  %v4497_v45 = vadd.f32 %v6641_v58, %v8190_v4  ;;  %v4488_v34 = vpop.f32.mrb[27].mxu0 }
 0x4d9   : > { %6840 = vxpose.xlu1.b32.cont [6/16] %v6839_v31, 128  ;;  %v4816_v9 = vmax.f32 %v4486_v5, 0.0  ;;  %v4489_v43 = vadd.f32 %v4488_v34, %v8190_v4 }
 0x4da   : > { %v4819_v47 = vmax.f32 %v4497_v45, 0.0  ;;  %v6857_v51 = vpack.i.bf16 %v4802_v6, %v4818_v40 }
 0x4db   : > { %v4817_v60 = vmax.f32 %v4489_v43, 0.0  ;;  %v6853_v49 = vpack.i.bf16 %v4800_v42, %v4816_v9 }
 0x4dc   : > { %v6859_v20 = vpack.i.bf16 %v4803_v39, %v4819_v47 }
 0x4dd   : > { %6842 = vxpose.xlu1.b32.cont [7/16] %v6841_v41, 128  ;;  %v6644_v7 = vpop.f32.mrb[28].mxu0  ;;  %v6855_v28 = vpack.i.bf16 %v4801_v53, %v4817_v60 }
 0x4de   : > { %v4501_v57 = vpop.f32.mrb[29].mxu0  ;;  %v4510_v62 = vadd.f32 %v6644_v7, %v8190_v4 }
 0x4df   : > { %v6645_v63 = vpop.f32.mrb[30].mxu0  ;;  %v4502_v31 = vadd.f32 %v4501_v57, %v8190_v4 }
 0x4e0   : > { %v4504_v26 = vpop.f32.mrb[31].mxu0  ;;  %v4513_v1 = vadd.f32 %v6645_v63, %v8190_v4  ;;  %v4822_v21 = vmax.f32 %v4510_v62, 0.0 }
 0x4e1   : > { %6844 = vxpose.xlu1.b32.cont [8/16] %v6843_v29, 128  ;;  %v4505_v19 = vadd.f32 %v4504_v26, %v8190_v4  ;;  %v4820_v23 = vmax.f32 %v4502_v31, 0.0 }
 0x4e2   : > { %v4823_v33 = vmax.f32 %v4513_v1, 0.0 }
 0x4e3   : > { %v4821_v55 = vmax.f32 %v4505_v19, 0.0 }
 0x4e5   : > { %v6648_v13 = vpop.f32.mrb[32].mxu0  ;;  %6846 = vxpose.xlu1.b32.cont [9/16] %v6845_v52, 128 }
 0x4e6   : > { %v4517_v50 = vpop.f32.mrb[33].mxu0  ;;  %v4526_v15 = vadd.f32 %v6648_v13, %v8190_v4 }
 0x4e7   : > { %v6649_v2 = vpop.f32.mrb[34].mxu0  ;;  %v4518_v17 = vadd.f32 %v4517_v50, %v8190_v4  ;;  %v7274_v50 = vmov 0  }
 0x4e8   : > { %v4520_v16 = vpop.f32.mrb[35].mxu0  ;;  %v4529_v32 = vadd.f32 %v6649_v2, %v8190_v4  ;;  %v4826_v36 = vmax.f32 %v4526_v15, 0.0  ;;  %5243 = vmatprep.mubr.bf16.mxu1 %v7274_v50 }
 0x4e9   : > { %6848 = vxpose.xlu1.b32.cont [10/16] %v6847_v56, 128  ;;  %v4521_v52 = vadd.f32 %v4520_v16, %v8190_v4  ;;  %v4824_v37 = vmax.f32 %v4518_v17, 0.0 }
 0x4ea   : > { %v4827_v38 = vmax.f32 %v4529_v32, 0.0 }
 0x4eb   : > { %v4825_v40 = vmax.f32 %v4521_v52, 0.0 }
 0x4ed   : > { %v6652_v46 = vpop.f32.mrb[36].mxu0  ;;  %6850 = vxpose.xlu1.b32.cont [11/16] %v6849_v48, 128 }
 0x4ee   : > { %v4533_v14 = vpop.f32.mrb[37].mxu0  ;;  %v4542_v45 = vadd.f32 %v6652_v46, %v8190_v4 }
 0x4ef   : > { %v6653_v59 = vpop.f32.mrb[38].mxu0  ;;  %v4534_v42 = vadd.f32 %v4533_v14, %v8190_v4 }
 0x4f0   : > { %v4536_v8 = vpop.f32.mrb[39].mxu0  ;;  %v4545_v9 = vadd.f32 %v6653_v59, %v8190_v4 }
 0x4f1   : > { %6852 = vxpose.xlu1.b32.cont [12/16] %v6851_v54, 128  ;;  %v4828_v19 = vmax.f32 %v4534_v42, 0.0 }
 0x4f5   : > { %v8296_v61 = vpop.f32.mrb[40].mxu0  ;;  %6854 = vxpose.xlu1.b32.cont [13/16] %v6853_v49, 128 }
 0x4f6   : > { %v8298_v41 = vpop.f32.mrb[41].mxu0 }
 0x4f7   : > { %v8300_v24 = vpop.f32.mrb[42].mxu0 }
 0x4f8   : > { %v8302_v29 = vpop.f32.mrb[43].mxu0 }
 0x4f9   : > { %6856 = vxpose.xlu1.b32.cont [14/16] %v6855_v28, 128 }
 0x4fd   : > { %v6660_v0 = vpop.f32.mrb[44].mxu0  ;;  %6858 = vxpose.xlu1.b32.cont [15/16] %v6857_v51, 128  ;;  %v4537_v51 = vadd.f32 %v4536_v8, %v8190_v4 }
 0x4fe   : > { %v4574_v3 = vadd.f32 %v6660_v0, %v8190_v4  ;;  %v4565_v12 = vpop.f32.mrb[45].mxu0 }
 0x4ff   : > { %v4566_v22 = vadd.f32 %v4565_v12, %v8190_v4  ;;  %v6661_v10 = vpop.f32.mrb[46].mxu0 }
 0x500   : > { %v4838_v25 = vmax.f32 %v4574_v3, 0.0  ;;  %v4577_v27 = vadd.f32 %v6661_v10, %v8190_v4  ;;  %v4568_v30 = vpop.f32.mrb[47].mxu0  ;;  %v4830_v3 = vmax.f32 %v4542_v45, 0.0  ;;  %v4829_v10 = vmax.f32 %v4537_v51, 0.0 }
 0x501   : > { %v4836_v48 = vmax.f32 %v4566_v22, 0.0  ;;  %v4569_v11 = vadd.f32 %v4568_v30, %v8190_v4  ;;  %6860 = vxpose.xlu1.b32.end [16/16] %v6859_v20, 128  ;;  %v4831_v22 = vmax.f32 %v4545_v9, 0.0 }
 0x502   : > { %v6945_v18 = vpack.i.bf16 %v4822_v21, %v4838_v25  ;;  %v4839_v54 = vmax.f32 %v4577_v27, 0.0  ;;  %v4558_v25 = vadd.f32 %v8296_v61, %v8190_v4 }
 0x503   : > { %v4837_v35 = vmax.f32 %v4569_v11, 0.0  ;;  %v6941_v56 = vpack.i.bf16 %v4820_v23, %v4836_v48  ;;  %v4550_v48 = vadd.f32 %v8298_v41, %v8190_v4  ;;  %v4553_v41 = vadd.f32 %v8302_v29, %v8190_v4 }
 0x504   : > { %v6947_v44 = vpack.i.bf16 %v4823_v33, %v4839_v54  ;;  %v4834_v42 = vmax.f32 %v4558_v25, 0.0 }
 0x505   : > { %v6943_v5 = vpack.i.bf16 %v4821_v55, %v4837_v35  ;;  %6942 = vxpose.xlu0.b32.start [1/16] %v6941_v56, 128  ;;  %v6749_v58 = vpop.trf.xlu0  ;;  %v6664_v6 = vpop.f32.mrb[48].mxu0  ;;  %v4832_v9 = vmax.f32 %v4550_v48, 0.0 }
 0x506   : > { %v4581_v34 = vpop.f32.mrb[49].mxu0  ;;  %v4590_v43 = vadd.f32 %v6664_v6, %v8190_v4  ;;  %v6753_v53 = vunpack.i.h.bf16 %v6749_v58  ;;  %v6750_v60 = vunpack.i.l.bf16 %v6749_v58 }
 0x507   : > { %v4582_v39 = vadd.f32 %v4581_v34, %v8190_v4  ;;  %v6665_v47 = vpop.f32.mrb[50].mxu0 }
 0x508   : > { %v4593_v49 = vadd.f32 %v6665_v47, %v8190_v4  ;;  %v4584_v20 = vpop.f32.mrb[51].mxu0  ;;  %v4842_v28 = vmax.f32 %v4590_v43, 0.0 }
 0x509   : > { %6944 = vxpose.xlu0.b32.cont [2/16] %v6943_v5, 128  ;;  %v6754_v7 = vpop.trf.xlu0  ;;  %v4840_v57 = vmax.f32 %v4582_v39, 0.0  ;;  %v4585_v63 = vadd.f32 %v4584_v20, %v8190_v4 }
 0x50a   : > { %v6758_v26 = vunpack.i.h.bf16 %v6754_v7  ;;  %v6755_v13 = vunpack.i.l.bf16 %v6754_v7  ;;  %v8325_v2 = vpack.i.bf16 %v4826_v36, %v4842_v28  ;;  %v4843_v46 = vmax.f32 %v4593_v49, 0.0 }
 0x50b   : > { %v6949_v16 = vpack.i.bf16 %v4824_v37, %v4840_v57  ;;  %v4841_v14 = vmax.f32 %v4585_v63, 0.0  ;;  %v4561_v37 = vadd.f32 %v8300_v24, %v8190_v4 }
 0x50c   : > { %v5141_v59 = vpack.c.bf16 %v6755_v13, %v6750_v60  ;;  %v5140_v8 = vpack.c.bf16 %v6758_v26, %v6753_v53  ;;  %v8327_v62 = vpack.i.bf16 %v4827_v38, %v4843_v46  ;;  %v4833_v60 = vmax.f32 %v4553_v41, 0.0 }
 0x50d   : > { %6946 = vxpose.xlu0.b32.cont [3/16] %v6945_v18, 128  ;;  %v6951_v31 = vpack.i.bf16 %v4825_v40, %v4841_v14  ;;  %v6668_v0 = vpop.f32.mrb[52].mxu0  ;;  %v6759_v1 = vpop.trf.xlu0  ;;  %v4835_v24 = vmax.f32 %v4561_v37, 0.0 }
 0x50e   : > { %5211 = vmatprep.subr.bf16.mxu1 %v5141_v59  ;;  %v4606_v12 = vadd.f32 %v6668_v0, %v8190_v4  ;;  %v4597_v21 = vpop.f32.mrb[53].mxu0  ;;  %v6763_v32 = vunpack.i.h.bf16 %v6759_v1  ;;  %v6760_v52 = vunpack.i.l.bf16 %v6759_v1 }
 0x50f   : > { %5212 = vmatpush1.bf16.msra.mxu1 %v5140_v8  ;;  %v4598_v23 = vadd.f32 %v4597_v21, %v8190_v4  ;;  %v6669_v15 = vpop.f32.mrb[54].mxu0 }
 0x510   : > { %v4846_v27 = vmax.f32 %v4606_v12, 0.0  ;;  %v4609_v30 = vadd.f32 %v6669_v15, %v8190_v4  ;;  %v4600_v17 = vpop.f32.mrb[55].mxu0 }
 0x511   : > { %6948 = vxpose.xlu0.b32.cont [4/16] %v6947_v44, 128  ;;  %v4844_v11 = vmax.f32 %v4598_v23, 0.0  ;;  %v4601_v33 = vadd.f32 %v4600_v17, %v8190_v4  ;;  %v6764_v18 = vpop.trf.xlu0 }
 0x512   : > { %v8337_v54 = vpack.i.bf16 %v4830_v3, %v4846_v27  ;;  %v4847_v55 = vmax.f32 %v4609_v30, 0.0  ;;  %v6768_v35 = vunpack.i.h.bf16 %v6764_v18  ;;  %v6765_v36 = vunpack.i.l.bf16 %v6764_v18 }
 0x513   : > { %v6957_v56 = vpack.i.bf16 %v4828_v19, %v4844_v11  ;;  %v4845_v61 = vmax.f32 %v4601_v33, 0.0 }
 0x514   : > { %v8341_v38 = vpack.i.bf16 %v4831_v22, %v4847_v55  ;;  %v5148_v5 = vpack.c.bf16 %v6768_v35, %v6763_v32  ;;  %v5149_v6 = vpack.c.bf16 %v6765_v36, %v6760_v52 }
 0x515   : > { %v6959_v44 = vpack.i.bf16 %v4829_v10, %v4845_v61  ;;  %v6672_v58 = vpop.f32.mrb[56].mxu0  ;;  %6950 = vxpose.xlu0.b32.cont [5/16] %v6949_v16, 128  ;;  %v6769_v40 = vpop.trf.xlu0 }
 0x516   : > { %v4622_v45 = vadd.f32 %v6672_v58, %v8190_v4  ;;  %v4613_v34 = vpop.f32.mrb[57].mxu0  ;;  %5213 = vmatprep.subr.bf16.mxu1 %v5149_v6  ;;  %v6773_v29 = vunpack.i.h.bf16 %v6769_v40  ;;  %v6770_v7 = vunpack.i.l.bf16 %v6769_v40 }
 0x517   : > { %v4614_v43 = vadd.f32 %v4613_v34, %v8190_v4  ;;  %v6673_v39 = vpop.f32.mrb[58].mxu0  ;;  %5214 = vmatpush1.bf16.msra.mxu1 %v5148_v5 }
 0x518   : > { %v4850_v47 = vmax.f32 %v4622_v45, 0.0  ;;  %v4625_v51 = vadd.f32 %v6673_v39, %v8190_v4  ;;  %v4616_v53 = vpop.f32.mrb[59].mxu0 }
 0x519   : > { %v4848_v49 = vmax.f32 %v4614_v43, 0.0  ;;  %v4617_v20 = vadd.f32 %v4616_v53, %v8190_v4  ;;  %6952 = vxpose.xlu0.b32.cont [6/16] %v6951_v31, 128  ;;  %v6774_v28 = vpop.trf.xlu0 }
 0x51a   : > { %v8349_v57 = vpack.i.bf16 %v4834_v42, %v4850_v47  ;;  %v4851_v63 = vmax.f32 %v4625_v51, 0.0  ;;  %v6778_v26 = vunpack.i.h.bf16 %v6774_v28  ;;  %v6775_v46 = vunpack.i.l.bf16 %v6774_v28 }
 0x51b   : > { %v6965_v13 = vpack.i.bf16 %v4832_v9, %v4848_v49  ;;  %v4849_v16 = vmax.f32 %v4617_v20, 0.0 }
 0x51c   : > { %v8351_v14 = vpack.i.bf16 %v4835_v24, %v4851_v63  ;;  %v5156_v59 = vpack.c.bf16 %v6778_v26, %v6773_v29  ;;  %v5157_v1 = vpack.c.bf16 %v6775_v46, %v6770_v7 }
 0x51d   : > { %v6967_v8 = vpack.i.bf16 %v4833_v60, %v4849_v16  ;;  %v6676_v0 = vpop.f32.mrb[60].mxu0  ;;  %6954 = vxpose.xlu0.b32.cont [7/16] %v8325_v2, 128  ;;  %v6779_v3 = vpop.trf.xlu0 }
 0x51e   : > { %v4629_v12 = vpop.f32.mrb[61].mxu0  ;;  %5215 = vmatprep.subr.bf16.mxu1 %v5157_v1  ;;  %v6783_v19 = vunpack.i.h.bf16 %v6779_v3  ;;  %v6780_v22 = vunpack.i.l.bf16 %v6779_v3 }
 0x51f   : > { %v6677_v31 = vpop.f32.mrb[62].mxu0  ;;  %5216 = vmatpush1.bf16.msra.mxu1 %v5156_v59  ;;  %v4630_v47 = vadd.f32 %v4629_v12, %v8190_v4 }
 0x520   : > { %v4632_v21 = vpop.f32.mrb[63].mxu0  ;;  %v4641_v29 = vadd.f32 %v6677_v31, %v8190_v4 }
 0x521   : > { %6956 = vxpose.xlu0.b32.cont [8/16] %v8327_v62, 128  ;;  %v6784_v10 = vpop.trf.xlu0  ;;  %v4633_v49 = vadd.f32 %v4632_v21, %v8190_v4  ;;  %v4852_v63 = vmax.f32 %v4630_v47, 0.0 }
 0x522   : > { %v6788_v23 = vunpack.i.h.bf16 %v6784_v10  ;;  %v6785_v15 = vunpack.i.l.bf16 %v6784_v10  ;;  %v4855_v46 = vmax.f32 %v4641_v29, 0.0 }
 0x524   : > { %v5164_v25 = vpack.c.bf16 %v6788_v23, %v6783_v19  ;;  %v5165_v30 = vpack.c.bf16 %v6785_v15, %v6780_v22 }
 0x525   : > { %v6680_v27 = vpop.f32.mrb[64].mxu0  ;;  %6958 = vxpose.xlu0.b32.cont [9/16] %v6957_v56, 128  ;;  %v6789_v17 = vpop.trf.xlu0 }
 0x526   : > { %v4645_v2 = vpop.f32.mrb[65].mxu0  ;;  %5217 = vmatprep.subr.bf16.mxu1 %v5165_v30  ;;  %v6793_v11 = vunpack.i.h.bf16 %v6789_v17  ;;  %v6790_v33 = vunpack.i.l.bf16 %v6789_v17  ;;  %v4654_v1 = vadd.f32 %v6680_v27, %v8190_v4 }
 0x527   : > { %v6681_v32 = vpop.f32.mrb[66].mxu0  ;;  %5218 = vmatpush1.bf16.msra.mxu1 %v5164_v25  ;;  %v4646_v3 = vadd.f32 %v4645_v2, %v8190_v4 }
 0x528   : > { %v8355_v48 = vpop.f32.mrb[67].mxu0  ;;  %v4657_v21 = vadd.f32 %v6681_v32, %v8190_v4 }
 0x529   : > { %6960 = vxpose.xlu0.b32.cont [10/16] %v6959_v44, 128  ;;  %v6794_v52 = vpop.trf.xlu0  ;;  %v4649_v23 = vadd.f32 %v8355_v48, %v8190_v4 }
 0x52a   : > { %v6798_v62 = vunpack.i.h.bf16 %v6794_v52  ;;  %v6795_v18 = vunpack.i.l.bf16 %v6794_v52 }
 0x52c   : > { %v5172_v55 = vpack.c.bf16 %v6798_v62, %v6793_v11  ;;  %v5173_v56 = vpack.c.bf16 %v6795_v18, %v6790_v33 }
 0x52d   : > { %v8357_v35 = vpop.f32.mrb[68].mxu0  ;;  %6962 = vxpose.xlu0.b32.cont [11/16] %v8337_v54, 128  ;;  %v6799_v61 = vpop.trf.xlu0 }
 0x52e   : > { %v8360_v36 = vpop.f32.mrb[69].mxu0  ;;  %5219 = vmatprep.subr.bf16.mxu1 %v5173_v56  ;;  %v6803_v41 = vunpack.i.h.bf16 %v6799_v61  ;;  %v6800_v44 = vunpack.i.l.bf16 %v6799_v61  ;;  %v4856_v56 = vmax.f32 %v4646_v3, 0.0 }
 0x52f   : > { %v8362_v37 = vpop.f32.mrb[70].mxu0  ;;  %5220 = vmatpush1.bf16.msra.mxu1 %v5172_v55  ;;  %v4858_v55 = vmax.f32 %v4654_v1, 0.0 }
 0x530   : > { %v8364_v5 = vpop.f32.mrb[71].mxu0 }
 0x531   : > { %6964 = vxpose.xlu0.b32.cont [12/16] %v8341_v38, 128  ;;  %v6804_v58 = vpop.trf.xlu0  ;;  %v4638_v38 = vadd.f32 %v6676_v0, %v8190_v4  ;;  %v4853_v0 = vmax.f32 %v4633_v49, 0.0 }
 0x532   : > { %v6808_v6 = vunpack.i.h.bf16 %v6804_v58  ;;  %v6805_v40 = vunpack.i.l.bf16 %v6804_v58  ;;  %v4859_v58 = vmax.f32 %v4657_v21, 0.0 }
 0x533   : > { %v4854_v28 = vmax.f32 %v4638_v38, 0.0  ;;  %v4673_v38 = vadd.f32 %v8362_v37, %v8190_v4 }
 0x534   : > { %v5180_v45 = vpack.c.bf16 %v6808_v6, %v6803_v41  ;;  %v5181_v54 = vpack.c.bf16 %v6805_v40, %v6800_v44  ;;  %v4857_v40 = vmax.f32 %v4649_v23, 0.0 }
 0x535   : > { %v8367_v34 = vpop.f32.mrb[72].mxu0  ;;  %6966 = vxpose.xlu0.b32.cont [13/16] %v6965_v13, 128  ;;  %v6809_v42 = vpop.trf.xlu0 }
 0x536   : > { %v8369_v9 = vpop.f32.mrb[73].mxu0  ;;  %5221 = vmatprep.subr.bf16.mxu1 %v5181_v54  ;;  %v6813_v24 = vunpack.i.h.bf16 %v6809_v42  ;;  %v6810_v51 = vunpack.i.l.bf16 %v6809_v42  ;;  %v4662_v54 = vadd.f32 %v8360_v36, %v8190_v4  ;;  %v4665_v36 = vadd.f32 %v8364_v5, %v8190_v4 }
 0x537   : > { %v8371_v43 = vpop.f32.mrb[74].mxu0  ;;  %5222 = vmatpush1.bf16.msra.mxu1 %v5180_v45  ;;  %v4670_v45 = vadd.f32 %v8357_v35, %v8190_v4  ;;  %v8404_v35 = vld [vmem:[%s8463_s6] sm:$0xf]  ;;  %v4686_v23 = vadd.f32 %v8367_v34, %v8190_v4 }
 0x538   : > { %v8373_v39 = vpop.f32.mrb[75].mxu0  ;;  %v4860_v21 = vmax.f32 %v4662_v54, 0.0 }
 0x539   : > { %6968 = vxpose.xlu0.b32.cont [14/16] %v6967_v8, 128  ;;  %v6814_v53 = vpop.trf.xlu0  ;;  %v4862_v3 = vmax.f32 %v4670_v45, 0.0  ;;  %v4866_v54 = vmax.f32 %v4686_v23, 0.0 }
 0x53a   : > { %v6818_v60 = vunpack.i.h.bf16 %v6814_v53  ;;  %v6815_v20 = vunpack.i.l.bf16 %v6814_v53 }
 0x53c   : > { %v5188_v7 = vpack.c.bf16 %v6818_v60, %v6813_v24  ;;  %v5189_v13 = vpack.c.bf16 %v6815_v20, %v6810_v51 }
 0x53d   : > { %v6692_v26 = vpop.f32.mrb[76].mxu0  ;;  %6970 = vxpose.xlu0.b32.cont [15/16] %v8349_v57, 128  ;;  %v6819_v16 = vpop.trf.xlu0 }
 0x53e   : > { %v4702_v59 = vadd.f32 %v6692_v26, %v8190_v4  ;;  %v4693_v8 = vpop.f32.mrb[77].mxu0  ;;  %5223 = vmatprep.subr.bf16.mxu1 %v5189_v13  ;;  %v6823_v10 = vunpack.i.h.bf16 %v6819_v16  ;;  %v6820_v27 = vunpack.i.l.bf16 %v6819_v16 }
 0x53f   : > { %v4694_v12 = vadd.f32 %v4693_v8, %v8190_v4  ;;  %v6693_v31 = vpop.f32.mrb[78].mxu0  ;;  %5224 = vmatpush1.bf16.msra.mxu1 %v5188_v7 }
 0x540   : > { %v4870_v19 = vmax.f32 %v4702_v59, 0.0  ;;  %v4705_v57 = vadd.f32 %v6693_v31, %v8190_v4  ;;  %v4696_v22 = vpop.f32.mrb[79].mxu0 }
 0x541   : > { %v4868_v15 = vmax.f32 %v4694_v12, 0.0  ;;  %v4697_v25 = vadd.f32 %v4696_v22, %v8190_v4  ;;  %6972 = vxpose.xlu0.b32.end [16/16] %v8351_v14, 128  ;;  %v6824_v30 = vpop.trf.xlu0 }
 0x542   : > { %v7057_v17 = vpack.i.bf16 %v4854_v28, %v4870_v19  ;;  %v4871_v2 = vmax.f32 %v4705_v57, 0.0  ;;  %v6828_v11 = vunpack.i.h.bf16 %v6824_v30  ;;  %v6825_v52 = vunpack.i.l.bf16 %v6824_v30 }
 0x543   : > { %v4869_v32 = vmax.f32 %v4697_v25, 0.0  ;;  %v7053_v33 = vpack.i.bf16 %v4852_v63, %v4868_v15  ;;  %v4863_v19 = vmax.f32 %v4673_v38, 0.0  ;;  %v4861_v57 = vmax.f32 %v4665_v36, 0.0 }
 0x544   : > { %v8390_v62 = vpack.i.bf16 %v4855_v46, %v4871_v2  ;;  %v5196_v18 = vpack.c.bf16 %v6828_v11, %v6823_v10  ;;  %v5197_v44 = vpack.c.bf16 %v6825_v52, %v6820_v27 }
 0x545   : > { %v7055_v61 = vpack.i.bf16 %v4853_v0, %v4869_v32  ;;  %v6696_v48 = vpop.f32.mrb[80].mxu0  ;;  %7054 = vxpose.xlu1.b32.start [1/16] %v7053_v33, 128  ;;  %v6861_v41 = vpop.trf.xlu1 }
 0x546   : > { %v4718_v14 = vadd.f32 %v6696_v48, %v8190_v4  ;;  %v4709_v6 = vpop.f32.mrb[81].mxu0  ;;  %5225 = vmatprep.subr.bf16.mxu1 %v5197_v44  ;;  %v6865_v29 = vunpack.i.h.bf16 %v6861_v41  ;;  %v6862_v20 = vunpack.i.l.bf16 %v6861_v41  ;;  %v4689_v48 = vadd.f32 %v8371_v43, %v8190_v4 }
 0x547   : > { %v4710_v42 = vadd.f32 %v4709_v6, %v8190_v4  ;;  %v6697_v24 = vpop.f32.mrb[82].mxu0  ;;  %5226 = vmatpush1.bf16.msra.mxu1 %v5196_v18  ;;  %v4681_v44 = vadd.f32 %v8373_v39, %v8190_v4 }
 0x548   : > { %v4874_v47 = vmax.f32 %v4718_v14, 0.0  ;;  %v4721_v51 = vadd.f32 %v6697_v24, %v8190_v4  ;;  %v4712_v53 = vpop.f32.mrb[83].mxu0  ;;  %v4867_v43 = vmax.f32 %v4689_v48, 0.0 }
 0x549   : > { %v4872_v60 = vmax.f32 %v4710_v42, 0.0  ;;  %v4713_v49 = vadd.f32 %v4712_v53, %v8190_v4  ;;  %7056 = vxpose.xlu1.b32.cont [2/16] %v7055_v61, 128  ;;  %v6866_v37 = vpop.trf.xlu1 }
 0x54a   : > { %v8409_v7 = vpack.i.bf16 %v4858_v55, %v4874_v47  ;;  %v4875_v28 = vmax.f32 %v4721_v51, 0.0  ;;  %v6870_v63 = vunpack.i.h.bf16 %v6866_v37  ;;  %v6867_v16 = vunpack.i.l.bf16 %v6866_v37  ;;  %5244 = vmatmul.mubr.bf16.vlgmr.msra.gmra.mrb[36].mxu1 %v8404_v35 }
 0x54b   : > { %v7061_v26 = vpack.i.bf16 %v4856_v56, %v4872_v60  ;;  %v4873_v13 = vmax.f32 %v4713_v49, 0.0  ;;  %5284 = vmatprep.mubr.bf16.mxu1 %v7274_v50 }
 0x54c   : > { %v8412_v46 = vpack.i.bf16 %v4859_v58, %v4875_v28  ;;  %v5142_v59 = vpack.c.bf16 %v6870_v63, %v6865_v29  ;;  %v5143_v1 = vpack.c.bf16 %v6867_v16, %v6862_v20  ;;  %v4865_v29 = vmax.f32 %v4681_v44, 0.0 }
 0x54d   : > { %v7063_v5 = vpack.i.bf16 %v4857_v40, %v4873_v13  ;;  %v6700_v8 = vpop.f32.mrb[84].mxu0  ;;  %7058 = vxpose.xlu1.b32.cont [3/16] %v7057_v17, 128  ;;  %v6871_v0 = vpop.trf.xlu1  ;;  %v4678_v17 = vadd.f32 %v8369_v9, %v8190_v4 }
 0x54e   : > { %v4734_v12 = vadd.f32 %v6700_v8, %v8190_v4  ;;  %v4725_v31 = vpop.f32.mrb[85].mxu0  ;;  %5252 = vmatprep.subr.bf16.mxu1 %v5143_v1  ;;  %v6875_v30 = vunpack.i.h.bf16 %v6871_v0  ;;  %v6872_v32 = vunpack.i.l.bf16 %v6871_v0 }
 0x54f   : > { %v4726_v22 = vadd.f32 %v4725_v31, %v8190_v4  ;;  %v6701_v10 = vpop.f32.mrb[86].mxu0  ;;  %5253 = vmatpush1.bf16.msra.mxu1 %v5142_v59  ;;  %v4864_v42 = vmax.f32 %v4678_v17, 0.0 }
 0x550   : > { %v4878_v15 = vmax.f32 %v4734_v12, 0.0  ;;  %v4737_v25 = vadd.f32 %v6701_v10, %v8190_v4  ;;  %v4728_v27 = vpop.f32.mrb[87].mxu0 }
 0x551   : > { %v4876_v2 = vmax.f32 %v4726_v22, 0.0  ;;  %v4729_v11 = vadd.f32 %v4728_v27, %v8190_v4  ;;  %7060 = vxpose.xlu1.b32.cont [4/16] %v8390_v62, 128  ;;  %v6876_v33 = vpop.trf.xlu1 }
 0x552   : > { %v8424_v52 = vpack.i.bf16 %v4862_v3, %v4878_v15  ;;  %v4879_v18 = vmax.f32 %v4737_v25, 0.0  ;;  %v6880_v34 = vunpack.i.h.bf16 %v6876_v33  ;;  %v6877_v61 = vunpack.i.l.bf16 %v6876_v33 }
 0x553   : > { %v7069_v55 = vpack.i.bf16 %v4860_v21, %v4876_v2  ;;  %v4877_v56 = vmax.f32 %v4729_v11, 0.0 }
 0x554   : > { %v8428_v41 = vpack.i.bf16 %v4863_v19, %v4879_v18  ;;  %v5150_v9 = vpack.c.bf16 %v6880_v34, %v6875_v30  ;;  %v5151_v6 = vpack.c.bf16 %v6877_v61, %v6872_v32 }
 0x555   : > { %v7071_v58 = vpack.i.bf16 %v4861_v57, %v4877_v56  ;;  %v6704_v62 = vpop.f32.mrb[88].mxu0  ;;  %7062 = vxpose.xlu1.b32.cont [5/16] %v7061_v26, 128  ;;  %v6881_v14 = vpop.trf.xlu1 }
 0x556   : > { %v4750_v40 = vadd.f32 %v6704_v62, %v8190_v4  ;;  %v4741_v45 = vpop.f32.mrb[89].mxu0  ;;  %5254 = vmatprep.subr.bf16.mxu1 %v5151_v6  ;;  %v6885_v39 = vunpack.i.h.bf16 %v6881_v14  ;;  %v6882_v49 = vunpack.i.l.bf16 %v6881_v14 }
 0x557   : > { %v4742_v24 = vadd.f32 %v4741_v45, %v8190_v4  ;;  %v6705_v38 = vpop.f32.mrb[90].mxu0  ;;  %5255 = vmatpush1.bf16.msra.mxu1 %v5150_v9 }
 0x558   : > { %v4882_v47 = vmax.f32 %v4750_v40, 0.0  ;;  %v4753_v51 = vadd.f32 %v6705_v38, %v8190_v4  ;;  %v4744_v53 = vpop.f32.mrb[91].mxu0 }
 0x559   : > { %v4880_v36 = vmax.f32 %v4742_v24, 0.0  ;;  %v4745_v60 = vadd.f32 %v4744_v53, %v8190_v4  ;;  %7064 = vxpose.xlu1.b32.cont [6/16] %v7063_v5, 128  ;;  %v6886_v20 = vpop.trf.xlu1 }
 0x55a   : > { %v7081_v37 = vpack.i.bf16 %v4866_v54, %v4882_v47  ;;  %v4883_v28 = vmax.f32 %v4753_v51, 0.0  ;;  %v6890_v63 = vunpack.i.h.bf16 %v6886_v20  ;;  %v6887_v16 = vunpack.i.l.bf16 %v6886_v20 }
 0x55b   : > { %v7077_v26 = vpack.i.bf16 %v4864_v42, %v4880_v36  ;;  %v4881_v13 = vmax.f32 %v4745_v60, 0.0 }
 0x55c   : > { %v7083_v59 = vpack.i.bf16 %v4867_v43, %v4883_v28  ;;  %v5158_v8 = vpack.c.bf16 %v6890_v63, %v6885_v39  ;;  %v5159_v3 = vpack.c.bf16 %v6887_v16, %v6882_v49 }
 0x55d   : > { %v7079_v0 = vpack.i.bf16 %v4865_v29, %v4881_v13  ;;  %7066 = vxpose.xlu1.b32.cont [7/16] %v8409_v7, 128  ;;  %v6891_v1 = vpop.trf.xlu1 }
 0x55e   : > { %5256 = vmatprep.subr.bf16.mxu1 %v5159_v3  ;;  %v6895_v12 = vunpack.i.h.bf16 %v6891_v1  ;;  %v6892_v31 = vunpack.i.l.bf16 %v6891_v1 }
 0x55f   : > { %5257 = vmatpush1.bf16.msra.mxu1 %v5158_v8 }
 0x561   : > { %7068 = vxpose.xlu1.b32.cont [8/16] %v8412_v46, 128  ;;  %v6896_v4 = vpop.trf.xlu1 }
 0x562   : > { %v6900_v5 = vunpack.i.h.bf16 %v6896_v4  ;;  %v6897_v21 = vunpack.i.l.bf16 %v6896_v4 }
 0x564   : > { %v5167_v19 = vpack.c.bf16 %v6897_v21, %v6892_v31  ;;  %v5166_v57 = vpack.c.bf16 %v6900_v5, %v6895_v12 }
 0x565   : > { %7070 = vxpose.xlu1.b32.cont [9/16] %v7069_v55, 128  ;;  %v6901_v22 = vpop.trf.xlu1 }
 0x566   : > { %5258 = vmatprep.subr.bf16.mxu1 %v5167_v19  ;;  %v6905_v10 = vunpack.i.h.bf16 %v6901_v22  ;;  %v6902_v23 = vunpack.i.l.bf16 %v6901_v22 }
 0x567   : > { %5259 = vmatpush1.bf16.msra.mxu1 %v5166_v57 }
 0x569   : > { %7072 = vxpose.xlu1.b32.cont [10/16] %v7071_v58, 128  ;;  %v6906_v7 = vpop.trf.xlu1 }
 0x56a   : > { %v6910_v15 = vunpack.i.h.bf16 %v6906_v7  ;;  %v6907_v25 = vunpack.i.l.bf16 %v6906_v7  ;;  %7165 = vset.pattern.permute.xlu0 %v7274_v50 }
 0x56c   : > { %v5175_v27 = vpack.c.bf16 %v6907_v25, %v6902_v23  ;;  %v5174_v30 = vpack.c.bf16 %v6910_v15, %v6905_v10 }
 0x56d   : > { %7074 = vxpose.xlu1.b32.cont [11/16] %v8424_v52, 128  ;;  %v6911_v46 = vpop.trf.xlu1 }
 0x56e   : > { %5260 = vmatprep.subr.bf16.mxu1 %v5175_v27  ;;  %v6915_v17 = vunpack.i.h.bf16 %v6911_v46  ;;  %v6912_v2 = vunpack.i.l.bf16 %v6911_v46 }
 0x56f   : > { %5261 = vmatpush1.bf16.msra.mxu1 %v5174_v30 }
 0x571   : > { %7076 = vxpose.xlu1.b32.cont [12/16] %v8428_v41, 128  ;;  %v6916_v11 = vpop.trf.xlu1  ;;  %v5205_v41 = vld [vmem:[%s8465_s8] sm:$0xff] }
 0x572   : > { %v6920_v32 = vunpack.i.h.bf16 %v6916_v11  ;;  %v6917_v33 = vunpack.i.l.bf16 %v6916_v11  ;;  %5208 = vperm.xlu0 %7165, %v5205_v41  }
 0x574   : > { %v5183_v18 = vpack.c.bf16 %v6917_v33, %v6912_v2  ;;  %v5182_v34 = vpack.c.bf16 %v6920_v32, %v6915_v17 }
 0x575   : > { %7078 = vxpose.xlu1.b32.cont [13/16] %v7077_v26, 128  ;;  %v6921_v55 = vpop.trf.xlu1 }
 0x576   : > { %5262 = vmatprep.subr.bf16.mxu1 %v5183_v18  ;;  %v6925_v56 = vunpack.i.h.bf16 %v6921_v55  ;;  %v6922_v61 = vunpack.i.l.bf16 %v6921_v55 }
 0x577   : > { %5263 = vmatpush1.bf16.msra.mxu1 %v5182_v34 }
 0x579   : > { %7080 = vxpose.xlu1.b32.cont [14/16] %v7079_v0, 128  ;;  %v6926_v52 = vpop.trf.xlu1 }
 0x57a   : > { %v6930_v48 = vunpack.i.h.bf16 %v6926_v52  ;;  %v6927_v9 = vunpack.i.l.bf16 %v6926_v52 }
 0x57c   : > { %v5191_v44 = vpack.c.bf16 %v6927_v9, %v6922_v61  ;;  %v5190_v58 = vpack.c.bf16 %v6930_v48, %v6925_v56 }
 0x57d   : > { %7082 = vxpose.xlu1.b32.cont [15/16] %v7081_v37, 128  ;;  %v6931_v62 = vpop.trf.xlu1 }
 0x57e   : > { %5264 = vmatprep.subr.bf16.mxu1 %v5191_v44  ;;  %v6935_v14 = vunpack.i.h.bf16 %v6931_v62  ;;  %v6932_v6 = vunpack.i.l.bf16 %v6931_v62 }
 0x57f   : > { %5265 = vmatpush1.bf16.msra.mxu1 %v5190_v58 }
 0x581   : > { %7084 = vxpose.xlu1.b32.end [16/16] %v7083_v59, 128  ;;  %v6936_v40 = vpop.trf.xlu1 }
 0x582   : > { %v6940_v45 = vunpack.i.h.bf16 %v6936_v40  ;;  %v6937_v54 = vunpack.i.l.bf16 %v6936_v40 }
 0x584   : > { %v5199_v42 = vpack.c.bf16 %v6937_v54, %v6932_v6  ;;  %v5198_v24 = vpack.c.bf16 %v6940_v45, %v6935_v14 }
 0x585   : > { %v6973_v38 = vpop.trf.xlu0 }
 0x586   : > { %5266 = vmatprep.subr.bf16.mxu1 %v5199_v42  ;;  %v6977_v43 = vunpack.i.h.bf16 %v6973_v38  ;;  %v6974_v47 = vunpack.i.l.bf16 %v6973_v38 }
 0x587   : > { %5267 = vmatpush1.bf16.msra.mxu1 %v5198_v24 }
 0x589   : > { %v6978_v51 = vpop.trf.xlu0 }
 0x58a   : > { %v6982_v53 = vunpack.i.h.bf16 %v6978_v51  ;;  %v6979_v39 = vunpack.i.l.bf16 %v6978_v51  ;;  %5285 = vmatmul.mubr.bf16.vlgmr.msra.gmra.mrb[40].mxu1 %v8404_v35 }
 0x58b   : > { %5325 = vmatprep.mubr.bf16.mxu1 %v7274_v50 }
 0x58c   : > { %v5145_v29 = vpack.c.bf16 %v6979_v39, %v6974_v47  ;;  %v5144_v36 = vpack.c.bf16 %v6982_v53, %v6977_v43 }
 0x58d   : > { %v6983_v60 = vpop.trf.xlu0 }
 0x58e   : > { %5293 = vmatprep.subr.bf16.mxu1 %v5145_v29  ;;  %v6987_v49 = vunpack.i.h.bf16 %v6983_v60  ;;  %v6984_v20 = vunpack.i.l.bf16 %v6983_v60 }
 0x58f   : > { %5294 = vmatpush1.bf16.msra.mxu1 %v5144_v36 }
 0x591   : > { %v6988_v37 = vpop.trf.xlu0 }
 0x592   : > { %v6992_v28 = vunpack.i.h.bf16 %v6988_v37  ;;  %v6989_v63 = vunpack.i.l.bf16 %v6988_v37 }
 0x594   : > { %v5153_v26 = vpack.c.bf16 %v6989_v63, %v6984_v20  ;;  %v5152_v13 = vpack.c.bf16 %v6992_v28, %v6987_v49 }
 0x595   : > { %v6993_v16 = vpop.trf.xlu0 }
 0x596   : > { %5295 = vmatprep.subr.bf16.mxu1 %v5153_v26  ;;  %v6997_v59 = vunpack.i.h.bf16 %v6993_v16  ;;  %v6994_v8 = vunpack.i.l.bf16 %v6993_v16 }
 0x597   : > { %5296 = vmatpush1.bf16.msra.mxu1 %v5152_v13 }
 0x599   : > { %v6998_v0 = vpop.trf.xlu0 }
 0x59a   : > { %v7002_v1 = vunpack.i.h.bf16 %v6998_v0  ;;  %v6999_v3 = vunpack.i.l.bf16 %v6998_v0 }
 0x59c   : > { %v5161_v12 = vpack.c.bf16 %v6999_v3, %v6994_v8  ;;  %v5160_v31 = vpack.c.bf16 %v7002_v1, %v6997_v59 }
 0x59d   : > { %v7003_v4 = vpop.trf.xlu0 }
 0x59e   : > { %5297 = vmatprep.subr.bf16.mxu1 %v5161_v12  ;;  %v7007_v5 = vunpack.i.h.bf16 %v7003_v4  ;;  %v7004_v21 = vunpack.i.l.bf16 %v7003_v4 }
 0x59f   : > { %5298 = vmatpush1.bf16.msra.mxu1 %v5160_v31 }
 0x5a1   : > { %v7008_v19 = vpop.trf.xlu0 }
 0x5a2   : > { %v7012_v57 = vunpack.i.h.bf16 %v7008_v19  ;;  %v7009_v22 = vunpack.i.l.bf16 %v7008_v19 }
 0x5a4   : > { %v5169_v10 = vpack.c.bf16 %v7009_v22, %v7004_v21  ;;  %v5168_v23 = vpack.c.bf16 %v7012_v57, %v7007_v5 }
 0x5a5   : > { %v7013_v7 = vpop.trf.xlu0 }
 0x5a6   : > { %5299 = vmatprep.subr.bf16.mxu1 %v5169_v10  ;;  %v7017_v15 = vunpack.i.h.bf16 %v7013_v7  ;;  %v7014_v25 = vunpack.i.l.bf16 %v7013_v7 }
 0x5a7   : > { %5300 = vmatpush1.bf16.msra.mxu1 %v5168_v23 }
 0x5a9   : > { %v7018_v27 = vpop.trf.xlu0 }
 0x5aa   : > { %v7022_v30 = vunpack.i.h.bf16 %v7018_v27  ;;  %v7019_v46 = vunpack.i.l.bf16 %v7018_v27 }
 0x5ac   : > { %v5177_v17 = vpack.c.bf16 %v7019_v46, %v7014_v25  ;;  %v5176_v2 = vpack.c.bf16 %v7022_v30, %v7017_v15 }
 0x5ad   : > { %v7023_v11 = vpop.trf.xlu0 }
 0x5ae   : > { %5301 = vmatprep.subr.bf16.mxu1 %v5177_v17  ;;  %v7027_v32 = vunpack.i.h.bf16 %v7023_v11  ;;  %v7024_v33 = vunpack.i.l.bf16 %v7023_v11 }
 0x5af   : > { %5302 = vmatpush1.bf16.msra.mxu1 %v5176_v2 }
 0x5b1   : > { %v7028_v18 = vpop.trf.xlu0 }
 0x5b2   : > { %v7032_v34 = vunpack.i.h.bf16 %v7028_v18  ;;  %v7029_v55 = vunpack.i.l.bf16 %v7028_v18 }
 0x5b4   : > { %v5185_v56 = vpack.c.bf16 %v7029_v55, %v7024_v33  ;;  %v5184_v61 = vpack.c.bf16 %v7032_v34, %v7027_v32 }
 0x5b5   : > { %v7033_v52 = vpop.trf.xlu0 }
 0x5b6   : > { %5303 = vmatprep.subr.bf16.mxu1 %v5185_v56  ;;  %v7037_v48 = vunpack.i.h.bf16 %v7033_v52  ;;  %v7034_v9 = vunpack.i.l.bf16 %v7033_v52 }
 0x5b7   : > { %5304 = vmatpush1.bf16.msra.mxu1 %v5184_v61 }
 0x5b9   : > { %v7038_v44 = vpop.trf.xlu0 }
 0x5ba   : > { %v7042_v58 = vunpack.i.h.bf16 %v7038_v44  ;;  %v7039_v62 = vunpack.i.l.bf16 %v7038_v44 }
 0x5bc   : > { %v5193_v41 = vpack.c.bf16 %v7039_v62, %v7034_v9  ;;  %v5192_v14 = vpack.c.bf16 %v7042_v58, %v7037_v48 }
 0x5bd   : > { %v7043_v6 = vpop.trf.xlu0 }
 0x5be   : > { %5305 = vmatprep.subr.bf16.mxu1 %v5193_v41  ;;  %v7047_v40 = vunpack.i.h.bf16 %v7043_v6  ;;  %v7044_v45 = vunpack.i.l.bf16 %v7043_v6 }
 0x5bf   : > { %5306 = vmatpush1.bf16.msra.mxu1 %v5192_v14 }
 0x5c1   : > { %v7048_v54 = vpop.trf.xlu0 }
 0x5c2   : > { %v7052_v42 = vunpack.i.h.bf16 %v7048_v54  ;;  %v7049_v24 = vunpack.i.l.bf16 %v7048_v54 }
 0x5c4   : > { %v5201_v38 = vpack.c.bf16 %v7049_v24, %v7044_v45  ;;  %v5200_v43 = vpack.c.bf16 %v7052_v42, %v7047_v40 }
 0x5c5   : > { %v7085_v47 = vpop.trf.xlu1 }
 0x5c6   : > { %5307 = vmatprep.subr.bf16.mxu1 %v5201_v38  ;;  %v7089_v51 = vunpack.i.h.bf16 %v7085_v47  ;;  %v7086_v53 = vunpack.i.l.bf16 %v7085_v47 }
 0x5c7   : > { %5308 = vmatpush1.bf16.msra.mxu1 %v5200_v43 }
 0x5c9   : > { %v7090_v39 = vpop.trf.xlu1 }
 0x5ca   : > { %v7094_v29 = vunpack.i.h.bf16 %v7090_v39  ;;  %v7091_v36 = vunpack.i.l.bf16 %v7090_v39  ;;  %5326 = vmatmul.mubr.bf16.vlgmr.msra.gmra.mrb[44].mxu1 %v8404_v35 }
 0x5cb   : > { %5366 = vmatprep.mubr.bf16.mxu1 %v7274_v50 }
 0x5cc   : > { %v5147_v60 = vpack.c.bf16 %v7091_v36, %v7086_v53  ;;  %v5146_v49 = vpack.c.bf16 %v7094_v29, %v7089_v51 }
 0x5cd   : > { %v7095_v20 = vpop.trf.xlu1 }
 0x5ce   : > { %5334 = vmatprep.subr.bf16.mxu1 %v5147_v60  ;;  %v7099_v37 = vunpack.i.h.bf16 %v7095_v20  ;;  %v7096_v28 = vunpack.i.l.bf16 %v7095_v20 }
 0x5cf   : > { %5335 = vmatpush1.bf16.msra.mxu1 %v5146_v49 }
 0x5d1   : > { %v7100_v63 = vpop.trf.xlu1 }
 0x5d2   : > { %v7104_v26 = vunpack.i.h.bf16 %v7100_v63  ;;  %v7101_v13 = vunpack.i.l.bf16 %v7100_v63 }
 0x5d4   : > { %v5155_v16 = vpack.c.bf16 %v7101_v13, %v7096_v28  ;;  %v5154_v59 = vpack.c.bf16 %v7104_v26, %v7099_v37 }
 0x5d5   : > { %v7105_v8 = vpop.trf.xlu1 }
 0x5d6   : > { %5336 = vmatprep.subr.bf16.mxu1 %v5155_v16  ;;  %v7109_v0 = vunpack.i.h.bf16 %v7105_v8  ;;  %v7106_v1 = vunpack.i.l.bf16 %v7105_v8 }
 0x5d7   : > { %5337 = vmatpush1.bf16.msra.mxu1 %v5154_v59 }
 0x5d9   : > { %v7110_v3 = vpop.trf.xlu1 }
 0x5da   : > { %v7114_v12 = vunpack.i.h.bf16 %v7110_v3  ;;  %v7111_v50 = vunpack.i.l.bf16 %v7110_v3 }
 0x5dc   : > { %v5163_v31 = vpack.c.bf16 %v7111_v50, %v7106_v1  ;;  %v5162_v4 = vpack.c.bf16 %v7114_v12, %v7109_v0 }
 0x5dd   : > { %v7115_v5 = vpop.trf.xlu1 }
 0x5de   : > { %5338 = vmatprep.subr.bf16.mxu1 %v5163_v31  ;;  %v7119_v21 = vunpack.i.h.bf16 %v7115_v5  ;;  %v7116_v19 = vunpack.i.l.bf16 %v7115_v5 }
 0x5df   : > { %5339 = vmatpush1.bf16.msra.mxu1 %v5162_v4 }
 0x5e1   : > { %v7120_v57 = vpop.trf.xlu1 }
 0x5e2   : > { %v7124_v22 = vunpack.i.h.bf16 %v7120_v57  ;;  %v7121_v10 = vunpack.i.l.bf16 %v7120_v57 }
 0x5e4   : > { %v5171_v23 = vpack.c.bf16 %v7121_v10, %v7116_v19  ;;  %v5170_v7 = vpack.c.bf16 %v7124_v22, %v7119_v21 }
 0x5e5   : > { %v7125_v15 = vpop.trf.xlu1 }
 0x5e6   : > { %5340 = vmatprep.subr.bf16.mxu1 %v5171_v23  ;;  %v7129_v25 = vunpack.i.h.bf16 %v7125_v15  ;;  %v7126_v27 = vunpack.i.l.bf16 %v7125_v15 }
 0x5e7   : > { %5341 = vmatpush1.bf16.msra.mxu1 %v5170_v7 }
 0x5e9   : > { %v7130_v30 = vpop.trf.xlu1 }
 0x5ea   : > { %v7134_v46 = vunpack.i.h.bf16 %v7130_v30  ;;  %v7131_v17 = vunpack.i.l.bf16 %v7130_v30 }
 0x5ec   : > { %v5179_v2 = vpack.c.bf16 %v7131_v17, %v7126_v27  ;;  %v5178_v11 = vpack.c.bf16 %v7134_v46, %v7129_v25 }
 0x5ed   : > { %v7135_v32 = vpop.trf.xlu1 }
 0x5ee   : > { %5342 = vmatprep.subr.bf16.mxu1 %v5179_v2  ;;  %v7139_v33 = vunpack.i.h.bf16 %v7135_v32  ;;  %v7136_v18 = vunpack.i.l.bf16 %v7135_v32 }
 0x5ef   : > { %5343 = vmatpush1.bf16.msra.mxu1 %v5178_v11 }
 0x5f1   : > { %v7140_v34 = vpop.trf.xlu1  ;;  %v5209_v51 = vpop.permute.xlu0 %5208 }
 0x5f2   : > { %v7144_v55 = vunpack.i.h.bf16 %v7140_v34  ;;  %v7141_v56 = vunpack.i.l.bf16 %v7140_v34 }
 0x5f4   : > { %v5187_v61 = vpack.c.bf16 %v7141_v56, %v7136_v18  ;;  %v5186_v52 = vpack.c.bf16 %v7144_v55, %v7139_v33 }
 0x5f5   : > { %v7145_v48 = vpop.trf.xlu1 }
 0x5f6   : > { %5344 = vmatprep.subr.bf16.mxu1 %v5187_v61  ;;  %v7149_v9 = vunpack.i.h.bf16 %v7145_v48  ;;  %v7146_v44 = vunpack.i.l.bf16 %v7145_v48 }
 0x5f7   : > { %5345 = vmatpush1.bf16.msra.mxu1 %v5186_v52 }
 0x5f9   : > { %v7150_v58 = vpop.trf.xlu1 }
 0x5fa   : > { %v7154_v62 = vunpack.i.h.bf16 %v7150_v58  ;;  %v7151_v41 = vunpack.i.l.bf16 %v7150_v58 }
 0x5fc   : > { %v5195_v14 = vpack.c.bf16 %v7151_v41, %v7146_v44  ;;  %v5194_v6 = vpack.c.bf16 %v7154_v62, %v7149_v9 }
 0x5fd   : > { %v7155_v40 = vpop.trf.xlu1 }
 0x5fe   : > { %5346 = vmatprep.subr.bf16.mxu1 %v5195_v14  ;;  %v7159_v45 = vunpack.i.h.bf16 %v7155_v40  ;;  %v7156_v54 = vunpack.i.l.bf16 %v7155_v40 }
 0x5ff   : > { %5347 = vmatpush1.bf16.msra.mxu1 %v5194_v6 }
 0x601   : > { %v7160_v42 = vpop.trf.xlu1 }
 0x602   : > { %v7164_v24 = vunpack.i.h.bf16 %v7160_v42  ;;  %v7161_v38 = vunpack.i.l.bf16 %v7160_v42 }
 0x604   : > { %v5202_v43 = vpack.c.bf16 %v7164_v24, %v7159_v45  ;;  %v5203_v47 = vpack.c.bf16 %v7161_v38, %v7156_v54 }
 0x606   : > { %5348 = vmatprep.subr.bf16.mxu1 %v5203_v47 }
 0x607   : > { %5349 = vmatpush1.bf16.msra.mxu1 %v5202_v43 }
 0x60a   : > { %5367 = vmatmul.mubr.bf16.vlgmr.msra.gmra.mrb[48].mxu1 %v8404_v35 }
 0x61d   : > { %v5245_v53 = vpop.f32.mrb[36].mxu1 }
 0x61e   : > { %v5247_v39 = vpop.f32.mrb[37].mxu1  ;;  %v5246_v29 = vadd.f32 %v5245_v53, %v5209_v51 }
 0x61f   : > { %v5249_v36 = vpop.f32.mrb[38].mxu1  ;;  %v5248_v60 = vadd.f32 %v5247_v39, %v5209_v51 }
 0x620   : > { %v5250_v49 = vpop.f32.mrb[39].mxu1 }
 0x621   : > { %v5643_v20 = vpack.c.bf16 %v5248_v60, %v5246_v29 }
 0x623   : > { %5407 = vst [vmem:[%s334_s22] sm:$0xff] %v5643_v20 }
 0x65d   : > { %v5286_v37 = vpop.f32.mrb[40].mxu1 }
 0x65e   : > { %v5287_v35 = vadd.f32 %v5286_v37, %v5209_v51  ;;  %v5288_v28 = vpop.f32.mrb[41].mxu1 }
 0x65f   : > { %v5289_v63 = vadd.f32 %v5288_v28, %v5209_v51  ;;  %v5290_v26 = vpop.f32.mrb[42].mxu1 }
 0x660   : > { %v5291_v13 = vpop.f32.mrb[43].mxu1 }
 0x661   : > { %v5644_v16 = vpack.c.bf16 %v5289_v63, %v5287_v35 }
 0x663   : > { %5408 = vst [vmem:[%s334_s22 + $0x8] sm:$0xff] %v5644_v16 }
 0x69d   : > { %v5327_v59 = vpop.f32.mrb[44].mxu1 }
 0x69e   : > { %v5328_v8 = vadd.f32 %v5327_v59, %v5209_v51  ;;  %v5329_v0 = vpop.f32.mrb[45].mxu1 }
 0x69f   : > { %v5330_v1 = vadd.f32 %v5329_v0, %v5209_v51  ;;  %v5331_v3 = vpop.f32.mrb[46].mxu1 }
 0x6a0   : > { %v5332_v12 = vpop.f32.mrb[47].mxu1 }
 0x6a1   : > { %v5645_v50 = vpack.c.bf16 %v5330_v1, %v5328_v8 }
 0x6a3   : > { %5409 = vst [vmem:[%s334_s22 + $0x10] sm:$0xff] %v5645_v50 }
 0x6dd   : > { %v5368_v31 = vpop.f32.mrb[48].mxu1 }
 0x6de   : > { %v5369_v4 = vadd.f32 %v5368_v31, %v5209_v51  ;;  %v5370_v5 = vpop.f32.mrb[49].mxu1 }
 0x6df   : > { %v5371_v21 = vadd.f32 %v5370_v5, %v5209_v51  ;;  %v5372_v19 = vpop.f32.mrb[50].mxu1 }
 0x6e0   : > { %v5373_v57 = vpop.f32.mrb[51].mxu1 }
 0x6e1   : > { %v5646_v22 = vpack.c.bf16 %v5371_v21, %v5369_v4 }
 0x6e3   : > { %5410 = vst [vmem:[%s334_s22 + $0x18] sm:$0xff] %v5646_v22 }
 0x6e4 PF: > { %s19_s30 = sadd.s32 1, %s7272_s30  }
 0x6e5   : > { %p16_p5 = scmp.ge.s32.totalorder %s19_s30, 4  }
 0x6e7   :  { %18 = sbr.rel (!%p16_p5) target bundleno = 1 (0x1), region = 86 }

</bundles_post_ra>
